<compile_context>
chip_gen: v7x
topology: tpu7x:2x2x1
jax: 0.10.0
libtpu: 0.0.40
codegen_flags: <defaults>
</compile_context>

<pallas_src>
import functools

import jax
import jax.numpy as jnp
from jax import lax
from jax.experimental import pallas as pl
from jax.experimental.pallas import tpu as pltpu


# ----------------------------------------------------------------------------- kernel


def _nov_kernel(x_ref, cw1_ref, cb1_ref, bn1s_ref, bn1b_ref,
                cw2_ref, cb2_ref, bn2s_ref, bn2b_ref,
                bnfs_ref, bnfb_ref, a_ref, gwbd_ref,
                fc1u_ref, fc1b_ref, fc2bd_ref, fc2b_ref,
                out_ref, *, dilations, batch, time, kernel_size, n_real_ch):
    CP = x_ref.shape[0]                    # padded channel count (multiple of 8)
    B, T, K = batch, time, kernel_size
    n_cheby = gwbd_ref.shape[0]

    def shift_taps(h, d):
        """[CP, B*T] -> [K*CP, B*T]; rows k*CP..(k+1)*CP-1 hold h shifted by (K-1-k)*d
        (causal, per-sample, zero-filled at each sample's start)."""
        taps = []
        for k in range(K):
            s = (K - 1 - k) * d
            if s == 0:
                taps.append(h)
            else:
                pieces = []
                for b in range(B):
                    pieces.append(jnp.zeros((CP, s), jnp.float32))
                    pieces.append(h[:, b * T:(b + 1) * T - s])
                taps.append(jnp.concatenate(pieces, axis=1))
        return jnp.concatenate(taps, axis=0)

    def conv(h, w_ref, b_ref, blk, d):
        big = shift_taps(h, d)             # [K*CP, B*T]
        return jnp.dot(w_ref[blk], big, preferred_element_type=jnp.float32) + b_ref[blk]

    h = x_ref[...]                         # [CP, B*T]

    # ---- TCN blocks (residual projection is Identity: in_ch == out_ch) ----
    for blk, d in enumerate(dilations):
        res = h
        z = conv(h, cw1_ref, cb1_ref, blk, d)
        z = jnp.maximum(z * bn1s_ref[blk] + bn1b_ref[blk], 0.0)
        # dropout: identity at inference
        z = conv(z, cw2_ref, cb2_ref, blk, d)
        z = jnp.maximum(z * bn2s_ref[blk] + bn2b_ref[blk], 0.0)
        h = jnp.maximum(z + res, 0.0)

    # ---- final BatchNorm1d (eval, folded) ----
    h = h * bnfs_ref[...] + bnfb_ref[...]

    # ---- normalize_A, applied as an operator: L v = dinv * (relu(A) @ (dinv * v)) ----
    a = jnp.maximum(a_ref[...], 0.0)                              # [CP, CP]
    dinv = lax.rsqrt(jnp.sum(a, axis=1, keepdims=True) + 1e-10)   # [CP, 1]

    # ---- Chebynet: relu( sum_i (L^i @ h) @ W_i ), batch handled by block-diag W ----
    cur = h
    r = jnp.dot(cur, gwbd_ref[0], preferred_element_type=jnp.float32)
    for i in range(1, n_cheby):
        cur = dinv * jnp.dot(a, dinv * cur, preferred_element_type=jnp.float32)
        r = r + jnp.dot(cur, gwbd_ref[i], preferred_element_type=jnp.float32)
    r = jnp.maximum(r, 0.0)                # [CP, B*hid]

    # ---- fc1 over flattened (C, hid): per-electrode block-diag weights, both samples at once
    y = fc1b_ref[...]                      # [1, B*fc1_out]
    for c in range(n_real_ch):
        y = y + jnp.dot(r[c:c + 1, :], fc1u_ref[c], preferred_element_type=jnp.float32)
    y = jnp.maximum(y, 0.0)

    # ---- fc2 (block-diag over batch) ----
    out = jnp.dot(y, fc2bd_ref[...], preferred_element_type=jnp.float32) + fc2b_ref[...]
    out_ref[...] = out.astype(out_ref.dtype)   # [1, B*num_classes]


# ----------------------------------------------------------------------------- wrapper


def nov_model_forward(x, params):
    """Inference forward of NovModel.  x: [B, 1, C, T] -> [B, num_classes]."""
    conv1_w = params["conv1_w"]                     # [nb, C_out, C_in, K] (PyTorch layout)
    nb, c_out, c_in, K = conv1_w.shape
    assert c_out == c_in, "residual projection assumed Identity (in_ch == out_ch)"
    C = c_out
    n_cheby, T, hid = params["gc_w"].shape
    fc1_out = params["fc1_w"].shape[0]
    n_classes = params["fc2_w"].shape[0]
    B = x.shape[0]
    dilations = tuple(2 ** i for i in range(nb))
    assert (K - 1) * max(dilations) < T, "receptive field exceeds temporal size"
    CP = ((C + 7) // 8) * 8                          # channel dim padded to sublane multiple

    f32 = lambda a: jnp.asarray(a, jnp.float32)

    # activations: [B,1,C,T] -> [C, B*T] (batch in lanes), padded to [CP, B*T]
    x3 = f32(x).reshape(B, C, T)
    x2 = jnp.transpose(x3, (1, 0, 2)).reshape(C, B * T)
    x2 = jnp.pad(x2, ((0, CP - C), (0, 0)))

    def pack_conv(w):                                # [nb,O,I,K] -> [nb, CP, K*CP]
        w = jnp.pad(f32(w), ((0, 0), (0, CP - C), (0, CP - C), (0, 0)))
        w = jnp.transpose(w, (0, 1, 3, 2))           # [nb, O, K, I] -> cols = k*CP + i
        return w.reshape(nb, CP, K * CP)

    def pad_col3(v, fill=0.0):                       # [nb, C] -> [nb, CP, 1]
        v = jnp.pad(f32(v), ((0, 0), (0, CP - C)), constant_values=fill)
        return v[..., None]

    def pad_col2(v, fill=0.0):                       # [C] -> [CP, 1]
        v = jnp.pad(f32(v), (0, CP - C), constant_values=fill)
        return v[:, None]

    def bn_fold(prefix, eps):
        g, b = f32(params[prefix + "_g"]), f32(params[prefix + "_b"])
        m, v = f32(params[prefix + "_m"]), f32(params[prefix + "_v"])
        s = g * lax.rsqrt(v + eps)
        return s, b - m * s

    bn1_s, bn1_b = bn_fold("bn1", 1e-3)              # _TCNBlock BatchNorm eps = 0.001
    bn2_s, bn2_b = bn_fold("bn2", 1e-3)
    bnf_s, bnf_b = bn_fold("bnf", 1e-5)              # NovModel.BN1 default eps

    a_p = jnp.pad(f32(params["A"]), ((0, CP - C), (0, CP - C)))

    eye_b = jnp.eye(B, dtype=jnp.float32)
    kron_b = lambda w: jnp.kron(eye_b, w)            # block-diag over the batch

    gw_bd = jax.vmap(kron_b)(f32(params["gc_w"]))                       # [n_cheby, B*T, B*hid]

    # fc1 weight [fc1_out, C*hid] -> per-electrode [hid, fc1_out] blocks, kron'd over batch
    fc1_w3 = jnp.transpose(f32(params["fc1_w"]).reshape(fc1_out, C, hid), (1, 2, 0))
    fc1_u = jax.vmap(kron_b)(fc1_w3)                                    # [C, B*hid, B*fc1_out]
    fc1_b_t = jnp.tile(f32(params["fc1_b"]), B)[None, :]                # [1, B*fc1_out]

    fc2_bd = kron_b(f32(params["fc2_w"]).T)                             # [B*fc1_out, B*n_cls]
    fc2_b_t = jnp.tile(f32(params["fc2_b"]), B)[None, :]                # [1, B*n_cls]

    operands = (
        x2,
        pack_conv(params["conv1_w"]), pad_col3(params["conv1_b"]),
        pad_col3(bn1_s, 1.0), pad_col3(bn1_b),
        pack_conv(params["conv2_w"]), pad_col3(params["conv2_b"]),
        pad_col3(bn2_s, 1.0), pad_col3(bn2_b),
        pad_col2(bnf_s, 1.0), pad_col2(bnf_b),
        a_p, gw_bd,
        fc1_u, fc1_b_t, fc2_bd, fc2_b_t,
    )

    kernel = functools.partial(_nov_kernel, dilations=dilations, batch=B,
                               time=T, kernel_size=K, n_real_ch=C)
    out_flat = pl.pallas_call(
        kernel,
        out_shape=jax.ShapeDtypeStruct((1, B * n_classes), jnp.float32),
        # Single invocation (no grid): every operand is a full-array VMEM block.
        in_specs=[pl.BlockSpec(memory_space=pltpu.MemorySpace.VMEM)
                  for _ in operands],
        out_specs=pl.BlockSpec(memory_space=pltpu.MemorySpace.VMEM),
    )(*operands)
    return out_flat.reshape(B, n_classes)


# ----------------------------------------------------------------------------- reference


def _reference_forward(x, params):
    """Pure-JAX (XLA) reference of the same inference forward, for validation."""
    hi = lax.Precision.HIGHEST
    conv1_w = params["conv1_w"]
    nb, C, _, K = conv1_w.shape
    T = params["gc_w"].shape[1]
    B = x.shape[0]
    h = jnp.asarray(x, jnp.float32).reshape(B, C, T)

    def conv(h, w, b, d):
        y = lax.conv_general_dilated(
            h, w, window_strides=(1,), padding=[((K - 1) * d, 0)],
            rhs_dilation=(d,), dimension_numbers=("NCH", "OIH", "NCH"),
            precision=hi)
        return y + b[None, :, None]

    def bn(h, g, b, m, v, eps):
        return (g[None, :, None] * (h - m[None, :, None])
                / jnp.sqrt(v[None, :, None] + eps) + b[None, :, None])

    for blk in range(nb):
        d = 2 ** blk
        res = h
        z = jax.nn.relu(bn(conv(h, params["conv1_w"][blk], params["conv1_b"][blk], d),
                           params["bn1_g"][blk], params["bn1_b"][blk],
                           params["bn1_m"][blk], params["bn1_v"][blk], 1e-3))
        z = jax.nn.relu(bn(conv(z, params["conv2_w"][blk], params["conv2_b"][blk], d),
                           params["bn2_g"][blk], params["bn2_b"][blk],
                           params["bn2_m"][blk], params["bn2_v"][blk], 1e-3))
        h = jax.nn.relu(z + res)

    h = bn(h, params["bnf_g"], params["bnf_b"], params["bnf_m"], params["bnf_v"], 1e-5)

    a = jax.nn.relu(params["A"])
    dinv = 1.0 / jnp.sqrt(jnp.sum(a, axis=1) + 1e-10)
    L = dinv[:, None] * a * dinv[None, :]

    supports = [jnp.eye(C, dtype=jnp.float32), L]
    for _ in range(2, params["gc_w"].shape[0]):
        supports.append(jnp.dot(supports[-1], L, precision=hi))
    r = None
    for i, S in enumerate(supports):
        term = jnp.einsum("bct,th->bch",
                          jnp.einsum("ij,bjt->bit", S, h, precision=hi),
                          params["gc_w"][i], precision=hi)
        r = term if r is None else r + term
    r = jax.nn.relu(r)

    flat = r.reshape(B, -1)
    y = jax.nn.relu(jnp.dot(flat, params["fc1_w"].T, precision=hi) + params["fc1_b"])
    return jnp.dot(y, params["fc2_w"].T, precision=hi) + params["fc2_b"]


# ----------------------------------------------------------------------------- demo


if __name__ == "__main__":
    B, C, T = 2, 14, 128     # batch, electrodes (F1 = filt_tcn = 14), temporal_size
    NB, K = 4, 4             # layers_tcn, kernel_tcn
    HID, NCLS = 64, 2        # hid_channels_cheby, num_classes

    key = jax.random.PRNGKey(0)
    ks = jax.random.split(key, 24)
    n = lambda k, shp, s: jax.random.normal(k, shp, jnp.float32) * s

    params = dict(
        conv1_w=n(ks[0], (NB, C, C, K), 0.15), conv1_b=n(ks[1], (NB, C), 0.05),
        conv2_w=n(ks[2], (NB, C, C, K), 0.15), conv2_b=n(ks[3], (NB, C), 0.05),
        bn1_g=1.0 + n(ks[4], (NB, C), 0.1), bn1_b=n(ks[5], (NB, C), 0.1),
        bn1_m=n(ks[6], (NB, C), 0.1),
        bn1_v=0.5 + jax.random.uniform(ks[7], (NB, C), jnp.float32),
        bn2_g=1.0 + n(ks[8], (NB, C), 0.1), bn2_b=n(ks[9], (NB, C), 0.1),
        bn2_m=n(ks[10], (NB, C), 0.1),
        bn2_v=0.5 + jax.random.uniform(ks[11], (NB, C), jnp.float32),
        bnf_g=1.0 + n(ks[12], (C,), 0.1), bnf_b=n(ks[13], (C,), 0.1),
        bnf_m=n(ks[14], (C,), 0.1),
        bnf_v=0.5 + jax.random.uniform(ks[15], (C,), jnp.float32),
        A=jax.random.uniform(ks[16], (C, C), jnp.float32, minval=-0.3, maxval=1.0),
        gc_w=n(ks[17], (2, T, HID), 0.08),                  # layers_cheby = 2
        fc1_w=n(ks[18], (64, C * HID), 0.04), fc1_b=n(ks[19], (64,), 0.05),
        fc2_w=n(ks[20], (NCLS, 64), 0.1), fc2_b=n(ks[21], (NCLS,), 0.05),
    )
    x = jax.random.normal(ks[22], (B, 1, C, T), jnp.float32)

    out = jax.jit(nov_model_forward)(x, params)
    out = jax.block_until_ready(out)

    ref = _reference_forward(x, params)
    assert out.shape == (B, NCLS), out.shape
    # Tolerance covers MXU f32 multi-pass vs XLA HIGHEST accumulation-order differences.
    assert jnp.allclose(out, ref, atol=1e-2, rtol=1e-2), (out, ref)
    print("KERNEL_OK")
</pallas_src>

<mosaic_0001>
module attributes {stable_mosaic.version = 11 : i64} {
  func.func @_nov_kernel(%arg0: memref<16x256xf32, #tpu.memory_space<vmem>>, %arg1: memref<4x16x64xf32, #tpu.memory_space<vmem>>, %arg2: memref<4x16x1xf32, #tpu.memory_space<vmem>>, %arg3: memref<4x16x1xf32, #tpu.memory_space<vmem>>, %arg4: memref<4x16x1xf32, #tpu.memory_space<vmem>>, %arg5: memref<4x16x64xf32, #tpu.memory_space<vmem>>, %arg6: memref<4x16x1xf32, #tpu.memory_space<vmem>>, %arg7: memref<4x16x1xf32, #tpu.memory_space<vmem>>, %arg8: memref<4x16x1xf32, #tpu.memory_space<vmem>>, %arg9: memref<16x1xf32, #tpu.memory_space<vmem>>, %arg10: memref<16x1xf32, #tpu.memory_space<vmem>>, %arg11: memref<16x16xf32, #tpu.memory_space<vmem>>, %arg12: memref<2x256x128xf32, #tpu.memory_space<vmem>>, %arg13: memref<14x128x128xf32, #tpu.memory_space<vmem>>, %arg14: memref<1x128xf32, #tpu.memory_space<vmem>>, %arg15: memref<128x4xf32, #tpu.memory_space<vmem>>, %arg16: memref<1x4xf32, #tpu.memory_space<vmem>>, %arg17: memref<1x4xf32, #tpu.memory_space<vmem>>) attributes {dimension_semantics = [], scalar_prefetch = 0 : i64, scratch_operands = 0 : i64, tpu.core_type = #tpu.core_type<tc>} {
    %c0 = arith.constant 0 : index
    %c0_0 = arith.constant 0 : index
    %0 = vector.load %arg0[%c0, %c0_0] : memref<16x256xf32, #tpu.memory_space<vmem>>, vector<16x256xf32>
    %cst = arith.constant 0.000000e+00 : f32
    %1 = vector.broadcast %cst : f32 to vector<16x3xf32>
    %2 = vector.extract_strided_slice %0 {offsets = [0, 0], sizes = [16, 125], strides = [1, 1]} : vector<16x256xf32> to vector<16x125xf32>
    %cst_1 = arith.constant 0.000000e+00 : f32
    %3 = vector.broadcast %cst_1 : f32 to vector<16x3xf32>
    %4 = vector.extract_strided_slice %0 {offsets = [0, 128], sizes = [16, 125], strides = [1, 1]} : vector<16x256xf32> to vector<16x125xf32>
    %5 = tpu.concatenate %1, %2, %3, %4 in 1 : vector<16x3xf32>, vector<16x125xf32>, vector<16x3xf32>, vector<16x125xf32> -> vector<16x256xf32>
    %cst_2 = arith.constant 0.000000e+00 : f32
    %6 = vector.broadcast %cst_2 : f32 to vector<16x2xf32>
    %7 = vector.extract_strided_slice %0 {offsets = [0, 0], sizes = [16, 126], strides = [1, 1]} : vector<16x256xf32> to vector<16x126xf32>
    %cst_3 = arith.constant 0.000000e+00 : f32
    %8 = vector.broadcast %cst_3 : f32 to vector<16x2xf32>
    %9 = vector.extract_strided_slice %0 {offsets = [0, 128], sizes = [16, 126], strides = [1, 1]} : vector<16x256xf32> to vector<16x126xf32>
    %10 = tpu.concatenate %6, %7, %8, %9 in 1 : vector<16x2xf32>, vector<16x126xf32>, vector<16x2xf32>, vector<16x126xf32> -> vector<16x256xf32>
    %cst_4 = arith.constant 0.000000e+00 : f32
    %11 = vector.broadcast %cst_4 : f32 to vector<16x1xf32>
    %12 = vector.extract_strided_slice %0 {offsets = [0, 0], sizes = [16, 127], strides = [1, 1]} : vector<16x256xf32> to vector<16x127xf32>
    %cst_5 = arith.constant 0.000000e+00 : f32
    %13 = vector.broadcast %cst_5 : f32 to vector<16x1xf32>
    %14 = vector.extract_strided_slice %0 {offsets = [0, 128], sizes = [16, 127], strides = [1, 1]} : vector<16x256xf32> to vector<16x127xf32>
    %15 = tpu.concatenate %11, %12, %13, %14 in 1 : vector<16x1xf32>, vector<16x127xf32>, vector<16x1xf32>, vector<16x127xf32> -> vector<16x256xf32>
    %16 = tpu.concatenate %5, %10, %15, %0 in 0 : vector<16x256xf32>, vector<16x256xf32>, vector<16x256xf32>, vector<16x256xf32> -> vector<64x256xf32>
    %c0_6 = arith.constant 0 : index
    %c0_7 = arith.constant 0 : index
    %c0_8 = arith.constant 0 : index
    %17 = vector.load %arg1[%c0_6, %c0_7, %c0_8] : memref<4x16x64xf32, #tpu.memory_space<vmem>>, vector<1x16x64xf32>
    %18 = vector.shape_cast %17 : vector<1x16x64xf32> to vector<16x64xf32>
    %cst_9 = arith.constant dense<0.000000e+00> : vector<16x256xf32>
    %19 = tpu.matmul %18, %16, %cst_9 {dimension_numbers = #tpu.dot_dimension_numbers<[1], [0], [0], [1], [0, 0, 1, 1], [], []>} : vector<16x64xf32>, vector<64x256xf32>, vector<16x256xf32> -> vector<16x256xf32>
    %c0_10 = arith.constant 0 : index
    %c0_11 = arith.constant 0 : index
    %c0_12 = arith.constant 0 : index
    %20 = vector.load %arg2[%c0_10, %c0_11, %c0_12] : memref<4x16x1xf32, #tpu.memory_space<vmem>>, vector<1x16x1xf32>
    %21 = vector.shape_cast %20 : vector<1x16x1xf32> to vector<16x1xf32>
    %22 = vector.broadcast %21 : vector<16x1xf32> to vector<16x256xf32>
    %23 = arith.addf %19, %22 : vector<16x256xf32>
    %c0_13 = arith.constant 0 : index
    %c0_14 = arith.constant 0 : index
    %c0_15 = arith.constant 0 : index
    %24 = vector.load %arg3[%c0_13, %c0_14, %c0_15] : memref<4x16x1xf32, #tpu.memory_space<vmem>>, vector<1x16x1xf32>
    %25 = vector.shape_cast %24 : vector<1x16x1xf32> to vector<16x1xf32>
    %26 = vector.broadcast %25 : vector<16x1xf32> to vector<16x256xf32>
    %27 = arith.mulf %23, %26 : vector<16x256xf32>
    %c0_16 = arith.constant 0 : index
    %c0_17 = arith.constant 0 : index
    %c0_18 = arith.constant 0 : index
    %28 = vector.load %arg4[%c0_16, %c0_17, %c0_18] : memref<4x16x1xf32, #tpu.memory_space<vmem>>, vector<1x16x1xf32>
    %29 = vector.shape_cast %28 : vector<1x16x1xf32> to vector<16x1xf32>
    %30 = vector.broadcast %29 : vector<16x1xf32> to vector<16x256xf32>
    %31 = arith.addf %27, %30 : vector<16x256xf32>
    %cst_19 = arith.constant 0.000000e+00 : f32
    %32 = vector.broadcast %cst_19 : f32 to vector<16x256xf32>
    %33 = arith.maximumf %31, %32 : vector<16x256xf32>
    %cst_20 = arith.constant 0.000000e+00 : f32
    %34 = vector.broadcast %cst_20 : f32 to vector<16x3xf32>
    %35 = vector.extract_strided_slice %33 {offsets = [0, 0], sizes = [16, 125], strides = [1, 1]} : vector<16x256xf32> to vector<16x125xf32>
    %cst_21 = arith.constant 0.000000e+00 : f32
    %36 = vector.broadcast %cst_21 : f32 to vector<16x3xf32>
    %37 = vector.extract_strided_slice %33 {offsets = [0, 128], sizes = [16, 125], strides = [1, 1]} : vector<16x256xf32> to vector<16x125xf32>
    %38 = tpu.concatenate %34, %35, %36, %37 in 1 : vector<16x3xf32>, vector<16x125xf32>, vector<16x3xf32>, vector<16x125xf32> -> vector<16x256xf32>
    %cst_22 = arith.constant 0.000000e+00 : f32
    %39 = vector.broadcast %cst_22 : f32 to vector<16x2xf32>
    %40 = vector.extract_strided_slice %33 {offsets = [0, 0], sizes = [16, 126], strides = [1, 1]} : vector<16x256xf32> to vector<16x126xf32>
    %cst_23 = arith.constant 0.000000e+00 : f32
    %41 = vector.broadcast %cst_23 : f32 to vector<16x2xf32>
    %42 = vector.extract_strided_slice %33 {offsets = [0, 128], sizes = [16, 126], strides = [1, 1]} : vector<16x256xf32> to vector<16x126xf32>
    %43 = tpu.concatenate %39, %40, %41, %42 in 1 : vector<16x2xf32>, vector<16x126xf32>, vector<16x2xf32>, vector<16x126xf32> -> vector<16x256xf32>
    %cst_24 = arith.constant 0.000000e+00 : f32
    %44 = vector.broadcast %cst_24 : f32 to vector<16x1xf32>
    %45 = vector.extract_strided_slice %33 {offsets = [0, 0], sizes = [16, 127], strides = [1, 1]} : vector<16x256xf32> to vector<16x127xf32>
    %cst_25 = arith.constant 0.000000e+00 : f32
    %46 = vector.broadcast %cst_25 : f32 to vector<16x1xf32>
    %47 = vector.extract_strided_slice %33 {offsets = [0, 128], sizes = [16, 127], strides = [1, 1]} : vector<16x256xf32> to vector<16x127xf32>
    %48 = tpu.concatenate %44, %45, %46, %47 in 1 : vector<16x1xf32>, vector<16x127xf32>, vector<16x1xf32>, vector<16x127xf32> -> vector<16x256xf32>
    %49 = tpu.concatenate %38, %43, %48, %33 in 0 : vector<16x256xf32>, vector<16x256xf32>, vector<16x256xf32>, vector<16x256xf32> -> vector<64x256xf32>
    %c0_26 = arith.constant 0 : index
    %c0_27 = arith.constant 0 : index
    %c0_28 = arith.constant 0 : index
    %50 = vector.load %arg5[%c0_26, %c0_27, %c0_28] : memref<4x16x64xf32, #tpu.memory_space<vmem>>, vector<1x16x64xf32>
    %51 = vector.shape_cast %50 : vector<1x16x64xf32> to vector<16x64xf32>
    %cst_29 = arith.constant dense<0.000000e+00> : vector<16x256xf32>
    %52 = tpu.matmul %51, %49, %cst_29 {dimension_numbers = #tpu.dot_dimension_numbers<[1], [0], [0], [1], [0, 0, 1, 1], [], []>} : vector<16x64xf32>, vector<64x256xf32>, vector<16x256xf32> -> vector<16x256xf32>
    %c0_30 = arith.constant 0 : index
    %c0_31 = arith.constant 0 : index
    %c0_32 = arith.constant 0 : index
    %53 = vector.load %arg6[%c0_30, %c0_31, %c0_32] : memref<4x16x1xf32, #tpu.memory_space<vmem>>, vector<1x16x1xf32>
    %54 = vector.shape_cast %53 : vector<1x16x1xf32> to vector<16x1xf32>
    %55 = vector.broadcast %54 : vector<16x1xf32> to vector<16x256xf32>
    %56 = arith.addf %52, %55 : vector<16x256xf32>
    %c0_33 = arith.constant 0 : index
    %c0_34 = arith.constant 0 : index
    %c0_35 = arith.constant 0 : index
    %57 = vector.load %arg7[%c0_33, %c0_34, %c0_35] : memref<4x16x1xf32, #tpu.memory_space<vmem>>, vector<1x16x1xf32>
    %58 = vector.shape_cast %57 : vector<1x16x1xf32> to vector<16x1xf32>
    %59 = vector.broadcast %58 : vector<16x1xf32> to vector<16x256xf32>
    %60 = arith.mulf %56, %59 : vector<16x256xf32>
    %c0_36 = arith.constant 0 : index
    %c0_37 = arith.constant 0 : index
    %c0_38 = arith.constant 0 : index
    %61 = vector.load %arg8[%c0_36, %c0_37, %c0_38] : memref<4x16x1xf32, #tpu.memory_space<vmem>>, vector<1x16x1xf32>
    %62 = vector.shape_cast %61 : vector<1x16x1xf32> to vector<16x1xf32>
    %63 = vector.broadcast %62 : vector<16x1xf32> to vector<16x256xf32>
    %64 = arith.addf %60, %63 : vector<16x256xf32>
    %cst_39 = arith.constant 0.000000e+00 : f32
    %65 = vector.broadcast %cst_39 : f32 to vector<16x256xf32>
    %66 = arith.maximumf %64, %65 : vector<16x256xf32>
    %67 = arith.addf %66, %0 : vector<16x256xf32>
    %cst_40 = arith.constant 0.000000e+00 : f32
    %68 = vector.broadcast %cst_40 : f32 to vector<16x256xf32>
    %69 = arith.maximumf %67, %68 : vector<16x256xf32>
    %cst_41 = arith.constant 0.000000e+00 : f32
    %70 = vector.broadcast %cst_41 : f32 to vector<16x6xf32>
    %71 = vector.extract_strided_slice %69 {offsets = [0, 0], sizes = [16, 122], strides = [1, 1]} : vector<16x256xf32> to vector<16x122xf32>
    %cst_42 = arith.constant 0.000000e+00 : f32
    %72 = vector.broadcast %cst_42 : f32 to vector<16x6xf32>
    %73 = vector.extract_strided_slice %69 {offsets = [0, 128], sizes = [16, 122], strides = [1, 1]} : vector<16x256xf32> to vector<16x122xf32>
    %74 = tpu.concatenate %70, %71, %72, %73 in 1 : vector<16x6xf32>, vector<16x122xf32>, vector<16x6xf32>, vector<16x122xf32> -> vector<16x256xf32>
    %cst_43 = arith.constant 0.000000e+00 : f32
    %75 = vector.broadcast %cst_43 : f32 to vector<16x4xf32>
    %76 = vector.extract_strided_slice %69 {offsets = [0, 0], sizes = [16, 124], strides = [1, 1]} : vector<16x256xf32> to vector<16x124xf32>
    %cst_44 = arith.constant 0.000000e+00 : f32
    %77 = vector.broadcast %cst_44 : f32 to vector<16x4xf32>
    %78 = vector.extract_strided_slice %69 {offsets = [0, 128], sizes = [16, 124], strides = [1, 1]} : vector<16x256xf32> to vector<16x124xf32>
    %79 = tpu.concatenate %75, %76, %77, %78 in 1 : vector<16x4xf32>, vector<16x124xf32>, vector<16x4xf32>, vector<16x124xf32> -> vector<16x256xf32>
    %cst_45 = arith.constant 0.000000e+00 : f32
    %80 = vector.broadcast %cst_45 : f32 to vector<16x2xf32>
    %81 = vector.extract_strided_slice %69 {offsets = [0, 0], sizes = [16, 126], strides = [1, 1]} : vector<16x256xf32> to vector<16x126xf32>
    %cst_46 = arith.constant 0.000000e+00 : f32
    %82 = vector.broadcast %cst_46 : f32 to vector<16x2xf32>
    %83 = vector.extract_strided_slice %69 {offsets = [0, 128], sizes = [16, 126], strides = [1, 1]} : vector<16x256xf32> to vector<16x126xf32>
    %84 = tpu.concatenate %80, %81, %82, %83 in 1 : vector<16x2xf32>, vector<16x126xf32>, vector<16x2xf32>, vector<16x126xf32> -> vector<16x256xf32>
    %85 = tpu.concatenate %74, %79, %84, %69 in 0 : vector<16x256xf32>, vector<16x256xf32>, vector<16x256xf32>, vector<16x256xf32> -> vector<64x256xf32>
    %c1 = arith.constant 1 : index
    %c0_47 = arith.constant 0 : index
    %c0_48 = arith.constant 0 : index
    %86 = vector.load %arg1[%c1, %c0_47, %c0_48] : memref<4x16x64xf32, #tpu.memory_space<vmem>>, vector<1x16x64xf32>
    %87 = vector.shape_cast %86 : vector<1x16x64xf32> to vector<16x64xf32>
    %cst_49 = arith.constant dense<0.000000e+00> : vector<16x256xf32>
    %88 = tpu.matmul %87, %85, %cst_49 {dimension_numbers = #tpu.dot_dimension_numbers<[1], [0], [0], [1], [0, 0, 1, 1], [], []>} : vector<16x64xf32>, vector<64x256xf32>, vector<16x256xf32> -> vector<16x256xf32>
    %c1_50 = arith.constant 1 : index
    %c0_51 = arith.constant 0 : index
    %c0_52 = arith.constant 0 : index
    %89 = vector.load %arg2[%c1_50, %c0_51, %c0_52] : memref<4x16x1xf32, #tpu.memory_space<vmem>>, vector<1x16x1xf32>
    %90 = vector.shape_cast %89 : vector<1x16x1xf32> to vector<16x1xf32>
    %91 = vector.broadcast %90 : vector<16x1xf32> to vector<16x256xf32>
    %92 = arith.addf %88, %91 : vector<16x256xf32>
    %c1_53 = arith.constant 1 : index
    %c0_54 = arith.constant 0 : index
    %c0_55 = arith.constant 0 : index
    %93 = vector.load %arg3[%c1_53, %c0_54, %c0_55] : memref<4x16x1xf32, #tpu.memory_space<vmem>>, vector<1x16x1xf32>
    %94 = vector.shape_cast %93 : vector<1x16x1xf32> to vector<16x1xf32>
    %95 = vector.broadcast %94 : vector<16x1xf32> to vector<16x256xf32>
    %96 = arith.mulf %92, %95 : vector<16x256xf32>
    %c1_56 = arith.constant 1 : index
    %c0_57 = arith.constant 0 : index
    %c0_58 = arith.constant 0 : index
    %97 = vector.load %arg4[%c1_56, %c0_57, %c0_58] : memref<4x16x1xf32, #tpu.memory_space<vmem>>, vector<1x16x1xf32>
    %98 = vector.shape_cast %97 : vector<1x16x1xf32> to vector<16x1xf32>
    %99 = vector.broadcast %98 : vector<16x1xf32> to vector<16x256xf32>
    %100 = arith.addf %96, %99 : vector<16x256xf32>
    %cst_59 = arith.constant 0.000000e+00 : f32
    %101 = vector.broadcast %cst_59 : f32 to vector<16x256xf32>
    %102 = arith.maximumf %100, %101 : vector<16x256xf32>
    %cst_60 = arith.constant 0.000000e+00 : f32
    %103 = vector.broadcast %cst_60 : f32 to vector<16x6xf32>
    %104 = vector.extract_strided_slice %102 {offsets = [0, 0], sizes = [16, 122], strides = [1, 1]} : vector<16x256xf32> to vector<16x122xf32>
    %cst_61 = arith.constant 0.000000e+00 : f32
    %105 = vector.broadcast %cst_61 : f32 to vector<16x6xf32>
    %106 = vector.extract_strided_slice %102 {offsets = [0, 128], sizes = [16, 122], strides = [1, 1]} : vector<16x256xf32> to vector<16x122xf32>
    %107 = tpu.concatenate %103, %104, %105, %106 in 1 : vector<16x6xf32>, vector<16x122xf32>, vector<16x6xf32>, vector<16x122xf32> -> vector<16x256xf32>
    %cst_62 = arith.constant 0.000000e+00 : f32
    %108 = vector.broadcast %cst_62 : f32 to vector<16x4xf32>
    %109 = vector.extract_strided_slice %102 {offsets = [0, 0], sizes = [16, 124], strides = [1, 1]} : vector<16x256xf32> to vector<16x124xf32>
    %cst_63 = arith.constant 0.000000e+00 : f32
    %110 = vector.broadcast %cst_63 : f32 to vector<16x4xf32>
    %111 = vector.extract_strided_slice %102 {offsets = [0, 128], sizes = [16, 124], strides = [1, 1]} : vector<16x256xf32> to vector<16x124xf32>
    %112 = tpu.concatenate %108, %109, %110, %111 in 1 : vector<16x4xf32>, vector<16x124xf32>, vector<16x4xf32>, vector<16x124xf32> -> vector<16x256xf32>
    %cst_64 = arith.constant 0.000000e+00 : f32
    %113 = vector.broadcast %cst_64 : f32 to vector<16x2xf32>
    %114 = vector.extract_strided_slice %102 {offsets = [0, 0], sizes = [16, 126], strides = [1, 1]} : vector<16x256xf32> to vector<16x126xf32>
    %cst_65 = arith.constant 0.000000e+00 : f32
    %115 = vector.broadcast %cst_65 : f32 to vector<16x2xf32>
    %116 = vector.extract_strided_slice %102 {offsets = [0, 128], sizes = [16, 126], strides = [1, 1]} : vector<16x256xf32> to vector<16x126xf32>
    %117 = tpu.concatenate %113, %114, %115, %116 in 1 : vector<16x2xf32>, vector<16x126xf32>, vector<16x2xf32>, vector<16x126xf32> -> vector<16x256xf32>
    %118 = tpu.concatenate %107, %112, %117, %102 in 0 : vector<16x256xf32>, vector<16x256xf32>, vector<16x256xf32>, vector<16x256xf32> -> vector<64x256xf32>
    %c1_66 = arith.constant 1 : index
    %c0_67 = arith.constant 0 : index
    %c0_68 = arith.constant 0 : index
    %119 = vector.load %arg5[%c1_66, %c0_67, %c0_68] : memref<4x16x64xf32, #tpu.memory_space<vmem>>, vector<1x16x64xf32>
    %120 = vector.shape_cast %119 : vector<1x16x64xf32> to vector<16x64xf32>
    %cst_69 = arith.constant dense<0.000000e+00> : vector<16x256xf32>
    %121 = tpu.matmul %120, %118, %cst_69 {dimension_numbers = #tpu.dot_dimension_numbers<[1], [0], [0], [1], [0, 0, 1, 1], [], []>} : vector<16x64xf32>, vector<64x256xf32>, vector<16x256xf32> -> vector<16x256xf32>
    %c1_70 = arith.constant 1 : index
    %c0_71 = arith.constant 0 : index
    %c0_72 = arith.constant 0 : index
    %122 = vector.load %arg6[%c1_70, %c0_71, %c0_72] : memref<4x16x1xf32, #tpu.memory_space<vmem>>, vector<1x16x1xf32>
    %123 = vector.shape_cast %122 : vector<1x16x1xf32> to vector<16x1xf32>
    %124 = vector.broadcast %123 : vector<16x1xf32> to vector<16x256xf32>
    %125 = arith.addf %121, %124 : vector<16x256xf32>
    %c1_73 = arith.constant 1 : index
    %c0_74 = arith.constant 0 : index
    %c0_75 = arith.constant 0 : index
    %126 = vector.load %arg7[%c1_73, %c0_74, %c0_75] : memref<4x16x1xf32, #tpu.memory_space<vmem>>, vector<1x16x1xf32>
    %127 = vector.shape_cast %126 : vector<1x16x1xf32> to vector<16x1xf32>
    %128 = vector.broadcast %127 : vector<16x1xf32> to vector<16x256xf32>
    %129 = arith.mulf %125, %128 : vector<16x256xf32>
    %c1_76 = arith.constant 1 : index
    %c0_77 = arith.constant 0 : index
    %c0_78 = arith.constant 0 : index
    %130 = vector.load %arg8[%c1_76, %c0_77, %c0_78] : memref<4x16x1xf32, #tpu.memory_space<vmem>>, vector<1x16x1xf32>
    %131 = vector.shape_cast %130 : vector<1x16x1xf32> to vector<16x1xf32>
    %132 = vector.broadcast %131 : vector<16x1xf32> to vector<16x256xf32>
    %133 = arith.addf %129, %132 : vector<16x256xf32>
    %cst_79 = arith.constant 0.000000e+00 : f32
    %134 = vector.broadcast %cst_79 : f32 to vector<16x256xf32>
    %135 = arith.maximumf %133, %134 : vector<16x256xf32>
    %136 = arith.addf %135, %69 : vector<16x256xf32>
    %cst_80 = arith.constant 0.000000e+00 : f32
    %137 = vector.broadcast %cst_80 : f32 to vector<16x256xf32>
    %138 = arith.maximumf %136, %137 : vector<16x256xf32>
    %cst_81 = arith.constant 0.000000e+00 : f32
    %139 = vector.broadcast %cst_81 : f32 to vector<16x12xf32>
    %140 = vector.extract_strided_slice %138 {offsets = [0, 0], sizes = [16, 116], strides = [1, 1]} : vector<16x256xf32> to vector<16x116xf32>
    %cst_82 = arith.constant 0.000000e+00 : f32
    %141 = vector.broadcast %cst_82 : f32 to vector<16x12xf32>
    %142 = vector.extract_strided_slice %138 {offsets = [0, 128], sizes = [16, 116], strides = [1, 1]} : vector<16x256xf32> to vector<16x116xf32>
    %143 = tpu.concatenate %139, %140, %141, %142 in 1 : vector<16x12xf32>, vector<16x116xf32>, vector<16x12xf32>, vector<16x116xf32> -> vector<16x256xf32>
    %cst_83 = arith.constant 0.000000e+00 : f32
    %144 = vector.broadcast %cst_83 : f32 to vector<16x8xf32>
    %145 = vector.extract_strided_slice %138 {offsets = [0, 0], sizes = [16, 120], strides = [1, 1]} : vector<16x256xf32> to vector<16x120xf32>
    %cst_84 = arith.constant 0.000000e+00 : f32
    %146 = vector.broadcast %cst_84 : f32 to vector<16x8xf32>
    %147 = vector.extract_strided_slice %138 {offsets = [0, 128], sizes = [16, 120], strides = [1, 1]} : vector<16x256xf32> to vector<16x120xf32>
    %148 = tpu.concatenate %144, %145, %146, %147 in 1 : vector<16x8xf32>, vector<16x120xf32>, vector<16x8xf32>, vector<16x120xf32> -> vector<16x256xf32>
    %cst_85 = arith.constant 0.000000e+00 : f32
    %149 = vector.broadcast %cst_85 : f32 to vector<16x4xf32>
    %150 = vector.extract_strided_slice %138 {offsets = [0, 0], sizes = [16, 124], strides = [1, 1]} : vector<16x256xf32> to vector<16x124xf32>
    %cst_86 = arith.constant 0.000000e+00 : f32
    %151 = vector.broadcast %cst_86 : f32 to vector<16x4xf32>
    %152 = vector.extract_strided_slice %138 {offsets = [0, 128], sizes = [16, 124], strides = [1, 1]} : vector<16x256xf32> to vector<16x124xf32>
    %153 = tpu.concatenate %149, %150, %151, %152 in 1 : vector<16x4xf32>, vector<16x124xf32>, vector<16x4xf32>, vector<16x124xf32> -> vector<16x256xf32>
    %154 = tpu.concatenate %143, %148, %153, %138 in 0 : vector<16x256xf32>, vector<16x256xf32>, vector<16x256xf32>, vector<16x256xf32> -> vector<64x256xf32>
    %c2 = arith.constant 2 : index
    %c0_87 = arith.constant 0 : index
    %c0_88 = arith.constant 0 : index
    %155 = vector.load %arg1[%c2, %c0_87, %c0_88] : memref<4x16x64xf32, #tpu.memory_space<vmem>>, vector<1x16x64xf32>
    %156 = vector.shape_cast %155 : vector<1x16x64xf32> to vector<16x64xf32>
    %cst_89 = arith.constant dense<0.000000e+00> : vector<16x256xf32>
    %157 = tpu.matmul %156, %154, %cst_89 {dimension_numbers = #tpu.dot_dimension_numbers<[1], [0], [0], [1], [0, 0, 1, 1], [], []>} : vector<16x64xf32>, vector<64x256xf32>, vector<16x256xf32> -> vector<16x256xf32>
    %c2_90 = arith.constant 2 : index
    %c0_91 = arith.constant 0 : index
    %c0_92 = arith.constant 0 : index
    %158 = vector.load %arg2[%c2_90, %c0_91, %c0_92] : memref<4x16x1xf32, #tpu.memory_space<vmem>>, vector<1x16x1xf32>
    %159 = vector.shape_cast %158 : vector<1x16x1xf32> to vector<16x1xf32>
    %160 = vector.broadcast %159 : vector<16x1xf32> to vector<16x256xf32>
    %161 = arith.addf %157, %160 : vector<16x256xf32>
    %c2_93 = arith.constant 2 : index
    %c0_94 = arith.constant 0 : index
    %c0_95 = arith.constant 0 : index
    %162 = vector.load %arg3[%c2_93, %c0_94, %c0_95] : memref<4x16x1xf32, #tpu.memory_space<vmem>>, vector<1x16x1xf32>
    %163 = vector.shape_cast %162 : vector<1x16x1xf32> to vector<16x1xf32>
    %164 = vector.broadcast %163 : vector<16x1xf32> to vector<16x256xf32>
    %165 = arith.mulf %161, %164 : vector<16x256xf32>
    %c2_96 = arith.constant 2 : index
    %c0_97 = arith.constant 0 : index
    %c0_98 = arith.constant 0 : index
    %166 = vector.load %arg4[%c2_96, %c0_97, %c0_98] : memref<4x16x1xf32, #tpu.memory_space<vmem>>, vector<1x16x1xf32>
    %167 = vector.shape_cast %166 : vector<1x16x1xf32> to vector<16x1xf32>
    %168 = vector.broadcast %167 : vector<16x1xf32> to vector<16x256xf32>
    %169 = arith.addf %165, %168 : vector<16x256xf32>
    %cst_99 = arith.constant 0.000000e+00 : f32
    %170 = vector.broadcast %cst_99 : f32 to vector<16x256xf32>
    %171 = arith.maximumf %169, %170 : vector<16x256xf32>
    %cst_100 = arith.constant 0.000000e+00 : f32
    %172 = vector.broadcast %cst_100 : f32 to vector<16x12xf32>
    %173 = vector.extract_strided_slice %171 {offsets = [0, 0], sizes = [16, 116], strides = [1, 1]} : vector<16x256xf32> to vector<16x116xf32>
    %cst_101 = arith.constant 0.000000e+00 : f32
    %174 = vector.broadcast %cst_101 : f32 to vector<16x12xf32>
    %175 = vector.extract_strided_slice %171 {offsets = [0, 128], sizes = [16, 116], strides = [1, 1]} : vector<16x256xf32> to vector<16x116xf32>
    %176 = tpu.concatenate %172, %173, %174, %175 in 1 : vector<16x12xf32>, vector<16x116xf32>, vector<16x12xf32>, vector<16x116xf32> -> vector<16x256xf32>
    %cst_102 = arith.constant 0.000000e+00 : f32
    %177 = vector.broadcast %cst_102 : f32 to vector<16x8xf32>
    %178 = vector.extract_strided_slice %171 {offsets = [0, 0], sizes = [16, 120], strides = [1, 1]} : vector<16x256xf32> to vector<16x120xf32>
    %cst_103 = arith.constant 0.000000e+00 : f32
    %179 = vector.broadcast %cst_103 : f32 to vector<16x8xf32>
    %180 = vector.extract_strided_slice %171 {offsets = [0, 128], sizes = [16, 120], strides = [1, 1]} : vector<16x256xf32> to vector<16x120xf32>
    %181 = tpu.concatenate %177, %178, %179, %180 in 1 : vector<16x8xf32>, vector<16x120xf32>, vector<16x8xf32>, vector<16x120xf32> -> vector<16x256xf32>
    %cst_104 = arith.constant 0.000000e+00 : f32
    %182 = vector.broadcast %cst_104 : f32 to vector<16x4xf32>
    %183 = vector.extract_strided_slice %171 {offsets = [0, 0], sizes = [16, 124], strides = [1, 1]} : vector<16x256xf32> to vector<16x124xf32>
    %cst_105 = arith.constant 0.000000e+00 : f32
    %184 = vector.broadcast %cst_105 : f32 to vector<16x4xf32>
    %185 = vector.extract_strided_slice %171 {offsets = [0, 128], sizes = [16, 124], strides = [1, 1]} : vector<16x256xf32> to vector<16x124xf32>
    %186 = tpu.concatenate %182, %183, %184, %185 in 1 : vector<16x4xf32>, vector<16x124xf32>, vector<16x4xf32>, vector<16x124xf32> -> vector<16x256xf32>
    %187 = tpu.concatenate %176, %181, %186, %171 in 0 : vector<16x256xf32>, vector<16x256xf32>, vector<16x256xf32>, vector<16x256xf32> -> vector<64x256xf32>
    %c2_106 = arith.constant 2 : index
    %c0_107 = arith.constant 0 : index
    %c0_108 = arith.constant 0 : index
    %188 = vector.load %arg5[%c2_106, %c0_107, %c0_108] : memref<4x16x64xf32, #tpu.memory_space<vmem>>, vector<1x16x64xf32>
    %189 = vector.shape_cast %188 : vector<1x16x64xf32> to vector<16x64xf32>
    %cst_109 = arith.constant dense<0.000000e+00> : vector<16x256xf32>
    %190 = tpu.matmul %189, %187, %cst_109 {dimension_numbers = #tpu.dot_dimension_numbers<[1], [0], [0], [1], [0, 0, 1, 1], [], []>} : vector<16x64xf32>, vector<64x256xf32>, vector<16x256xf32> -> vector<16x256xf32>
    %c2_110 = arith.constant 2 : index
    %c0_111 = arith.constant 0 : index
    %c0_112 = arith.constant 0 : index
    %191 = vector.load %arg6[%c2_110, %c0_111, %c0_112] : memref<4x16x1xf32, #tpu.memory_space<vmem>>, vector<1x16x1xf32>
    %192 = vector.shape_cast %191 : vector<1x16x1xf32> to vector<16x1xf32>
    %193 = vector.broadcast %192 : vector<16x1xf32> to vector<16x256xf32>
    %194 = arith.addf %190, %193 : vector<16x256xf32>
    %c2_113 = arith.constant 2 : index
    %c0_114 = arith.constant 0 : index
    %c0_115 = arith.constant 0 : index
    %195 = vector.load %arg7[%c2_113, %c0_114, %c0_115] : memref<4x16x1xf32, #tpu.memory_space<vmem>>, vector<1x16x1xf32>
    %196 = vector.shape_cast %195 : vector<1x16x1xf32> to vector<16x1xf32>
    %197 = vector.broadcast %196 : vector<16x1xf32> to vector<16x256xf32>
    %198 = arith.mulf %194, %197 : vector<16x256xf32>
    %c2_116 = arith.constant 2 : index
    %c0_117 = arith.constant 0 : index
    %c0_118 = arith.constant 0 : index
    %199 = vector.load %arg8[%c2_116, %c0_117, %c0_118] : memref<4x16x1xf32, #tpu.memory_space<vmem>>, vector<1x16x1xf32>
    %200 = vector.shape_cast %199 : vector<1x16x1xf32> to vector<16x1xf32>
    %201 = vector.broadcast %200 : vector<16x1xf32> to vector<16x256xf32>
    %202 = arith.addf %198, %201 : vector<16x256xf32>
    %cst_119 = arith.constant 0.000000e+00 : f32
    %203 = vector.broadcast %cst_119 : f32 to vector<16x256xf32>
    %204 = arith.maximumf %202, %203 : vector<16x256xf32>
    %205 = arith.addf %204, %138 : vector<16x256xf32>
    %cst_120 = arith.constant 0.000000e+00 : f32
    %206 = vector.broadcast %cst_120 : f32 to vector<16x256xf32>
    %207 = arith.maximumf %205, %206 : vector<16x256xf32>
    %cst_121 = arith.constant 0.000000e+00 : f32
    %208 = vector.broadcast %cst_121 : f32 to vector<16x24xf32>
    %209 = vector.extract_strided_slice %207 {offsets = [0, 0], sizes = [16, 104], strides = [1, 1]} : vector<16x256xf32> to vector<16x104xf32>
    %cst_122 = arith.constant 0.000000e+00 : f32
    %210 = vector.broadcast %cst_122 : f32 to vector<16x24xf32>
    %211 = vector.extract_strided_slice %207 {offsets = [0, 128], sizes = [16, 104], strides = [1, 1]} : vector<16x256xf32> to vector<16x104xf32>
    %212 = tpu.concatenate %208, %209, %210, %211 in 1 : vector<16x24xf32>, vector<16x104xf32>, vector<16x24xf32>, vector<16x104xf32> -> vector<16x256xf32>
    %cst_123 = arith.constant 0.000000e+00 : f32
    %213 = vector.broadcast %cst_123 : f32 to vector<16x16xf32>
    %214 = vector.extract_strided_slice %207 {offsets = [0, 0], sizes = [16, 112], strides = [1, 1]} : vector<16x256xf32> to vector<16x112xf32>
    %cst_124 = arith.constant 0.000000e+00 : f32
    %215 = vector.broadcast %cst_124 : f32 to vector<16x16xf32>
    %216 = vector.extract_strided_slice %207 {offsets = [0, 128], sizes = [16, 112], strides = [1, 1]} : vector<16x256xf32> to vector<16x112xf32>
    %217 = tpu.concatenate %213, %214, %215, %216 in 1 : vector<16x16xf32>, vector<16x112xf32>, vector<16x16xf32>, vector<16x112xf32> -> vector<16x256xf32>
    %cst_125 = arith.constant 0.000000e+00 : f32
    %218 = vector.broadcast %cst_125 : f32 to vector<16x8xf32>
    %219 = vector.extract_strided_slice %207 {offsets = [0, 0], sizes = [16, 120], strides = [1, 1]} : vector<16x256xf32> to vector<16x120xf32>
    %cst_126 = arith.constant 0.000000e+00 : f32
    %220 = vector.broadcast %cst_126 : f32 to vector<16x8xf32>
    %221 = vector.extract_strided_slice %207 {offsets = [0, 128], sizes = [16, 120], strides = [1, 1]} : vector<16x256xf32> to vector<16x120xf32>
    %222 = tpu.concatenate %218, %219, %220, %221 in 1 : vector<16x8xf32>, vector<16x120xf32>, vector<16x8xf32>, vector<16x120xf32> -> vector<16x256xf32>
    %223 = tpu.concatenate %212, %217, %222, %207 in 0 : vector<16x256xf32>, vector<16x256xf32>, vector<16x256xf32>, vector<16x256xf32> -> vector<64x256xf32>
    %c3 = arith.constant 3 : index
    %c0_127 = arith.constant 0 : index
    %c0_128 = arith.constant 0 : index
    %224 = vector.load %arg1[%c3, %c0_127, %c0_128] : memref<4x16x64xf32, #tpu.memory_space<vmem>>, vector<1x16x64xf32>
    %225 = vector.shape_cast %224 : vector<1x16x64xf32> to vector<16x64xf32>
    %cst_129 = arith.constant dense<0.000000e+00> : vector<16x256xf32>
    %226 = tpu.matmul %225, %223, %cst_129 {dimension_numbers = #tpu.dot_dimension_numbers<[1], [0], [0], [1], [0, 0, 1, 1], [], []>} : vector<16x64xf32>, vector<64x256xf32>, vector<16x256xf32> -> vector<16x256xf32>
    %c3_130 = arith.constant 3 : index
    %c0_131 = arith.constant 0 : index
    %c0_132 = arith.constant 0 : index
    %227 = vector.load %arg2[%c3_130, %c0_131, %c0_132] : memref<4x16x1xf32, #tpu.memory_space<vmem>>, vector<1x16x1xf32>
    %228 = vector.shape_cast %227 : vector<1x16x1xf32> to vector<16x1xf32>
    %229 = vector.broadcast %228 : vector<16x1xf32> to vector<16x256xf32>
    %230 = arith.addf %226, %229 : vector<16x256xf32>
    %c3_133 = arith.constant 3 : index
    %c0_134 = arith.constant 0 : index
    %c0_135 = arith.constant 0 : index
    %231 = vector.load %arg3[%c3_133, %c0_134, %c0_135] : memref<4x16x1xf32, #tpu.memory_space<vmem>>, vector<1x16x1xf32>
    %232 = vector.shape_cast %231 : vector<1x16x1xf32> to vector<16x1xf32>
    %233 = vector.broadcast %232 : vector<16x1xf32> to vector<16x256xf32>
    %234 = arith.mulf %230, %233 : vector<16x256xf32>
    %c3_136 = arith.constant 3 : index
    %c0_137 = arith.constant 0 : index
    %c0_138 = arith.constant 0 : index
    %235 = vector.load %arg4[%c3_136, %c0_137, %c0_138] : memref<4x16x1xf32, #tpu.memory_space<vmem>>, vector<1x16x1xf32>
    %236 = vector.shape_cast %235 : vector<1x16x1xf32> to vector<16x1xf32>
    %237 = vector.broadcast %236 : vector<16x1xf32> to vector<16x256xf32>
    %238 = arith.addf %234, %237 : vector<16x256xf32>
    %cst_139 = arith.constant 0.000000e+00 : f32
    %239 = vector.broadcast %cst_139 : f32 to vector<16x256xf32>
    %240 = arith.maximumf %238, %239 : vector<16x256xf32>
    %cst_140 = arith.constant 0.000000e+00 : f32
    %241 = vector.broadcast %cst_140 : f32 to vector<16x24xf32>
    %242 = vector.extract_strided_slice %240 {offsets = [0, 0], sizes = [16, 104], strides = [1, 1]} : vector<16x256xf32> to vector<16x104xf32>
    %cst_141 = arith.constant 0.000000e+00 : f32
    %243 = vector.broadcast %cst_141 : f32 to vector<16x24xf32>
    %244 = vector.extract_strided_slice %240 {offsets = [0, 128], sizes = [16, 104], strides = [1, 1]} : vector<16x256xf32> to vector<16x104xf32>
    %245 = tpu.concatenate %241, %242, %243, %244 in 1 : vector<16x24xf32>, vector<16x104xf32>, vector<16x24xf32>, vector<16x104xf32> -> vector<16x256xf32>
    %cst_142 = arith.constant 0.000000e+00 : f32
    %246 = vector.broadcast %cst_142 : f32 to vector<16x16xf32>
    %247 = vector.extract_strided_slice %240 {offsets = [0, 0], sizes = [16, 112], strides = [1, 1]} : vector<16x256xf32> to vector<16x112xf32>
    %cst_143 = arith.constant 0.000000e+00 : f32
    %248 = vector.broadcast %cst_143 : f32 to vector<16x16xf32>
    %249 = vector.extract_strided_slice %240 {offsets = [0, 128], sizes = [16, 112], strides = [1, 1]} : vector<16x256xf32> to vector<16x112xf32>
    %250 = tpu.concatenate %246, %247, %248, %249 in 1 : vector<16x16xf32>, vector<16x112xf32>, vector<16x16xf32>, vector<16x112xf32> -> vector<16x256xf32>
    %cst_144 = arith.constant 0.000000e+00 : f32
    %251 = vector.broadcast %cst_144 : f32 to vector<16x8xf32>
    %252 = vector.extract_strided_slice %240 {offsets = [0, 0], sizes = [16, 120], strides = [1, 1]} : vector<16x256xf32> to vector<16x120xf32>
    %cst_145 = arith.constant 0.000000e+00 : f32
    %253 = vector.broadcast %cst_145 : f32 to vector<16x8xf32>
    %254 = vector.extract_strided_slice %240 {offsets = [0, 128], sizes = [16, 120], strides = [1, 1]} : vector<16x256xf32> to vector<16x120xf32>
    %255 = tpu.concatenate %251, %252, %253, %254 in 1 : vector<16x8xf32>, vector<16x120xf32>, vector<16x8xf32>, vector<16x120xf32> -> vector<16x256xf32>
    %256 = tpu.concatenate %245, %250, %255, %240 in 0 : vector<16x256xf32>, vector<16x256xf32>, vector<16x256xf32>, vector<16x256xf32> -> vector<64x256xf32>
    %c3_146 = arith.constant 3 : index
    %c0_147 = arith.constant 0 : index
    %c0_148 = arith.constant 0 : index
    %257 = vector.load %arg5[%c3_146, %c0_147, %c0_148] : memref<4x16x64xf32, #tpu.memory_space<vmem>>, vector<1x16x64xf32>
    %258 = vector.shape_cast %257 : vector<1x16x64xf32> to vector<16x64xf32>
    %cst_149 = arith.constant dense<0.000000e+00> : vector<16x256xf32>
    %259 = tpu.matmul %258, %256, %cst_149 {dimension_numbers = #tpu.dot_dimension_numbers<[1], [0], [0], [1], [0, 0, 1, 1], [], []>} : vector<16x64xf32>, vector<64x256xf32>, vector<16x256xf32> -> vector<16x256xf32>
    %c3_150 = arith.constant 3 : index
    %c0_151 = arith.constant 0 : index
    %c0_152 = arith.constant 0 : index
    %260 = vector.load %arg6[%c3_150, %c0_151, %c0_152] : memref<4x16x1xf32, #tpu.memory_space<vmem>>, vector<1x16x1xf32>
    %261 = vector.shape_cast %260 : vector<1x16x1xf32> to vector<16x1xf32>
    %262 = vector.broadcast %261 : vector<16x1xf32> to vector<16x256xf32>
    %263 = arith.addf %259, %262 : vector<16x256xf32>
    %c3_153 = arith.constant 3 : index
    %c0_154 = arith.constant 0 : index
    %c0_155 = arith.constant 0 : index
    %264 = vector.load %arg7[%c3_153, %c0_154, %c0_155] : memref<4x16x1xf32, #tpu.memory_space<vmem>>, vector<1x16x1xf32>
    %265 = vector.shape_cast %264 : vector<1x16x1xf32> to vector<16x1xf32>
    %266 = vector.broadcast %265 : vector<16x1xf32> to vector<16x256xf32>
    %267 = arith.mulf %263, %266 : vector<16x256xf32>
    %c3_156 = arith.constant 3 : index
    %c0_157 = arith.constant 0 : index
    %c0_158 = arith.constant 0 : index
    %268 = vector.load %arg8[%c3_156, %c0_157, %c0_158] : memref<4x16x1xf32, #tpu.memory_space<vmem>>, vector<1x16x1xf32>
    %269 = vector.shape_cast %268 : vector<1x16x1xf32> to vector<16x1xf32>
    %270 = vector.broadcast %269 : vector<16x1xf32> to vector<16x256xf32>
    %271 = arith.addf %267, %270 : vector<16x256xf32>
    %cst_159 = arith.constant 0.000000e+00 : f32
    %272 = vector.broadcast %cst_159 : f32 to vector<16x256xf32>
    %273 = arith.maximumf %271, %272 : vector<16x256xf32>
    %274 = arith.addf %273, %207 : vector<16x256xf32>
    %cst_160 = arith.constant 0.000000e+00 : f32
    %275 = vector.broadcast %cst_160 : f32 to vector<16x256xf32>
    %276 = arith.maximumf %274, %275 : vector<16x256xf32>
    %c0_161 = arith.constant 0 : index
    %c0_162 = arith.constant 0 : index
    %277 = vector.load %arg9[%c0_161, %c0_162] : memref<16x1xf32, #tpu.memory_space<vmem>>, vector<16x1xf32>
    %278 = vector.broadcast %277 : vector<16x1xf32> to vector<16x256xf32>
    %279 = arith.mulf %276, %278 : vector<16x256xf32>
    %c0_163 = arith.constant 0 : index
    %c0_164 = arith.constant 0 : index
    %280 = vector.load %arg10[%c0_163, %c0_164] : memref<16x1xf32, #tpu.memory_space<vmem>>, vector<16x1xf32>
    %281 = vector.broadcast %280 : vector<16x1xf32> to vector<16x256xf32>
    %282 = arith.addf %279, %281 : vector<16x256xf32>
    %c0_165 = arith.constant 0 : index
    %c0_166 = arith.constant 0 : index
    %283 = vector.load %arg11[%c0_165, %c0_166] : memref<16x16xf32, #tpu.memory_space<vmem>>, vector<16x16xf32>
    %cst_167 = arith.constant 0.000000e+00 : f32
    %284 = vector.broadcast %cst_167 : f32 to vector<16x16xf32>
    %285 = arith.maximumf %283, %284 : vector<16x16xf32>
    %cst_168 = arith.constant dense<0.000000e+00> : vector<16xf32>
    %286 = vector.multi_reduction <add>, %285, %cst_168 [1] : vector<16x16xf32> to vector<16xf32>
    %287 = vector.shape_cast %286 : vector<16xf32> to vector<16x1xf32>
    %cst_169 = arith.constant 1.000000e-10 : f32
    %288 = vector.broadcast %cst_169 : f32 to vector<16x1xf32>
    %289 = arith.addf %287, %288 : vector<16x1xf32>
    %290 = math.rsqrt %289 : vector<16x1xf32>
    %c0_170 = arith.constant 0 : index
    %c0_171 = arith.constant 0 : index
    %c0_172 = arith.constant 0 : index
    %291 = vector.load %arg12[%c0_170, %c0_171, %c0_172] : memref<2x256x128xf32, #tpu.memory_space<vmem>>, vector<1x256x128xf32>
    %292 = vector.shape_cast %291 : vector<1x256x128xf32> to vector<256x128xf32>
    %cst_173 = arith.constant dense<0.000000e+00> : vector<16x128xf32>
    %293 = tpu.matmul %282, %292, %cst_173 {dimension_numbers = #tpu.dot_dimension_numbers<[1], [0], [0], [1], [0, 0, 1, 1], [], []>} : vector<16x256xf32>, vector<256x128xf32>, vector<16x128xf32> -> vector<16x128xf32>
    %294 = vector.broadcast %290 : vector<16x1xf32> to vector<16x256xf32>
    %295 = arith.mulf %294, %282 : vector<16x256xf32>
    %cst_174 = arith.constant dense<0.000000e+00> : vector<16x256xf32>
    %296 = tpu.matmul %285, %295, %cst_174 {dimension_numbers = #tpu.dot_dimension_numbers<[1], [0], [0], [1], [0, 0, 1, 1], [], []>} : vector<16x16xf32>, vector<16x256xf32>, vector<16x256xf32> -> vector<16x256xf32>
    %297 = vector.broadcast %290 : vector<16x1xf32> to vector<16x256xf32>
    %298 = arith.mulf %297, %296 : vector<16x256xf32>
    %c1_175 = arith.constant 1 : index
    %c0_176 = arith.constant 0 : index
    %c0_177 = arith.constant 0 : index
    %299 = vector.load %arg12[%c1_175, %c0_176, %c0_177] : memref<2x256x128xf32, #tpu.memory_space<vmem>>, vector<1x256x128xf32>
    %300 = vector.shape_cast %299 : vector<1x256x128xf32> to vector<256x128xf32>
    %cst_178 = arith.constant dense<0.000000e+00> : vector<16x128xf32>
    %301 = tpu.matmul %298, %300, %cst_178 {dimension_numbers = #tpu.dot_dimension_numbers<[1], [0], [0], [1], [0, 0, 1, 1], [], []>} : vector<16x256xf32>, vector<256x128xf32>, vector<16x128xf32> -> vector<16x128xf32>
    %302 = arith.addf %293, %301 : vector<16x128xf32>
    %cst_179 = arith.constant 0.000000e+00 : f32
    %303 = vector.broadcast %cst_179 : f32 to vector<16x128xf32>
    %304 = arith.maximumf %302, %303 : vector<16x128xf32>
    %c0_180 = arith.constant 0 : index
    %c0_181 = arith.constant 0 : index
    %305 = vector.load %arg14[%c0_180, %c0_181] : memref<1x128xf32, #tpu.memory_space<vmem>>, vector<1x128xf32>
    %306 = vector.extract_strided_slice %304 {offsets = [0, 0], sizes = [1, 128], strides = [1, 1]} : vector<16x128xf32> to vector<1x128xf32>
    %c0_182 = arith.constant 0 : index
    %c0_183 = arith.constant 0 : index
    %c0_184 = arith.constant 0 : index
    %307 = vector.load %arg13[%c0_182, %c0_183, %c0_184] : memref<14x128x128xf32, #tpu.memory_space<vmem>>, vector<1x128x128xf32>
    %308 = vector.shape_cast %307 : vector<1x128x128xf32> to vector<128x128xf32>
    %cst_185 = arith.constant dense<0.000000e+00> : vector<1x128xf32>
    %309 = tpu.matmul %306, %308, %cst_185 {dimension_numbers = #tpu.dot_dimension_numbers<[1], [0], [0], [1], [0, 0, 1, 1], [], []>} : vector<1x128xf32>, vector<128x128xf32>, vector<1x128xf32> -> vector<1x128xf32>
    %310 = arith.addf %305, %309 : vector<1x128xf32>
    %311 = vector.extract_strided_slice %304 {offsets = [1, 0], sizes = [1, 128], strides = [1, 1]} : vector<16x128xf32> to vector<1x128xf32>
    %c1_186 = arith.constant 1 : index
    %c0_187 = arith.constant 0 : index
    %c0_188 = arith.constant 0 : index
    %312 = vector.load %arg13[%c1_186, %c0_187, %c0_188] : memref<14x128x128xf32, #tpu.memory_space<vmem>>, vector<1x128x128xf32>
    %313 = vector.shape_cast %312 : vector<1x128x128xf32> to vector<128x128xf32>
    %cst_189 = arith.constant dense<0.000000e+00> : vector<1x128xf32>
    %314 = tpu.matmul %311, %313, %cst_189 {dimension_numbers = #tpu.dot_dimension_numbers<[1], [0], [0], [1], [0, 0, 1, 1], [], []>} : vector<1x128xf32>, vector<128x128xf32>, vector<1x128xf32> -> vector<1x128xf32>
    %315 = arith.addf %310, %314 : vector<1x128xf32>
    %316 = vector.extract_strided_slice %304 {offsets = [2, 0], sizes = [1, 128], strides = [1, 1]} : vector<16x128xf32> to vector<1x128xf32>
    %c2_190 = arith.constant 2 : index
    %c0_191 = arith.constant 0 : index
    %c0_192 = arith.constant 0 : index
    %317 = vector.load %arg13[%c2_190, %c0_191, %c0_192] : memref<14x128x128xf32, #tpu.memory_space<vmem>>, vector<1x128x128xf32>
    %318 = vector.shape_cast %317 : vector<1x128x128xf32> to vector<128x128xf32>
    %cst_193 = arith.constant dense<0.000000e+00> : vector<1x128xf32>
    %319 = tpu.matmul %316, %318, %cst_193 {dimension_numbers = #tpu.dot_dimension_numbers<[1], [0], [0], [1], [0, 0, 1, 1], [], []>} : vector<1x128xf32>, vector<128x128xf32>, vector<1x128xf32> -> vector<1x128xf32>
    %320 = arith.addf %315, %319 : vector<1x128xf32>
    %321 = vector.extract_strided_slice %304 {offsets = [3, 0], sizes = [1, 128], strides = [1, 1]} : vector<16x128xf32> to vector<1x128xf32>
    %c3_194 = arith.constant 3 : index
    %c0_195 = arith.constant 0 : index
    %c0_196 = arith.constant 0 : index
    %322 = vector.load %arg13[%c3_194, %c0_195, %c0_196] : memref<14x128x128xf32, #tpu.memory_space<vmem>>, vector<1x128x128xf32>
    %323 = vector.shape_cast %322 : vector<1x128x128xf32> to vector<128x128xf32>
    %cst_197 = arith.constant dense<0.000000e+00> : vector<1x128xf32>
    %324 = tpu.matmul %321, %323, %cst_197 {dimension_numbers = #tpu.dot_dimension_numbers<[1], [0], [0], [1], [0, 0, 1, 1], [], []>} : vector<1x128xf32>, vector<128x128xf32>, vector<1x128xf32> -> vector<1x128xf32>
    %325 = arith.addf %320, %324 : vector<1x128xf32>
    %326 = vector.extract_strided_slice %304 {offsets = [4, 0], sizes = [1, 128], strides = [1, 1]} : vector<16x128xf32> to vector<1x128xf32>
    %c4 = arith.constant 4 : index
    %c0_198 = arith.constant 0 : index
    %c0_199 = arith.constant 0 : index
    %327 = vector.load %arg13[%c4, %c0_198, %c0_199] : memref<14x128x128xf32, #tpu.memory_space<vmem>>, vector<1x128x128xf32>
    %328 = vector.shape_cast %327 : vector<1x128x128xf32> to vector<128x128xf32>
    %cst_200 = arith.constant dense<0.000000e+00> : vector<1x128xf32>
    %329 = tpu.matmul %326, %328, %cst_200 {dimension_numbers = #tpu.dot_dimension_numbers<[1], [0], [0], [1], [0, 0, 1, 1], [], []>} : vector<1x128xf32>, vector<128x128xf32>, vector<1x128xf32> -> vector<1x128xf32>
    %330 = arith.addf %325, %329 : vector<1x128xf32>
    %331 = vector.extract_strided_slice %304 {offsets = [5, 0], sizes = [1, 128], strides = [1, 1]} : vector<16x128xf32> to vector<1x128xf32>
    %c5 = arith.constant 5 : index
    %c0_201 = arith.constant 0 : index
    %c0_202 = arith.constant 0 : index
    %332 = vector.load %arg13[%c5, %c0_201, %c0_202] : memref<14x128x128xf32, #tpu.memory_space<vmem>>, vector<1x128x128xf32>
    %333 = vector.shape_cast %332 : vector<1x128x128xf32> to vector<128x128xf32>
    %cst_203 = arith.constant dense<0.000000e+00> : vector<1x128xf32>
    %334 = tpu.matmul %331, %333, %cst_203 {dimension_numbers = #tpu.dot_dimension_numbers<[1], [0], [0], [1], [0, 0, 1, 1], [], []>} : vector<1x128xf32>, vector<128x128xf32>, vector<1x128xf32> -> vector<1x128xf32>
    %335 = arith.addf %330, %334 : vector<1x128xf32>
    %336 = vector.extract_strided_slice %304 {offsets = [6, 0], sizes = [1, 128], strides = [1, 1]} : vector<16x128xf32> to vector<1x128xf32>
    %c6 = arith.constant 6 : index
    %c0_204 = arith.constant 0 : index
    %c0_205 = arith.constant 0 : index
    %337 = vector.load %arg13[%c6, %c0_204, %c0_205] : memref<14x128x128xf32, #tpu.memory_space<vmem>>, vector<1x128x128xf32>
    %338 = vector.shape_cast %337 : vector<1x128x128xf32> to vector<128x128xf32>
    %cst_206 = arith.constant dense<0.000000e+00> : vector<1x128xf32>
    %339 = tpu.matmul %336, %338, %cst_206 {dimension_numbers = #tpu.dot_dimension_numbers<[1], [0], [0], [1], [0, 0, 1, 1], [], []>} : vector<1x128xf32>, vector<128x128xf32>, vector<1x128xf32> -> vector<1x128xf32>
    %340 = arith.addf %335, %339 : vector<1x128xf32>
    %341 = vector.extract_strided_slice %304 {offsets = [7, 0], sizes = [1, 128], strides = [1, 1]} : vector<16x128xf32> to vector<1x128xf32>
    %c7 = arith.constant 7 : index
    %c0_207 = arith.constant 0 : index
    %c0_208 = arith.constant 0 : index
    %342 = vector.load %arg13[%c7, %c0_207, %c0_208] : memref<14x128x128xf32, #tpu.memory_space<vmem>>, vector<1x128x128xf32>
    %343 = vector.shape_cast %342 : vector<1x128x128xf32> to vector<128x128xf32>
    %cst_209 = arith.constant dense<0.000000e+00> : vector<1x128xf32>
    %344 = tpu.matmul %341, %343, %cst_209 {dimension_numbers = #tpu.dot_dimension_numbers<[1], [0], [0], [1], [0, 0, 1, 1], [], []>} : vector<1x128xf32>, vector<128x128xf32>, vector<1x128xf32> -> vector<1x128xf32>
    %345 = arith.addf %340, %344 : vector<1x128xf32>
    %346 = vector.extract_strided_slice %304 {offsets = [8, 0], sizes = [1, 128], strides = [1, 1]} : vector<16x128xf32> to vector<1x128xf32>
    %c8 = arith.constant 8 : index
    %c0_210 = arith.constant 0 : index
    %c0_211 = arith.constant 0 : index
    %347 = vector.load %arg13[%c8, %c0_210, %c0_211] : memref<14x128x128xf32, #tpu.memory_space<vmem>>, vector<1x128x128xf32>
    %348 = vector.shape_cast %347 : vector<1x128x128xf32> to vector<128x128xf32>
    %cst_212 = arith.constant dense<0.000000e+00> : vector<1x128xf32>
    %349 = tpu.matmul %346, %348, %cst_212 {dimension_numbers = #tpu.dot_dimension_numbers<[1], [0], [0], [1], [0, 0, 1, 1], [], []>} : vector<1x128xf32>, vector<128x128xf32>, vector<1x128xf32> -> vector<1x128xf32>
    %350 = arith.addf %345, %349 : vector<1x128xf32>
    %351 = vector.extract_strided_slice %304 {offsets = [9, 0], sizes = [1, 128], strides = [1, 1]} : vector<16x128xf32> to vector<1x128xf32>
    %c9 = arith.constant 9 : index
    %c0_213 = arith.constant 0 : index
    %c0_214 = arith.constant 0 : index
    %352 = vector.load %arg13[%c9, %c0_213, %c0_214] : memref<14x128x128xf32, #tpu.memory_space<vmem>>, vector<1x128x128xf32>
    %353 = vector.shape_cast %352 : vector<1x128x128xf32> to vector<128x128xf32>
    %cst_215 = arith.constant dense<0.000000e+00> : vector<1x128xf32>
    %354 = tpu.matmul %351, %353, %cst_215 {dimension_numbers = #tpu.dot_dimension_numbers<[1], [0], [0], [1], [0, 0, 1, 1], [], []>} : vector<1x128xf32>, vector<128x128xf32>, vector<1x128xf32> -> vector<1x128xf32>
    %355 = arith.addf %350, %354 : vector<1x128xf32>
    %356 = vector.extract_strided_slice %304 {offsets = [10, 0], sizes = [1, 128], strides = [1, 1]} : vector<16x128xf32> to vector<1x128xf32>
    %c10 = arith.constant 10 : index
    %c0_216 = arith.constant 0 : index
    %c0_217 = arith.constant 0 : index
    %357 = vector.load %arg13[%c10, %c0_216, %c0_217] : memref<14x128x128xf32, #tpu.memory_space<vmem>>, vector<1x128x128xf32>
    %358 = vector.shape_cast %357 : vector<1x128x128xf32> to vector<128x128xf32>
    %cst_218 = arith.constant dense<0.000000e+00> : vector<1x128xf32>
    %359 = tpu.matmul %356, %358, %cst_218 {dimension_numbers = #tpu.dot_dimension_numbers<[1], [0], [0], [1], [0, 0, 1, 1], [], []>} : vector<1x128xf32>, vector<128x128xf32>, vector<1x128xf32> -> vector<1x128xf32>
    %360 = arith.addf %355, %359 : vector<1x128xf32>
    %361 = vector.extract_strided_slice %304 {offsets = [11, 0], sizes = [1, 128], strides = [1, 1]} : vector<16x128xf32> to vector<1x128xf32>
    %c11 = arith.constant 11 : index
    %c0_219 = arith.constant 0 : index
    %c0_220 = arith.constant 0 : index
    %362 = vector.load %arg13[%c11, %c0_219, %c0_220] : memref<14x128x128xf32, #tpu.memory_space<vmem>>, vector<1x128x128xf32>
    %363 = vector.shape_cast %362 : vector<1x128x128xf32> to vector<128x128xf32>
    %cst_221 = arith.constant dense<0.000000e+00> : vector<1x128xf32>
    %364 = tpu.matmul %361, %363, %cst_221 {dimension_numbers = #tpu.dot_dimension_numbers<[1], [0], [0], [1], [0, 0, 1, 1], [], []>} : vector<1x128xf32>, vector<128x128xf32>, vector<1x128xf32> -> vector<1x128xf32>
    %365 = arith.addf %360, %364 : vector<1x128xf32>
    %366 = vector.extract_strided_slice %304 {offsets = [12, 0], sizes = [1, 128], strides = [1, 1]} : vector<16x128xf32> to vector<1x128xf32>
    %c12 = arith.constant 12 : index
    %c0_222 = arith.constant 0 : index
    %c0_223 = arith.constant 0 : index
    %367 = vector.load %arg13[%c12, %c0_222, %c0_223] : memref<14x128x128xf32, #tpu.memory_space<vmem>>, vector<1x128x128xf32>
    %368 = vector.shape_cast %367 : vector<1x128x128xf32> to vector<128x128xf32>
    %cst_224 = arith.constant dense<0.000000e+00> : vector<1x128xf32>
    %369 = tpu.matmul %366, %368, %cst_224 {dimension_numbers = #tpu.dot_dimension_numbers<[1], [0], [0], [1], [0, 0, 1, 1], [], []>} : vector<1x128xf32>, vector<128x128xf32>, vector<1x128xf32> -> vector<1x128xf32>
    %370 = arith.addf %365, %369 : vector<1x128xf32>
    %371 = vector.extract_strided_slice %304 {offsets = [13, 0], sizes = [1, 128], strides = [1, 1]} : vector<16x128xf32> to vector<1x128xf32>
    %c13 = arith.constant 13 : index
    %c0_225 = arith.constant 0 : index
    %c0_226 = arith.constant 0 : index
    %372 = vector.load %arg13[%c13, %c0_225, %c0_226] : memref<14x128x128xf32, #tpu.memory_space<vmem>>, vector<1x128x128xf32>
    %373 = vector.shape_cast %372 : vector<1x128x128xf32> to vector<128x128xf32>
    %cst_227 = arith.constant dense<0.000000e+00> : vector<1x128xf32>
    %374 = tpu.matmul %371, %373, %cst_227 {dimension_numbers = #tpu.dot_dimension_numbers<[1], [0], [0], [1], [0, 0, 1, 1], [], []>} : vector<1x128xf32>, vector<128x128xf32>, vector<1x128xf32> -> vector<1x128xf32>
    %375 = arith.addf %370, %374 : vector<1x128xf32>
    %cst_228 = arith.constant 0.000000e+00 : f32
    %376 = vector.broadcast %cst_228 : f32 to vector<1x128xf32>
    %377 = arith.maximumf %375, %376 : vector<1x128xf32>
    %c0_229 = arith.constant 0 : index
    %c0_230 = arith.constant 0 : index
    %378 = vector.load %arg15[%c0_229, %c0_230] : memref<128x4xf32, #tpu.memory_space<vmem>>, vector<128x4xf32>
    %cst_231 = arith.constant dense<0.000000e+00> : vector<1x4xf32>
    %379 = tpu.matmul %377, %378, %cst_231 {dimension_numbers = #tpu.dot_dimension_numbers<[1], [0], [0], [1], [0, 0, 1, 1], [], []>} : vector<1x128xf32>, vector<128x4xf32>, vector<1x4xf32> -> vector<1x4xf32>
    %c0_232 = arith.constant 0 : index
    %c0_233 = arith.constant 0 : index
    %380 = vector.load %arg16[%c0_232, %c0_233] : memref<1x4xf32, #tpu.memory_space<vmem>>, vector<1x4xf32>
    %381 = arith.addf %379, %380 : vector<1x4xf32>
    %c0_234 = arith.constant 0 : index
    %c0_235 = arith.constant 0 : index
    %382 = vector.load %arg17[%c0_234, %c0_235] : memref<1x4xf32, #tpu.memory_space<vmem>>, vector<1x4xf32>
    tpu.vector_store %arg17[%c0_234, %c0_235], %381 {strides = array<i32>} : memref<1x4xf32, #tpu.memory_space<vmem>>, vector<1x4xf32>,
    return
  }
}

</mosaic_0001>

<bundles_post_ra>
// kernel: tile.13
= control target key start
LH: loop header
LB: loop body
LE: loop exit
PB: predicated region body
PF: predicated region fallthrough
CT: control target
= control target key end

     0   :  { %s22_s0 = inlined_call_operand.vmem [shape: f32[64], index: 0, kind: input, shape index: {}]   ;;  %s23_s1 = inlined_call_operand.vmem [shape: f32[2,64], index: 1, kind: output, shape index: {}]  }
   0x1   :  { %v4_v0 = vld [vmem:[%s22_s0] ss:$0 sm:$0xff] }
   0x2   :  { %5 = vst [vmem:[%s23_s1] sm:$0x3] %v4_v0 }

// kernel: tile.14
= control target key start
LH: loop header
LB: loop body
LE: loop exit
PB: predicated region body
PF: predicated region fallthrough
CT: control target
= control target key end

     0   :  { %vm7_vm0 = vcmask 523264   ;;  %vm13_vm1 = vcmask 1048064   ;;  %s39_s0 = inlined_call_operand.vmem [shape: f32[2,64], index: 0, kind: input, shape index: {}]   ;;  %s40_s1 = inlined_call_operand.vmem [shape: f32[1,128], index: 1, kind: output, shape index: {}]  }
   0x1   :  { %v4_v0 = vld [vmem:[%s39_s0] sm:$0x3]  ;;  %s22_s0 = smov 64  }
   0x2   :  { %5 = vst [vmem:[#allocation1] sm:$0x3] %v4_v0 }
   0x9   :  { %v10_v1 = vld [vmem:[#allocation1 + $0x1] sm:$0x1]   ;;  %v6_v2 = vld [vmem:[#allocation1] sm:$0x1]  }
   0xa   :  { %11 = vrot.lane.b32.xlu0 %v10_v1, %s22_s0  ;;  %8 = vst.msk [vmem:[#allocation0] sm:$0x1] %vm7_vm0, %v6_v2  }
  0x7c   :  { %v12_v3 = vpop.permute.xlu0 %11  }
  0x7d   :  { %14 = vst.msk [vmem:[#allocation0] sm:$0x1] %vm13_vm1, %v12_v3  }
  0x84   :  { %v18_v4 = vld [vmem:[#allocation0] sm:$0x1] }
  0x85   :  { %20 = vst [vmem:[%s40_s1] sm:$0x1] %v18_v4 }

// kernel: tile.18
= control target key start
LH: loop header
LB: loop body
LE: loop exit
PB: predicated region body
PF: predicated region fallthrough
CT: control target
= control target key end

     0   :  { %s22_s0 = inlined_call_operand.vmem [shape: f32[2], index: 0, kind: input, shape index: {}]   ;;  %s23_s1 = inlined_call_operand.vmem [shape: f32[2,2], index: 1, kind: output, shape index: {}]  }
   0x1   :  { %v4_v0 = vld [vmem:[%s22_s0] ss:$0 sm:$0xff] }
   0x2   :  { %5 = vst [vmem:[%s23_s1] sm:$0x3] %v4_v0 }

// kernel: tile.19
= control target key start
LH: loop header
LB: loop body
LE: loop exit
PB: predicated region body
PF: predicated region fallthrough
CT: control target
= control target key end

     0   :  { %vm7_vm0 = vcmask 15360   ;;  %vm13_vm1 = vcmask 31760   ;;  %s39_s0 = inlined_call_operand.vmem [shape: f32[2,2], index: 0, kind: input, shape index: {}]   ;;  %s40_s1 = inlined_call_operand.vmem [shape: f32[1,4], index: 1, kind: output, shape index: {}]  }
   0x1   :  { %v4_v0 = vld [vmem:[%s39_s0] sm:$0x3]  ;;  %s22_s0 = smov 2  }
   0x2   :  { %5 = vst [vmem:[#allocation1] sm:$0x3] %v4_v0 }
   0x9   :  { %v10_v1 = vld [vmem:[#allocation1 + $0x1] sm:$0x1]   ;;  %v6_v2 = vld [vmem:[#allocation1] sm:$0x1]  }
   0xa   :  { %11 = vrot.lane.b32.xlu0 %v10_v1, %s22_s0  ;;  %8 = vst.msk [vmem:[#allocation0] sm:$0x1] %vm7_vm0, %v6_v2  }
  0x7c   :  { %v12_v3 = vpop.permute.xlu0 %11  }
  0x7d   :  { %14 = vst.msk [vmem:[#allocation0] sm:$0x1] %vm13_vm1, %v12_v3  }
  0x84   :  { %v18_v4 = vld [vmem:[#allocation0] sm:$0x1] }
  0x85   :  { %20 = vst [vmem:[%s40_s1] sm:$0x1] %v18_v4 }

// kernel: nov_model_forward.1
= control target key start
LH: loop header
LB: loop body
LE: loop exit
PB: predicated region body
PF: predicated region fallthrough
CT: control target
= control target key end

     0   :  { %s5555_s19 = smov 3   ;;  %s5557_s20 = smov 1   ;;  %v5558_v6 = vmov 0.0   ;;  %v5559_v7 = vmov 0   ;;  %vm76_vm0 = vcmask 23552   ;;  %vm93_vm2 = vcmask 15360   ;;  %s7319_s0 = inlined_call_operand.vmem [shape: f32[16,256], index: 0, kind: input, shape index: {}]   ;;  %s7320_s2 = inlined_call_operand.vmem [shape: f32[4,16,1], index: 2, kind: input, shape index: {}]   ;;  %s7321_s3 = inlined_call_operand.vmem [shape: f32[4,16,1], index: 3, kind: input, shape index: {}]   ;;  %s7322_s4 = inlined_call_operand.vmem [shape: f32[4,16,1], index: 4, kind: input, shape index: {}]   ;;  %s7323_s1 = inlined_call_operand.vmem [shape: f32[4,16,64], index: 1, kind: input, shape index: {}]   ;;  %s7324_s6 = inlined_call_operand.vmem [shape: f32[4,16,1], index: 6, kind: input, shape index: {}]   ;;  %s7325_s7 = inlined_call_operand.vmem [shape: f32[4,16,1], index: 7, kind: input, shape index: {}]   ;;  %s7326_s8 = inlined_call_operand.vmem [shape: f32[4,16,1], index: 8, kind: input, shape index: {}]   ;;  %s7327_s5 = inlined_call_operand.vmem [shape: f32[4,16,64], index: 5, kind: input, shape index: {}]   ;;  %s7328_s11 = inlined_call_operand.vmem [shape: f32[16,16], index: 11, kind: input, shape index: {}]   ;;  %s7329_s9 = inlined_call_operand.vmem [shape: f32[16,1], index: 9, kind: input, shape index: {}]   ;;  %s7330_s10 = inlined_call_operand.vmem [shape: f32[16,1], index: 10, kind: input, shape index: {}]   ;;  %s7331_s12 = inlined_call_operand.vmem [shape: f32[2,256,128], index: 12, kind: input, shape index: {}]   ;;  %s7332_s13 = inlined_call_operand.vmem [shape: f32[14,128,128], index: 13, kind: input, shape index: {}]   ;;  %s7333_s15 = inlined_call_operand.vmem [shape: f32[128,4], index: 15, kind: input, shape index: {}]   ;;  %s7334_s14 = inlined_call_operand.vmem [shape: f32[1,128], index: 14, kind: input, shape index: {}]   ;;  %s7335_s16 = inlined_call_operand.vmem [shape: f32[1,4], index: 16, kind: input, shape index: {}]   ;;  %s7336_s17 = inlined_call_operand.vmem [shape: f32[1,4], index: 17, kind: output, shape index: {}]  }
   0x1   :  { %7339 = sst [smem:[#allocation2_spill]] %s7319_s0  ;;  %200 = vmatprep.mubr.f32.mxu0 %v5558_v6  ;;  %771 = vmatprep.mubr.f32.mxu1 %v5558_v6  ;;  %v213_v10 = vld [vmem:[%s7321_s3] sm:$0xff]  ;;  %v214_v11 = vld [vmem:[%s7321_s3 + $0x8] sm:$0xff]  ;;  %vm3312_vm1 = vmneg %vm76_vm0  ;;  %vm110_vm5 = vcmask 7168   ;;  %vm129_vm9 = vcmask 523264   ;;  %s5560_s0 = smov 6  }
   0x2   :  { %7340 = sst [smem:[#allocation3_spill]] %s7320_s2  ;;  %s7341_s26 = sld [smem:[#allocation2_spill]]  ;;  %5340 = vset.pattern.permute.xlu1 %v5559_v7  ;;  %5339 = vset.pattern.permute.xlu0 %v5559_v7  ;;  %v229_v12 = vld [vmem:[%s7322_s4] sm:$0xff]  ;;  %v230_v13 = vld [vmem:[%s7322_s4 + $0x8] sm:$0xff]  ;;  %vm5708_vm3 = vmpackc.low %vm3312_vm1, %vm3312_vm1  ;;  %vm458_vm10 = vcmask 48128   ;;  %vm475_vm12 = vcmask 31744  }
   0x3   :  { %s5556_s2 = smov 2   ;;  %s7342_s23 = sld [smem:[#allocation3_spill]]  ;;  %vm3320_vm4 = vmneg %vm93_vm2  ;;  %v115_v43 = vld [vmem:[%s7323_s1] sm:$0xff]  ;;  %v116_v44 = vld [vmem:[%s7323_s1 + $0x8] sm:$0xff]  ;;  %vm846_vm0 = vcmask 97280   ;;  %vm863_vm2 = vcmask 64512  }
   0x4   :  { %vm5714_vm6 = vmpackc.low %vm3320_vm4, %vm3320_vm4  ;;  %v301_v20 = vld [vmem:[%s7327_s5] sm:$0xff]  ;;  %s5561_s30 = smov 4   ;;  %s5562_s27 = smov 12  }
   0x5   :  { %vm3328_vm7 = vmneg %vm110_vm5  ;;  %s5563_s28 = smov 8   ;;  %s5564_s24 = smov 24  }
   0x6   :  { %vm5722_vm8 = vmpackc.low %vm3328_vm7, %vm3328_vm7  ;;  %s5565_s25 = smov 16  }
   0x7   :  { %vm3368_vm11 = vmneg %vm458_vm10 }
   0x8   :  { %v5661_v0 = vld [vmem:[%s7341_s26 + $0x8] sm:$0xff]  ;;  %v5666_v1 = vld [vmem:[%s7341_s26 + $0x18] sm:$0xff]  ;;  %v5671_v2 = vld [vmem:[%s7341_s26] sm:$0xff] }
   0x9   :  { %v5309_v3 = vpack.i.bf16 %v5666_v1, %v5661_v0  ;;  %v5678_v4 = vld [vmem:[%s7341_s26 + $0x10] sm:$0xff]  ;;  %v118_v8 = vld [vmem:[%s7342_s23 + $0x8] sm:$0xff]  ;;  %v117_v9 = vld [vmem:[%s7342_s23] sm:$0xff]  ;;  %v4684_v41 = vpack.c.bf16 %v5666_v1, %v5661_v0 }
   0xa   :  { %v5314_v5 = vpack.i.bf16 %v5678_v4, %v5671_v2  ;;  %v4686_v42 = vpack.c.bf16 %v5678_v4, %v5671_v2  ;;  %vm5832_vm13 = vmpackc.low %vm3368_vm11, %vm3368_vm11 }
   0xb   :  { %5310 = vrot.lane.b32.xlu0 %v5309_v3, %s5555_s19  ;;  %5320 = vrot.lane.b32.xlu1 %v5309_v3, %s5556_s2  ;;  %vm3376_vm14 = vmneg %vm475_vm12 }
   0xc   :  { %vm5840_vm15 = vmpackc.low %vm3376_vm14, %vm3376_vm14 }
   0xd   :  { %vm3436_vm1 = vmneg %vm846_vm0 }
   0xe   :  { %vm3444_vm4 = vmneg %vm863_vm2 }
   0xf   :  { %5315 = vrot.lane.b32.xlu0 %v5314_v5, %s5555_s19  ;;  %5325 = vrot.lane.b32.xlu1 %v5314_v5, %s5556_s2  ;;  %vm5960_vm5 = vmpackc.low %vm3444_vm4, %vm3444_vm4 }
  0x13   :  { %5330 = vrot.lane.b32.xlu0 %v5309_v3, %s5557_s20  ;;  %5335 = vrot.lane.b32.xlu1 %v5314_v5, %s5557_s20 }
  0x17   :  { %126 = vperm.xlu1 %5340, %v118_v8   ;;  %121 = vperm.xlu0 %5339, %v117_v9  }
  0x1b   :  { %217 = vperm.xlu1 %5340, %v213_v10   ;;  %222 = vperm.xlu0 %5339, %v214_v11  }
  0x1f   :  { %233 = vperm.xlu1 %5340, %v229_v12   ;;  %238 = vperm.xlu0 %5339, %v230_v13  }
  0x7d   :  { %v5311_v14 = vpop.permute.xlu0 %5310  ;;  %v5321_v15 = vpop.permute.xlu1 %5320 }
  0x7e   :  { %v5313_v16 = vunpack.i.h.bf16 %v5311_v14  ;;  %v5312_v17 = vunpack.i.l.bf16 %v5311_v14  ;;  %v5323_v18 = vunpack.i.h.bf16 %v5321_v15  ;;  %v5322_v19 = vunpack.i.l.bf16 %v5321_v15 }
  0x80   :  { %v4666_v21 = vpack.c.bf16 %v5313_v16, %v5312_v17  ;;  %v4672_v28 = vpack.c.bf16 %v5323_v18, %v5322_v19  ;;  %v304_v16 = vld [vmem:[%s7324_s6 + $0x8] sm:$0xff]  ;;  %v303_v17 = vld [vmem:[%s7324_s6] sm:$0xff] }
  0x81   :  { %v5316_v22 = vpop.permute.xlu0 %5315  ;;  %v5326_v23 = vpop.permute.xlu1 %5325  ;;  %v399_v18 = vld [vmem:[%s7325_s7 + $0x8] sm:$0xff]  ;;  %v398_v19 = vld [vmem:[%s7325_s7] sm:$0xff] }
  0x82   :  { %v5318_v24 = vunpack.i.h.bf16 %v5316_v22  ;;  %v5317_v25 = vunpack.i.l.bf16 %v5316_v22  ;;  %4668 = vmatprep.subr.msk.bf16.mxu0 %vm5708_vm3, %v4666_v21  ;;  %v5328_v26 = vunpack.i.h.bf16 %v5326_v23  ;;  %v5327_v27 = vunpack.i.l.bf16 %v5326_v23  ;;  %v415_v21 = vld [vmem:[%s7326_s8 + $0x8] sm:$0xff]  ;;  %v414_v22 = vld [vmem:[%s7326_s8] sm:$0xff] }
  0x84   :  { %v4669_v29 = vpack.c.bf16 %v5318_v24, %v5317_v25  ;;  %v4675_v31 = vpack.c.bf16 %v5328_v26, %v5327_v27 }
  0x85   :  { %v5331_v32 = vpop.permute.xlu0 %5330  ;;  %v5336_v33 = vpop.permute.xlu1 %5335 }
  0x86   :  { %4671 = vmatpush1.bf16.msk.msra.mxu0 %vm5708_vm3, %v4669_v29  ;;  %v5333_v34 = vunpack.i.h.bf16 %v5331_v32  ;;  %v5332_v35 = vunpack.i.l.bf16 %v5331_v32  ;;  %v5338_v36 = vunpack.i.h.bf16 %v5336_v33  ;;  %v5337_v37 = vunpack.i.l.bf16 %v5336_v33 }
  0x87   :  { %4674 = vmatprep.subr.msk.bf16.mxu0 %vm5714_vm6, %v4672_v28 }
  0x88   :  { %v4678_v38 = vpack.c.bf16 %v5333_v34, %v5332_v35  ;;  %v4681_v40 = vpack.c.bf16 %v5338_v36, %v5337_v37 }
  0x8a   :  { %4677 = vmatpush1.bf16.msk.msra.mxu0 %vm5714_vm6, %v4675_v31 }
  0x8b   :  { %4680 = vmatprep.subr.msk.bf16.mxu0 %vm5722_vm8, %v4678_v38 }
  0x8e   :  { %4683 = vmatpush1.bf16.msk.msra.mxu0 %vm5722_vm8, %v4681_v40 }
  0x8f   :  { %4685 = vmatprep.subr.bf16.mxu0 %v4684_v41 }
  0x92   :  { %4687 = vmatpush1.bf16.msra.mxu0 %v4686_v42 }
  0x95   :  { %3336 = vmatmul.mubr.msk.f32.vlgmr.msra.gmra.mrb[0].mxu0 %vm129_vm9, %v115_v43 }
  0x96   :  { %206 = vmatprep.mubr.f32.mxu0 %v5558_v6  ;;  %v127_v45 = vpop.permute.xlu1 %126  ;;  %v122_v46 = vpop.permute.xlu0 %121 }
  0x99   :  { %3337 = vmatmul.mubr.msk.f32.gmra.mrb[2].mxu0 %vm129_vm9, %v116_v44 }
  0x9a   :  { %385 = vmatprep.mubr.f32.mxu0 %v5558_v6  ;;  %v218_v47 = vpop.permute.xlu1 %217  ;;  %v223_v51 = vpop.permute.xlu0 %222 }
  0x9e   :  { %v234_v58 = vpop.permute.xlu1 %233  ;;  %v239_v62 = vpop.permute.xlu0 %238 }
 0x168   :  { %v202_v48 = vpop.f32.mrb[0].mxu0 }
 0x169   :  { %v203_v49 = vadd.f32 %v202_v48, %v122_v46  ;;  %v204_v50 = vpop.f32.mrb[1].mxu0 }
 0x16a   :  { %v205_v52 = vadd.f32 %v204_v50, %v122_v46 }
 0x16b   :  { %v225_v53 = vmul.f32 %v218_v47, %v203_v49  ;;  %v302_v49 = vld [vmem:[%s7327_s5 + $0x8] sm:$0xff] }
 0x16c   :  { %v226_v54 = vmul.f32 %v218_v47, %v205_v52  ;;  %v208_v55 = vpop.f32.mrb[2].mxu0 }
 0x16d   :  { %v209_v56 = vadd.f32 %v208_v55, %v127_v45  ;;  %v210_v57 = vpop.f32.mrb[3].mxu0  ;;  %v241_v60 = vadd.f32 %v234_v58, %v225_v53 }
 0x16e   :  { %v211_v59 = vadd.f32 %v210_v57, %v127_v45  ;;  %v242_v63 = vadd.f32 %v234_v58, %v226_v54 }
 0x16f   :  { %v227_v61 = vmul.f32 %v223_v51, %v209_v56  ;;  %v245_v8 = vmax.f32 %v241_v60, 0.0 }
 0x170   :  { %v228_v3 = vmul.f32 %v223_v51, %v211_v59  ;;  %v246_v10 = vmax.f32 %v242_v63, 0.0 }
 0x171   :  { %v243_v5 = vadd.f32 %v239_v62, %v227_v61 }
 0x172   :  { %v244_v7 = vadd.f32 %v239_v62, %v228_v3 }
 0x173   :  { %v247_v9 = vmax.f32 %v243_v5, 0.0 }
 0x174   :  { %v248_v11 = vmax.f32 %v244_v7, 0.0 }
 0x175   :  { %v5341_v12 = vpack.i.bf16 %v247_v9, %v245_v8  ;;  %v4708_v13 = vpack.c.bf16 %v247_v9, %v245_v8 }
 0x176   :  { %v5351_v14 = vpack.i.bf16 %v248_v11, %v246_v10  ;;  %v4706_v15 = vpack.c.bf16 %v248_v11, %v246_v10 }
 0x177   :  { %5342 = vrot.lane.b32.xlu0 %v5341_v12, %s5555_s19 }
 0x178   :  { %5352 = vrot.lane.b32.xlu1 %v5351_v14, %s5555_s19 }
 0x17b   :  { %5347 = vrot.lane.b32.xlu0 %v5341_v12, %s5556_s2 }
 0x17c   :  { %5357 = vrot.lane.b32.xlu1 %v5351_v14, %s5556_s2 }
 0x17f   :  { %5367 = vrot.lane.b32.xlu0 %v5341_v12, %s5557_s20 }
 0x180   :  { %5362 = vrot.lane.b32.xlu1 %v5351_v14, %s5557_s20 }
 0x183   :  { %312 = vperm.xlu0 %5339, %v304_v16  }
 0x184   :  { %307 = vperm.xlu1 %5340, %v303_v17  }
 0x187   :  { %407 = vperm.xlu0 %5339, %v399_v18  }
 0x188   :  { %402 = vperm.xlu1 %5340, %v398_v19  }
 0x18b   :  { %423 = vperm.xlu0 %5339, %v415_v21  }
 0x18c   :  { %418 = vperm.xlu1 %5340, %v414_v22  }
 0x1e9   :  { %v5343_v23 = vpop.permute.xlu0 %5342 }
 0x1ea   :  { %v5345_v24 = vunpack.i.h.bf16 %v5343_v23  ;;  %v5344_v25 = vunpack.i.l.bf16 %v5343_v23  ;;  %v5353_v26 = vpop.permute.xlu1 %5352 }
 0x1eb   :  { %v5355_v27 = vunpack.i.h.bf16 %v5353_v26  ;;  %v5354_v28 = vunpack.i.l.bf16 %v5353_v26  ;;  %v3394_v26 = vld [vmem:[%s7321_s3 + $0x10] sm:$0xff] }
 0x1ec   :  { %v4691_v32 = vpack.c.bf16 %v5345_v24, %v5344_v25 }
 0x1ed   :  { %v4688_v29 = vpack.c.bf16 %v5355_v27, %v5354_v28  ;;  %v5348_v31 = vpop.permute.xlu0 %5347  ;;  %v3397_v27 = vld [vmem:[%s7322_s4 + $0x18] sm:$0xff]  ;;  %v3396_v28 = vld [vmem:[%s7322_s4 + $0x10] sm:$0xff] }
 0x1ee   :  { %v5350_v33 = vunpack.i.h.bf16 %v5348_v31  ;;  %v5349_v34 = vunpack.i.l.bf16 %v5348_v31  ;;  %v5358_v35 = vpop.permute.xlu1 %5357 }
 0x1ef   :  { %v5360_v36 = vunpack.i.h.bf16 %v5358_v35  ;;  %v5359_v37 = vunpack.i.l.bf16 %v5358_v35  ;;  %4690 = vmatprep.subr.msk.bf16.mxu0 %vm5708_vm3, %v4688_v29 }
 0x1f0   :  { %4693 = vmatpush1.bf16.msk.msra.mxu0 %vm5708_vm3, %v4691_v32  ;;  %v4697_v41 = vpack.c.bf16 %v5350_v33, %v5349_v34  ;;  %vm5952_vm3 = vmpackc.low %vm3436_vm1, %vm3436_vm1 }
 0x1f1   :  { %v4694_v38 = vpack.c.bf16 %v5360_v36, %v5359_v37  ;;  %v5368_v40 = vpop.permute.xlu0 %5367  ;;  %v3398_v36 = vld [vmem:[%s7327_s5 + $0x10] sm:$0xff] }
 0x1f2   :  { %v5370_v42 = vunpack.i.h.bf16 %v5368_v40  ;;  %v5369_v43 = vunpack.i.l.bf16 %v5368_v40  ;;  %v5363_v44 = vpop.permute.xlu1 %5362 }
 0x1f3   :  { %v5365_v45 = vunpack.i.h.bf16 %v5363_v44  ;;  %v5364_v46 = vunpack.i.l.bf16 %v5363_v44  ;;  %4696 = vmatprep.subr.msk.bf16.mxu0 %vm5714_vm6, %v4694_v38 }
 0x1f4   :  { %4699 = vmatpush1.bf16.msk.msra.mxu0 %vm5714_vm6, %v4697_v41  ;;  %v4703_v48 = vpack.c.bf16 %v5370_v42, %v5369_v43 }
 0x1f5   :  { %v4700_v47 = vpack.c.bf16 %v5365_v45, %v5364_v46 }
 0x1f7   :  { %4702 = vmatprep.subr.msk.bf16.mxu0 %vm5722_vm8, %v4700_v47 }
 0x1f8   :  { %4705 = vmatpush1.bf16.msk.msra.mxu0 %vm5722_vm8, %v4703_v48  ;;  %vm1251_vm8 = vcmask 130048  }
 0x1f9   :  { %4707 = vmatprep.subr.bf16.mxu0 %v4706_v15  ;;  %vm3512_vm11 = vmneg %vm1251_vm8 }
 0x1fa   :  { %vm6081_vm12 = vmpackc.low %vm3512_vm11, %vm3512_vm11 }
 0x1fc   :  { %4709 = vmatpush1.bf16.msra.mxu0 %v4708_v13 }
 0x1ff   :  { %3362 = vmatmul.mubr.msk.f32.vlgmr.msra.gmra.mrb[4].mxu0 %vm129_vm9, %v301_v20 }
 0x200   :  { %391 = vmatprep.mubr.f32.mxu0 %v5558_v6 }
 0x202   :  { %v313_v50 = vpop.permute.xlu0 %312 }
 0x203   :  { %3363 = vmatmul.mubr.msk.f32.gmra.mrb[6].mxu0 %vm129_vm9, %v302_v49  ;;  %v308_v39 = vpop.permute.xlu1 %307 }
 0x204   :  { %582 = vmatprep.mubr.f32.mxu0 %v5558_v6 }
 0x206   :  { %v408_v55 = vpop.permute.xlu0 %407 }
 0x207   :  { %v403_v51 = vpop.permute.xlu1 %402 }
 0x20a   :  { %v424_v9 = vpop.permute.xlu0 %423 }
 0x20b   :  { %v419_v58 = vpop.permute.xlu1 %418 }
 0x2d2   :  { %v387_v52 = vpop.f32.mrb[4].mxu0 }
 0x2d3   :  { %v388_v53 = vadd.f32 %v387_v52, %v308_v39  ;;  %v389_v54 = vpop.f32.mrb[5].mxu0 }
 0x2d4   :  { %v390_v56 = vadd.f32 %v389_v54, %v308_v39 }
 0x2d5   :  { %v410_v57 = vmul.f32 %v403_v51, %v388_v53 }
 0x2d6   :  { %v411_v59 = vmul.f32 %v403_v51, %v390_v56  ;;  %v393_v60 = vpop.f32.mrb[6].mxu0 }
 0x2d7   :  { %v426_v61 = vadd.f32 %v419_v58, %v410_v57  ;;  %v394_v62 = vadd.f32 %v393_v60, %v313_v50  ;;  %v395_v63 = vpop.f32.mrb[7].mxu0  ;;  %v3364_v57 = vld [vmem:[%s7323_s1 + $0x10] sm:$0xff] }
 0x2d8   :  { %v427_v3 = vadd.f32 %v419_v58, %v411_v59  ;;  %v396_v5 = vadd.f32 %v395_v63, %v313_v50  ;;  %v3365_v58 = vld [vmem:[%s7323_s1 + $0x18] sm:$0xff] }
 0x2d9   :  { %v430_v7 = vmax.f32 %v426_v61, 0.0  ;;  %v412_v8 = vmul.f32 %v408_v55, %v394_v62 }
 0x2da   :  { %v431_v10 = vmax.f32 %v427_v3, 0.0  ;;  %v413_v11 = vmul.f32 %v408_v55, %v396_v5 }
 0x2db   :  { %v428_v12 = vadd.f32 %v424_v9, %v412_v8  ;;  %v434_v14 = vadd.f32 %v430_v7, %v5671_v2 }
 0x2dc   :  { %v429_v13 = vadd.f32 %v424_v9, %v413_v11  ;;  %v435_v16 = vadd.f32 %v431_v10, %v5661_v0  ;;  %v3367_v0 = vld [vmem:[%s7342_s23 + $0x18] sm:$0xff] }
 0x2dd   :  { %v432_v15 = vmax.f32 %v428_v12, 0.0  ;;  %v5796_v21 = vmax.f32 %v434_v14, 0.0 }
 0x2de   :  { %v433_v17 = vmax.f32 %v429_v13, 0.0  ;;  %v5800_v23 = vmax.f32 %v435_v16, 0.0 }
 0x2df   :  { %v436_v18 = vadd.f32 %v432_v15, %v5678_v4  ;;  %v3395_v4 = vld [vmem:[%s7321_s3 + $0x18] sm:$0xff] }
 0x2e0   :  { %v437_v19 = vadd.f32 %v433_v17, %v5666_v1  ;;  %v3366_v1 = vld [vmem:[%s7342_s23 + $0x10] sm:$0xff] }
 0x2e1   :  { %v5798_v22 = vmax.f32 %v436_v18, 0.0 }
 0x2e2   :  { %v5802_v24 = vmax.f32 %v437_v19, 0.0 }
 0x2e3   :  { %v5371_v25 = vpack.i.bf16 %v5798_v22, %v5796_v21  ;;  %v4730_v56 = vpack.c.bf16 %v5798_v22, %v5796_v21 }
 0x2e4   :  { %v5381_v2 = vpack.i.bf16 %v5802_v24, %v5800_v23  ;;  %v4728_v55 = vpack.c.bf16 %v5802_v24, %v5800_v23 }
 0x2e5   :  { %5372 = vrot.lane.b32.xlu0 %v5371_v25, %s5560_s0 }
 0x2e6   :  { %5382 = vrot.lane.b32.xlu1 %v5381_v2, %s5560_s0 }
 0x2e9   :  { %5377 = vrot.lane.b32.xlu0 %v5371_v25, %s5561_s30 }
 0x2ea   :  { %5387 = vrot.lane.b32.xlu1 %v5381_v2, %s5561_s30 }
 0x2ed   :  { %5397 = vrot.lane.b32.xlu0 %v5371_v25, %s5556_s2 }
 0x2ee   :  { %5392 = vrot.lane.b32.xlu1 %v5381_v2, %s5556_s2 }
 0x2f1   :  { %509 = vperm.xlu0 %5339, %v3367_v0  }
 0x2f2   :  { %504 = vperm.xlu1 %5340, %v3366_v1  }
 0x2f5   :  { %605 = vperm.xlu0 %5339, %v3395_v4  }
 0x2f6   :  { %600 = vperm.xlu1 %5340, %v3394_v26  }
 0x2f9   :  { %622 = vperm.xlu0 %5339, %v3397_v27  }
 0x2fa   :  { %617 = vperm.xlu1 %5340, %v3396_v28  }
 0x357   :  { %v5373_v29 = vpop.permute.xlu0 %5372 }
 0x358   :  { %v5375_v31 = vunpack.i.h.bf16 %v5373_v29  ;;  %v5374_v32 = vunpack.i.l.bf16 %v5373_v29  ;;  %v5383_v33 = vpop.permute.xlu1 %5382 }
 0x359   :  { %v5385_v34 = vunpack.i.h.bf16 %v5383_v33  ;;  %v5384_v35 = vunpack.i.l.bf16 %v5383_v33  ;;  %v3400_v33 = vld [vmem:[%s7324_s6 + $0x10] sm:$0xff] }
 0x35a   :  { %v4713_v40 = vpack.c.bf16 %v5375_v31, %v5374_v32  ;;  %v3401_v32 = vld [vmem:[%s7324_s6 + $0x18] sm:$0xff] }
 0x35b   :  { %v4710_v37 = vpack.c.bf16 %v5385_v34, %v5384_v35  ;;  %v5378_v38 = vpop.permute.xlu0 %5377  ;;  %v3429_v34 = vld [vmem:[%s7325_s7 + $0x18] sm:$0xff]  ;;  %v3428_v35 = vld [vmem:[%s7325_s7 + $0x10] sm:$0xff] }
 0x35c   :  { %v5380_v41 = vunpack.i.h.bf16 %v5378_v38  ;;  %v5379_v42 = vunpack.i.l.bf16 %v5378_v38  ;;  %v5388_v43 = vpop.permute.xlu1 %5387  ;;  %v3430_v38 = vld [vmem:[%s7326_s8 + $0x10] sm:$0xff] }
 0x35d   :  { %v5390_v44 = vunpack.i.h.bf16 %v5388_v43  ;;  %v5389_v45 = vunpack.i.l.bf16 %v5388_v43  ;;  %4712 = vmatprep.subr.msk.bf16.mxu0 %vm5832_vm13, %v4710_v37  ;;  %v3431_v37 = vld [vmem:[%s7326_s8 + $0x18] sm:$0xff] }
 0x35e   :  { %4715 = vmatpush1.bf16.msk.msra.mxu0 %vm5832_vm13, %v4713_v40  ;;  %v4719_v20 = vpack.c.bf16 %v5380_v41, %v5379_v42 }
 0x35f   :  { %v4716_v47 = vpack.c.bf16 %v5390_v44, %v5389_v45  ;;  %v5398_v48 = vpop.permute.xlu0 %5397 }
 0x360   :  { %v5400_v49 = vunpack.i.h.bf16 %v5398_v48  ;;  %v5399_v39 = vunpack.i.l.bf16 %v5398_v48  ;;  %v5393_v50 = vpop.permute.xlu1 %5392 }
 0x361   :  { %v5395_v51 = vunpack.i.h.bf16 %v5393_v50  ;;  %v5394_v52 = vunpack.i.l.bf16 %v5393_v50  ;;  %4718 = vmatprep.subr.msk.bf16.mxu0 %vm5840_vm15, %v4716_v47 }
 0x362   :  { %4721 = vmatpush1.bf16.msk.msra.mxu0 %vm5840_vm15, %v4719_v20  ;;  %v4725_v54 = vpack.c.bf16 %v5400_v49, %v5399_v39 }
 0x363   :  { %v4722_v53 = vpack.c.bf16 %v5395_v51, %v5394_v52 }
 0x365   :  { %4724 = vmatprep.subr.msk.bf16.mxu0 %vm5714_vm6, %v4722_v53 }
 0x366   :  { %4727 = vmatpush1.bf16.msk.msra.mxu0 %vm5714_vm6, %v4725_v54 }
 0x367   :  { %4729 = vmatprep.subr.bf16.mxu0 %v4728_v55 }
 0x36a   :  { %4731 = vmatpush1.bf16.msra.mxu0 %v4730_v56 }
 0x36d   :  { %3392 = vmatmul.mubr.msk.f32.vlgmr.msra.gmra.mrb[8].mxu0 %vm129_vm9, %v3364_v57 }
 0x36e   :  { %588 = vmatprep.mubr.f32.mxu0 %v5558_v6 }
 0x370   :  { %v510_v60 = vpop.permute.xlu0 %509 }
 0x371   :  { %3393 = vmatmul.mubr.msk.f32.gmra.mrb[10].mxu0 %vm129_vm9, %v3365_v58  ;;  %v505_v59 = vpop.permute.xlu1 %504 }
 0x372   :  { %970 = vmatprep.mubr.f32.mxu0 %v5558_v6 }
 0x374   :  { %v606_v5 = vpop.permute.xlu0 %605 }
 0x375   :  { %v601_v61 = vpop.permute.xlu1 %600 }
 0x378   :  { %v623_v17 = vpop.permute.xlu0 %622 }
 0x379   :  { %v618_v13 = vpop.permute.xlu1 %617 }
 0x440   :  { %v584_v62 = vpop.f32.mrb[8].mxu0 }
 0x441   :  { %v585_v63 = vadd.f32 %v584_v62, %v505_v59  ;;  %v586_v3 = vpop.f32.mrb[9].mxu0 }
 0x442   :  { %v587_v7 = vadd.f32 %v586_v3, %v505_v59 }
 0x443   :  { %v608_v8 = vmul.f32 %v601_v61, %v585_v63  ;;  %v3399_v63 = vld [vmem:[%s7327_s5 + $0x18] sm:$0xff] }
 0x444   :  { %v609_v9 = vmul.f32 %v601_v61, %v587_v7  ;;  %v590_v10 = vpop.f32.mrb[10].mxu0 }
 0x445   :  { %v591_v11 = vadd.f32 %v590_v10, %v510_v60  ;;  %v592_v12 = vpop.f32.mrb[11].mxu0  ;;  %v625_v15 = vadd.f32 %v618_v13, %v608_v8 }
 0x446   :  { %v593_v14 = vadd.f32 %v592_v12, %v510_v60  ;;  %v626_v18 = vadd.f32 %v618_v13, %v609_v9 }
 0x447   :  { %v610_v16 = vmul.f32 %v606_v5, %v591_v11  ;;  %v629_v0 = vmax.f32 %v625_v15, 0.0 }
 0x448   :  { %v611_v19 = vmul.f32 %v606_v5, %v593_v14  ;;  %v630_v4 = vmax.f32 %v626_v18, 0.0 }
 0x449   :  { %v627_v25 = vadd.f32 %v623_v17, %v610_v16 }
 0x44a   :  { %v628_v2 = vadd.f32 %v623_v17, %v611_v19 }
 0x44b   :  { %v631_v1 = vmax.f32 %v627_v25, 0.0 }
 0x44c   :  { %v632_v26 = vmax.f32 %v628_v2, 0.0 }
 0x44d   :  { %v5401_v27 = vpack.i.bf16 %v631_v1, %v629_v0  ;;  %v4752_v28 = vpack.c.bf16 %v631_v1, %v629_v0 }
 0x44e   :  { %v5411_v29 = vpack.i.bf16 %v632_v26, %v630_v4  ;;  %v4750_v31 = vpack.c.bf16 %v632_v26, %v630_v4 }
 0x44f   :  { %5402 = vrot.lane.b32.xlu0 %v5401_v27, %s5560_s0 }
 0x450   :  { %5412 = vrot.lane.b32.xlu1 %v5411_v29, %s5560_s0 }
 0x453   :  { %5407 = vrot.lane.b32.xlu0 %v5401_v27, %s5561_s30 }
 0x454   :  { %5417 = vrot.lane.b32.xlu1 %v5411_v29, %s5561_s30 }
 0x457   :  { %5427 = vrot.lane.b32.xlu0 %v5401_v27, %s5556_s2 }
 0x458   :  { %5422 = vrot.lane.b32.xlu1 %v5411_v29, %s5556_s2 }
 0x45b   :  { %698 = vperm.xlu0 %5339, %v3401_v32  }
 0x45c   :  { %693 = vperm.xlu1 %5340, %v3400_v33  }
 0x45f   :  { %794 = vperm.xlu0 %5339, %v3429_v34  }
 0x460   :  { %789 = vperm.xlu1 %5340, %v3428_v35  }
 0x463   :  { %811 = vperm.xlu0 %5339, %v3431_v37  }
 0x464   :  { %806 = vperm.xlu1 %5340, %v3430_v38  }
 0x4c1   :  { %v5403_v40 = vpop.permute.xlu0 %5402 }
 0x4c2   :  { %v5405_v41 = vunpack.i.h.bf16 %v5403_v40  ;;  %v5404_v42 = vunpack.i.l.bf16 %v5403_v40  ;;  %v5413_v43 = vpop.permute.xlu1 %5412 }
 0x4c3   :  { %v5415_v44 = vunpack.i.h.bf16 %v5413_v43  ;;  %v5414_v45 = vunpack.i.l.bf16 %v5413_v43  ;;  %v3462_v43 = vld [vmem:[%s7321_s3 + $0x20] sm:$0xff] }
 0x4c4   :  { %v4735_v20 = vpack.c.bf16 %v5405_v41, %v5404_v42 }
 0x4c5   :  { %v5408_v47 = vpop.permute.xlu0 %5407  ;;  %v4732_v48 = vpack.c.bf16 %v5415_v44, %v5414_v45  ;;  %v3465_v44 = vld [vmem:[%s7322_s4 + $0x28] sm:$0xff]  ;;  %v3464_v45 = vld [vmem:[%s7322_s4 + $0x20] sm:$0xff] }
 0x4c6   :  { %v5410_v49 = vunpack.i.h.bf16 %v5408_v47  ;;  %v5409_v39 = vunpack.i.l.bf16 %v5408_v47  ;;  %v5418_v50 = vpop.permute.xlu1 %5417 }
 0x4c7   :  { %v5420_v51 = vunpack.i.h.bf16 %v5418_v50  ;;  %v5419_v52 = vunpack.i.l.bf16 %v5418_v50  ;;  %4734 = vmatprep.subr.msk.bf16.mxu1 %vm5832_vm13, %v4732_v48 }
 0x4c8   :  { %4737 = vmatpush1.bf16.msk.msra.mxu1 %vm5832_vm13, %v4735_v20  ;;  %v4741_v55 = vpack.c.bf16 %v5410_v49, %v5409_v39  ;;  %vm3306_vm13 = vcmask 24576  }
 0x4c9   :  { %v4738_v53 = vpack.c.bf16 %v5420_v51, %v5419_v52  ;;  %v5428_v54 = vpop.permute.xlu0 %5427  ;;  %v3466_v51 = vld [vmem:[%s7327_s5 + $0x20] sm:$0xff] }
 0x4ca   :  { %v5430_v56 = vunpack.i.h.bf16 %v5428_v54  ;;  %v5429_v57 = vunpack.i.l.bf16 %v5428_v54  ;;  %v5423_v58 = vpop.permute.xlu1 %5422 }
 0x4cb   :  { %v5425_v59 = vunpack.i.h.bf16 %v5423_v58  ;;  %v5424_v60 = vunpack.i.l.bf16 %v5423_v58  ;;  %4740 = vmatprep.subr.msk.bf16.mxu1 %vm5840_vm15, %v4738_v53 }
 0x4cc   :  { %4743 = vmatpush1.bf16.msk.msra.mxu1 %vm5840_vm15, %v4741_v55  ;;  %v4747_v62 = vpack.c.bf16 %v5430_v56, %v5429_v57 }
 0x4cd   :  { %v4744_v61 = vpack.c.bf16 %v5425_v59, %v5424_v60 }
 0x4cf   :  { %4746 = vmatprep.subr.msk.bf16.mxu1 %vm5714_vm6, %v4744_v61 }
 0x4d0   :  { %4749 = vmatpush1.bf16.msk.msra.mxu1 %vm5714_vm6, %v4747_v62  ;;  %vm1234_vm6 = vcmask 195584  }
 0x4d1   :  { %4751 = vmatprep.subr.bf16.mxu1 %v4750_v31  ;;  %vm3504_vm7 = vmneg %vm1234_vm6 }
 0x4d2   :  { %vm6072_vm10 = vmpackc.low %vm3504_vm7, %vm3504_vm7 }
 0x4d4   :  { %4753 = vmatpush1.bf16.msra.mxu1 %v4752_v28 }
 0x4d7   :  { %3426 = vmatmul.mubr.msk.f32.vlgmr.msra.gmra.mrb[0].mxu1 %vm129_vm9, %v3398_v36 }
 0x4d8   :  { %777 = vmatprep.mubr.f32.mxu1 %v5558_v6 }
 0x4da   :  { %v699_v3 = vpop.permute.xlu0 %698 }
 0x4db   :  { %3427 = vmatmul.mubr.msk.f32.gmra.mrb[2].mxu1 %vm129_vm9, %v3399_v63  ;;  %v694_v30 = vpop.permute.xlu1 %693 }
 0x4dc   :  { %1159 = vmatprep.mubr.f32.mxu1 %v5558_v6 }
 0x4de   :  { %v795_v10 = vpop.permute.xlu0 %794 }
 0x4df   :  { %v790_v5 = vpop.permute.xlu1 %789 }
 0x4e2   :  { %v812_v1 = vpop.permute.xlu0 %811 }
 0x4e3   :  { %v807_v13 = vpop.permute.xlu1 %806 }
 0x5aa   :  { %v773_v7 = vpop.f32.mrb[0].mxu1 }
 0x5ab   :  { %v774_v8 = vadd.f32 %v773_v7, %v694_v30  ;;  %v775_v9 = vpop.f32.mrb[1].mxu1 }
 0x5ac   :  { %v776_v11 = vadd.f32 %v775_v9, %v694_v30 }
 0x5ad   :  { %v797_v12 = vmul.f32 %v790_v5, %v774_v8 }
 0x5ae   :  { %v798_v14 = vmul.f32 %v790_v5, %v776_v11  ;;  %v779_v15 = vpop.f32.mrb[2].mxu1 }
 0x5af   :  { %v814_v16 = vadd.f32 %v807_v13, %v797_v12  ;;  %v780_v17 = vadd.f32 %v779_v15, %v699_v3  ;;  %v781_v18 = vpop.f32.mrb[3].mxu1  ;;  %v3432_v12 = vld [vmem:[%s7323_s1 + $0x20] sm:$0xff] }
 0x5b0   :  { %v815_v19 = vadd.f32 %v807_v13, %v798_v14  ;;  %v782_v25 = vadd.f32 %v781_v18, %v699_v3  ;;  %v3433_v13 = vld [vmem:[%s7323_s1 + $0x28] sm:$0xff] }
 0x5b1   :  { %v818_v2 = vmax.f32 %v814_v16, 0.0  ;;  %v799_v0 = vmul.f32 %v795_v10, %v780_v17 }
 0x5b2   :  { %v819_v4 = vmax.f32 %v815_v19, 0.0  ;;  %v800_v26 = vmul.f32 %v795_v10, %v782_v25 }
 0x5b3   :  { %v816_v27 = vadd.f32 %v812_v1, %v799_v0  ;;  %v822_v29 = vadd.f32 %v818_v2, %v5796_v21 }
 0x5b4   :  { %v817_v28 = vadd.f32 %v812_v1, %v800_v26  ;;  %v823_v32 = vadd.f32 %v819_v4, %v5800_v23  ;;  %v3434_v23 = vld [vmem:[%s7342_s23 + $0x20] sm:$0xff] }
 0x5b5   :  { %v820_v31 = vmax.f32 %v816_v27, 0.0  ;;  %v5916_v37 = vmax.f32 %v822_v29, 0.0 }
 0x5b6   :  { %v821_v33 = vmax.f32 %v817_v28, 0.0  ;;  %v5920_v40 = vmax.f32 %v823_v32, 0.0 }
 0x5b7   :  { %v824_v34 = vadd.f32 %v820_v31, %v5798_v22  ;;  %v3435_v22 = vld [vmem:[%s7342_s23 + $0x28] sm:$0xff] }
 0x5b8   :  { %v825_v35 = vadd.f32 %v821_v33, %v5802_v24  ;;  %v3463_v24 = vld [vmem:[%s7321_s3 + $0x28] sm:$0xff] }
 0x5b9   :  { %v5918_v38 = vmax.f32 %v824_v34, 0.0 }
 0x5ba   :  { %v5922_v41 = vmax.f32 %v825_v35, 0.0 }
 0x5bb   :  { %v5431_v42 = vpack.i.bf16 %v5918_v38, %v5916_v37  ;;  %v4774_v11 = vpack.c.bf16 %v5918_v38, %v5916_v37 }
 0x5bc   :  { %v5441_v21 = vpack.i.bf16 %v5922_v41, %v5920_v40  ;;  %v4772_v10 = vpack.c.bf16 %v5922_v41, %v5920_v40 }
 0x5bd   :  { %5432 = vrot.lane.b32.xlu0 %v5431_v42, %s5562_s27 }
 0x5be   :  { %5442 = vrot.lane.b32.xlu1 %v5441_v21, %s5562_s27 }
 0x5c1   :  { %5437 = vrot.lane.b32.xlu0 %v5431_v42, %s5563_s28 }
 0x5c2   :  { %5447 = vrot.lane.b32.xlu1 %v5441_v21, %s5563_s28 }
 0x5c5   :  { %5457 = vrot.lane.b32.xlu0 %v5431_v42, %s5561_s30 }
 0x5c6   :  { %5452 = vrot.lane.b32.xlu1 %v5441_v21, %s5561_s30 }
 0x5c9   :  { %897 = vperm.xlu0 %5339, %v3435_v22  }
 0x5ca   :  { %892 = vperm.xlu1 %5340, %v3434_v23  }
 0x5cd   :  { %993 = vperm.xlu0 %5339, %v3463_v24  }
 0x5ce   :  { %988 = vperm.xlu1 %5340, %v3462_v43  }
 0x5d1   :  { %1010 = vperm.xlu0 %5339, %v3465_v44  }
 0x5d2   :  { %1005 = vperm.xlu1 %5340, %v3464_v45  }
 0x62f   :  { %v5433_v47 = vpop.permute.xlu0 %5432 }
 0x630   :  { %v5435_v48 = vunpack.i.h.bf16 %v5433_v47  ;;  %v5434_v20 = vunpack.i.l.bf16 %v5433_v47  ;;  %v5443_v49 = vpop.permute.xlu1 %5442 }
 0x631   :  { %v5445_v39 = vunpack.i.h.bf16 %v5443_v49  ;;  %v5444_v50 = vunpack.i.l.bf16 %v5443_v49  ;;  %v3468_v49 = vld [vmem:[%s7324_s6 + $0x20] sm:$0xff] }
 0x632   :  { %v4757_v54 = vpack.c.bf16 %v5435_v48, %v5434_v20  ;;  %v3469_v20 = vld [vmem:[%s7324_s6 + $0x28] sm:$0xff] }
 0x633   :  { %v4754_v52 = vpack.c.bf16 %v5445_v39, %v5444_v50  ;;  %v5438_v53 = vpop.permute.xlu0 %5437  ;;  %v3497_v39 = vld [vmem:[%s7325_s7 + $0x28] sm:$0xff]  ;;  %v3496_v50 = vld [vmem:[%s7325_s7 + $0x20] sm:$0xff] }
 0x634   :  { %v5440_v55 = vunpack.i.h.bf16 %v5438_v53  ;;  %v5439_v56 = vunpack.i.l.bf16 %v5438_v53  ;;  %v5448_v57 = vpop.permute.xlu1 %5447  ;;  %v3498_v53 = vld [vmem:[%s7326_s8 + $0x20] sm:$0xff] }
 0x635   :  { %v5450_v58 = vunpack.i.h.bf16 %v5448_v57  ;;  %v5449_v59 = vunpack.i.l.bf16 %v5448_v57  ;;  %4756 = vmatprep.subr.msk.bf16.mxu0 %vm5952_vm3, %v4754_v52  ;;  %v3499_v52 = vld [vmem:[%s7326_s8 + $0x28] sm:$0xff] }
 0x636   :  { %4759 = vmatpush1.bf16.msk.msra.mxu0 %vm5952_vm3, %v4757_v54  ;;  %v4763_v36 = vpack.c.bf16 %v5440_v55, %v5439_v56 }
 0x637   :  { %v4760_v61 = vpack.c.bf16 %v5450_v58, %v5449_v59  ;;  %v5458_v62 = vpop.permute.xlu0 %5457 }
 0x638   :  { %v5460_v63 = vunpack.i.h.bf16 %v5458_v62  ;;  %v5459_v30 = vunpack.i.l.bf16 %v5458_v62  ;;  %v5453_v3 = vpop.permute.xlu1 %5452 }
 0x639   :  { %v5455_v5 = vunpack.i.h.bf16 %v5453_v3  ;;  %v5454_v7 = vunpack.i.l.bf16 %v5453_v3  ;;  %4762 = vmatprep.subr.msk.bf16.mxu0 %vm5960_vm5, %v4760_v61 }
 0x63a   :  { %4765 = vmatpush1.bf16.msk.msra.mxu0 %vm5960_vm5, %v4763_v36  ;;  %v4769_v9 = vpack.c.bf16 %v5460_v63, %v5459_v30 }
 0x63b   :  { %v4766_v8 = vpack.c.bf16 %v5455_v5, %v5454_v7 }
 0x63d   :  { %4768 = vmatprep.subr.msk.bf16.mxu0 %vm5840_vm15, %v4766_v8 }
 0x63e   :  { %4771 = vmatpush1.bf16.msk.msra.mxu0 %vm5840_vm15, %v4769_v9 }
 0x63f   :  { %4773 = vmatprep.subr.bf16.mxu0 %v4772_v10 }
 0x642   :  { %4775 = vmatpush1.bf16.msra.mxu0 %v4774_v11 }
 0x645   :  { %3460 = vmatmul.mubr.msk.f32.vlgmr.msra.gmra.mrb[12].mxu0 %vm129_vm9, %v3432_v12 }
 0x646   :  { %976 = vmatprep.mubr.f32.mxu0 %v5558_v6 }
 0x648   :  { %v898_v15 = vpop.permute.xlu0 %897 }
 0x649   :  { %3461 = vmatmul.mubr.msk.f32.gmra.mrb[14].mxu0 %vm129_vm9, %v3433_v13  ;;  %v893_v14 = vpop.permute.xlu1 %892 }
 0x64a   :  { %1358 = vmatprep.mubr.f32.mxu0 %v5558_v6 }
 0x64c   :  { %v994_v25 = vpop.permute.xlu0 %993 }
 0x64d   :  { %v989_v16 = vpop.permute.xlu1 %988 }
 0x650   :  { %v1011_v33 = vpop.permute.xlu0 %1010 }
 0x651   :  { %v1006_v28 = vpop.permute.xlu1 %1005 }
 0x718   :  { %v972_v17 = vpop.f32.mrb[12].mxu0 }
 0x719   :  { %v973_v18 = vadd.f32 %v972_v17, %v893_v14  ;;  %v974_v19 = vpop.f32.mrb[13].mxu0 }
 0x71a   :  { %v975_v2 = vadd.f32 %v974_v19, %v893_v14 }
 0x71b   :  { %v996_v0 = vmul.f32 %v989_v16, %v973_v18  ;;  %v3467_v18 = vld [vmem:[%s7327_s5 + $0x28] sm:$0xff] }
 0x71c   :  { %v997_v1 = vmul.f32 %v989_v16, %v975_v2  ;;  %v978_v4 = vpop.f32.mrb[14].mxu0 }
 0x71d   :  { %v979_v26 = vadd.f32 %v978_v4, %v898_v15  ;;  %v980_v27 = vpop.f32.mrb[15].mxu0  ;;  %v1013_v31 = vadd.f32 %v1006_v28, %v996_v0 }
 0x71e   :  { %v981_v29 = vadd.f32 %v980_v27, %v898_v15  ;;  %v1014_v34 = vadd.f32 %v1006_v28, %v997_v1 }
 0x71f   :  { %v998_v32 = vmul.f32 %v994_v25, %v979_v26  ;;  %v1017_v22 = vmax.f32 %v1013_v31, 0.0 }
 0x720   :  { %v999_v35 = vmul.f32 %v994_v25, %v981_v29  ;;  %v1018_v24 = vmax.f32 %v1014_v34, 0.0 }
 0x721   :  { %v1015_v42 = vadd.f32 %v1011_v33, %v998_v32 }
 0x722   :  { %v1016_v21 = vadd.f32 %v1011_v33, %v999_v35 }
 0x723   :  { %v1019_v23 = vmax.f32 %v1015_v42, 0.0 }
 0x724   :  { %v1020_v43 = vmax.f32 %v1016_v21, 0.0 }
 0x725   :  { %v5461_v44 = vpack.i.bf16 %v1019_v23, %v1017_v22  ;;  %v4796_v45 = vpack.c.bf16 %v1019_v23, %v1017_v22 }
 0x726   :  { %v5471_v47 = vpack.i.bf16 %v1020_v43, %v1018_v24  ;;  %v4794_v48 = vpack.c.bf16 %v1020_v43, %v1018_v24 }
 0x727   :  { %5462 = vrot.lane.b32.xlu0 %v5461_v44, %s5562_s27 }
 0x728   :  { %5472 = vrot.lane.b32.xlu1 %v5471_v47, %s5562_s27 }
 0x72b   :  { %5467 = vrot.lane.b32.xlu0 %v5461_v44, %s5563_s28 }
 0x72c   :  { %5477 = vrot.lane.b32.xlu1 %v5471_v47, %s5563_s28 }
 0x72f   :  { %5487 = vrot.lane.b32.xlu0 %v5461_v44, %s5561_s30 }
 0x730   :  { %5482 = vrot.lane.b32.xlu1 %v5471_v47, %s5561_s30 }
 0x733   :  { %1086 = vperm.xlu0 %5339, %v3469_v20  }
 0x734   :  { %1081 = vperm.xlu1 %5340, %v3468_v49  }
 0x737   :  { %1182 = vperm.xlu0 %5339, %v3497_v39  }
 0x738   :  { %1177 = vperm.xlu1 %5340, %v3496_v50  }
 0x73b   :  { %1199 = vperm.xlu0 %5339, %v3499_v52  }
 0x73c   :  { %1194 = vperm.xlu1 %5340, %v3498_v53  }
 0x799   :  { %v5463_v54 = vpop.permute.xlu0 %5462 }
 0x79a   :  { %v5465_v55 = vunpack.i.h.bf16 %v5463_v54  ;;  %v5464_v56 = vunpack.i.l.bf16 %v5463_v54  ;;  %v5473_v57 = vpop.permute.xlu1 %5472 }
 0x79b   :  { %v5475_v58 = vunpack.i.h.bf16 %v5473_v57  ;;  %v5474_v59 = vunpack.i.l.bf16 %v5473_v57  ;;  %v3530_v57 = vld [vmem:[%s7321_s3 + $0x30] sm:$0xff] }
 0x79c   :  { %v4779_v36 = vpack.c.bf16 %v5465_v55, %v5464_v56 }
 0x79d   :  { %v4776_v61 = vpack.c.bf16 %v5475_v58, %v5474_v59  ;;  %v5468_v62 = vpop.permute.xlu0 %5467  ;;  %v3533_v58 = vld [vmem:[%s7322_s4 + $0x38] sm:$0xff]  ;;  %v3532_v59 = vld [vmem:[%s7322_s4 + $0x30] sm:$0xff] }
 0x79e   :  { %v5470_v63 = vunpack.i.h.bf16 %v5468_v62  ;;  %v5469_v30 = vunpack.i.l.bf16 %v5468_v62  ;;  %v5478_v3 = vpop.permute.xlu1 %5477 }
 0x79f   :  { %v5480_v5 = vunpack.i.h.bf16 %v5478_v3  ;;  %v5479_v7 = vunpack.i.l.bf16 %v5478_v3  ;;  %4778 = vmatprep.subr.msk.bf16.mxu1 %vm5952_vm3, %v4776_v61 }
 0x7a0   :  { %4781 = vmatpush1.bf16.msk.msra.mxu1 %vm5952_vm3, %v4779_v36  ;;  %v4785_v10 = vpack.c.bf16 %v5470_v63, %v5469_v30 }
 0x7a1   :  { %v4782_v8 = vpack.c.bf16 %v5480_v5, %v5479_v7  ;;  %v5488_v9 = vpop.permute.xlu0 %5487  ;;  %v3534_v5 = vld [vmem:[%s7327_s5 + $0x30] sm:$0xff] }
 0x7a2   :  { %v5490_v11 = vunpack.i.h.bf16 %v5488_v9  ;;  %v5489_v12 = vunpack.i.l.bf16 %v5488_v9  ;;  %v5483_v13 = vpop.permute.xlu1 %5482 }
 0x7a3   :  { %v5485_v14 = vunpack.i.h.bf16 %v5483_v13  ;;  %v5484_v15 = vunpack.i.l.bf16 %v5483_v13  ;;  %4784 = vmatprep.subr.msk.bf16.mxu1 %vm5960_vm5, %v4782_v8 }
 0x7a4   :  { %4787 = vmatpush1.bf16.msk.msra.mxu1 %vm5960_vm5, %v4785_v10  ;;  %v4791_v17 = vpack.c.bf16 %v5490_v11, %v5489_v12 }
 0x7a5   :  { %v4788_v16 = vpack.c.bf16 %v5485_v14, %v5484_v15  ;;  %v3535_v15 = vld [vmem:[%s7327_s5 + $0x38] sm:$0xff] }
 0x7a7   :  { %4790 = vmatprep.subr.msk.bf16.mxu1 %vm5840_vm15, %v4788_v16 }
 0x7a8   :  { %4793 = vmatpush1.bf16.msk.msra.mxu1 %vm5840_vm15, %v4791_v17 }
 0x7a9   :  { %4795 = vmatprep.subr.bf16.mxu1 %v4794_v48 }
 0x7ac   :  { %4797 = vmatpush1.bf16.msra.mxu1 %v4796_v45 }
 0x7af   :  { %3494 = vmatmul.mubr.msk.f32.vlgmr.msra.gmra.mrb[4].mxu1 %vm129_vm9, %v3466_v51 }
 0x7b0   :  { %1165 = vmatprep.mubr.f32.mxu1 %v5558_v6 }
 0x7b2   :  { %v1087_v19 = vpop.permute.xlu0 %1086 }
 0x7b3   :  { %3495 = vmatmul.mubr.msk.f32.gmra.mrb[6].mxu1 %vm129_vm9, %v3467_v18  ;;  %v1082_v46 = vpop.permute.xlu1 %1081 }
 0x7b4   :  { %1547 = vmatprep.mubr.f32.mxu1 %v5558_v6 }
 0x7b6   :  { %v1183_v4 = vpop.permute.xlu0 %1182 }
 0x7b7   :  { %v1178_v25 = vpop.permute.xlu1 %1177 }
 0x7ba   :  { %v1200_v23 = vpop.permute.xlu0 %1199 }
 0x7bb   :  { %v1195_v28 = vpop.permute.xlu1 %1194 }
 0x882   :  { %v1161_v2 = vpop.f32.mrb[4].mxu1 }
 0x883   :  { %v1162_v0 = vadd.f32 %v1161_v2, %v1082_v46  ;;  %v1163_v1 = vpop.f32.mrb[5].mxu1 }
 0x884   :  { %v1164_v26 = vadd.f32 %v1163_v1, %v1082_v46 }
 0x885   :  { %v1185_v27 = vmul.f32 %v1178_v25, %v1162_v0 }
 0x886   :  { %v1186_v29 = vmul.f32 %v1178_v25, %v1164_v26  ;;  %v1167_v31 = vpop.f32.mrb[6].mxu1 }
 0x887   :  { %v1202_v32 = vadd.f32 %v1195_v28, %v1185_v27  ;;  %v1168_v33 = vadd.f32 %v1167_v31, %v1087_v19  ;;  %v1169_v34 = vpop.f32.mrb[7].mxu1  ;;  %v3500_v27 = vld [vmem:[%s7323_s1 + $0x30] sm:$0xff] }
 0x888   :  { %v1203_v35 = vadd.f32 %v1195_v28, %v1186_v29  ;;  %v1170_v42 = vadd.f32 %v1169_v34, %v1087_v19  ;;  %v3501_v28 = vld [vmem:[%s7323_s1 + $0x38] sm:$0xff] }
 0x889   :  { %v1206_v21 = vmax.f32 %v1202_v32, 0.0  ;;  %v1187_v22 = vmul.f32 %v1183_v4, %v1168_v33 }
 0x88a   :  { %v1207_v24 = vmax.f32 %v1203_v35, 0.0  ;;  %v1188_v43 = vmul.f32 %v1183_v4, %v1170_v42 }
 0x88b   :  { %v1204_v44 = vadd.f32 %v1200_v23, %v1187_v22  ;;  %v1210_v47 = vadd.f32 %v1206_v21, %v5916_v37 }
 0x88c   :  { %v1205_v45 = vadd.f32 %v1200_v23, %v1188_v43  ;;  %v1211_v20 = vadd.f32 %v1207_v24, %v5920_v40  ;;  %v3502_v40 = vld [vmem:[%s7342_s23 + $0x30] sm:$0xff] }
 0x88d   :  { %v1208_v48 = vmax.f32 %v1204_v44, 0.0  ;;  %v6036_v52 = vmax.f32 %v1210_v47, 0.0 }
 0x88e   :  { %v1209_v49 = vmax.f32 %v1205_v45, 0.0  ;;  %v6040_v54 = vmax.f32 %v1211_v20, 0.0 }
 0x88f   :  { %v1212_v39 = vadd.f32 %v1208_v48, %v5918_v38  ;;  %v3503_v38 = vld [vmem:[%s7342_s23 + $0x38] sm:$0xff] }
 0x890   :  { %v1213_v50 = vadd.f32 %v1209_v49, %v5922_v41  ;;  %v3531_v41 = vld [vmem:[%s7321_s3 + $0x38] sm:$0xff] }
 0x891   :  { %v6038_v53 = vmax.f32 %v1212_v39, 0.0 }
 0x892   :  { %v6042_v55 = vmax.f32 %v1213_v50, 0.0 }
 0x893   :  { %v5491_v56 = vpack.i.bf16 %v6038_v53, %v6036_v52  ;;  %v4818_v26 = vpack.c.bf16 %v6038_v53, %v6036_v52 }
 0x894   :  { %v5501_v37 = vpack.i.bf16 %v6042_v55, %v6040_v54  ;;  %v4816_v4 = vpack.c.bf16 %v6042_v55, %v6040_v54 }
 0x895   :  { %5492 = vrot.lane.b32.xlu0 %v5491_v56, %s5564_s24 }
 0x896   :  { %5502 = vrot.lane.b32.xlu1 %v5501_v37, %s5564_s24 }
 0x899   :  { %5497 = vrot.lane.b32.xlu0 %v5491_v56, %s5565_s25 }
 0x89a   :  { %5507 = vrot.lane.b32.xlu1 %v5501_v37, %s5565_s25 }
 0x89d   :  { %5517 = vrot.lane.b32.xlu0 %v5491_v56, %s5563_s28 }
 0x89e   :  { %5512 = vrot.lane.b32.xlu1 %v5501_v37, %s5563_s28 }
 0x8a1   :  { %1285 = vperm.xlu0 %5339, %v3503_v38  }
 0x8a2   :  { %1280 = vperm.xlu1 %5340, %v3502_v40  }
 0x8a5   :  { %1381 = vperm.xlu0 %5339, %v3531_v41  }
 0x8a6   :  { %1376 = vperm.xlu1 %5340, %v3530_v57  }
 0x8a9   :  { %1398 = vperm.xlu0 %5339, %v3533_v58  }
 0x8aa   :  { %1393 = vperm.xlu1 %5340, %v3532_v59  }
 0x907   :  { %v5493_v61 = vpop.permute.xlu0 %5492 }
 0x908   :  { %v5495_v62 = vunpack.i.h.bf16 %v5493_v61  ;;  %v5494_v36 = vunpack.i.l.bf16 %v5493_v61  ;;  %v5503_v63 = vpop.permute.xlu1 %5502 }
 0x909   :  { %v5505_v30 = vunpack.i.h.bf16 %v5503_v63  ;;  %v5504_v3 = vunpack.i.l.bf16 %v5503_v63 }
 0x90a   :  { %v4801_v9 = vpack.c.bf16 %v5495_v62, %v5494_v36  ;;  %v6120_v36 = vld [vmem:[%s7328_s11 + $0x8] sm:$0xff] }
 0x90b   :  { %v4798_v7 = vpack.c.bf16 %v5505_v30, %v5504_v3  ;;  %v5498_v8 = vpop.permute.xlu0 %5497  ;;  %v1641_v63 = vmax.f32 %v6120_v36, 0.0  ;;  %v6126_v30 = vld [vmem:[%s7328_s11] sm:$0xff]  ;;  %v3595_v36 = vld [vmem:[%s7331_s12 + $0x1c8] sm:$0xff] }
 0x90c   :  { %v5500_v10 = vunpack.i.h.bf16 %v5498_v8  ;;  %v5499_v11 = vunpack.i.l.bf16 %v5498_v8  ;;  %v5508_v12 = vpop.permute.xlu1 %5507 }
 0x90d   :  { %v5510_v13 = vunpack.i.h.bf16 %v5508_v12  ;;  %v5509_v14 = vunpack.i.l.bf16 %v5508_v12  ;;  %4800 = vmatprep.subr.msk.bf16.mxu0 %vm6072_vm10, %v4798_v7  ;;  %v1645_v3 = vsel %vm1251_vm8, %v1641_v63, 0.0  ;;  %v1640_v7 = vmax.f32 %v6126_v30, 0.0  ;;  %v3564_v12 = vld [vmem:[%s7325_s7 + $0x30] sm:$0xff] }
 0x90e   :  { %4803 = vmatpush1.bf16.msk.msra.mxu0 %vm6072_vm10, %v4801_v9  ;;  %v4807_v51 = vpack.c.bf16 %v5500_v10, %v5499_v11  ;;  %v3536_v9 = vld [vmem:[%s7324_s6 + $0x30] sm:$0xff]  ;;  %v3537_v10 = vld [vmem:[%s7324_s6 + $0x38] sm:$0xff] }
 0x90f   :  { %v4804_v16 = vpack.c.bf16 %v5510_v13, %v5509_v14  ;;  %v5518_v17 = vpop.permute.xlu0 %5517  ;;  %v1642_v8 = vsel %vm1251_vm8, %v1640_v7, 0.0  ;;  %v3565_v11 = vld [vmem:[%s7325_s7 + $0x38] sm:$0xff]  ;;  %v3566_v14 = vld [vmem:[%s7326_s8 + $0x30] sm:$0xff] }
 0x910   :  { %v5520_v18 = vunpack.i.h.bf16 %v5518_v17  ;;  %v5519_v46 = vunpack.i.l.bf16 %v5518_v17  ;;  %v5513_v19 = vpop.permute.xlu1 %5512  ;;  %v3567_v13 = vld [vmem:[%s7326_s8 + $0x38] sm:$0xff]  ;;  %v1606_v17 = vld [vmem:[%s7329_s9] sm:$0xff]  ;;  %v3592_v30 = vld [vmem:[%s7331_s12 + $0x1b0] sm:$0xff] }
 0x911   :  { %v5515_v25 = vunpack.i.h.bf16 %v5513_v19  ;;  %v5514_v2 = vunpack.i.l.bf16 %v5513_v19  ;;  %4806 = vmatprep.subr.msk.bf16.mxu0 %vm6081_vm12, %v4804_v16  ;;  %v1607_v16 = vld [vmem:[%s7329_s9 + $0x8] sm:$0xff] }
 0x912   :  { %4809 = vmatpush1.bf16.msk.msra.mxu0 %vm6081_vm12, %v4807_v51  ;;  %v4813_v1 = vpack.c.bf16 %v5520_v18, %v5519_v46  ;;  %v1623_v51 = vld [vmem:[%s7330_s10 + $0x8] sm:$0xff]  ;;  %v1622_v18 = vld [vmem:[%s7330_s10] sm:$0xff] }
 0x913   :  { %v4810_v0 = vpack.c.bf16 %v5515_v25, %v5514_v2 }
 0x915   :  { %4812 = vmatprep.subr.msk.bf16.mxu0 %vm5960_vm5, %v4810_v0 }
 0x916   :  { %4815 = vmatpush1.bf16.msk.msra.mxu0 %vm5960_vm5, %v4813_v1 }
 0x917   :  { %4817 = vmatprep.subr.bf16.mxu0 %v4816_v4 }
 0x91a   :  { %4819 = vmatpush1.bf16.msra.mxu0 %v4818_v26 }
 0x91d   :  { %3528 = vmatmul.mubr.msk.f32.vlgmr.msra.gmra.mrb[16].mxu0 %vm129_vm9, %v3500_v27 }
 0x91e   :  { %1364 = vmatprep.mubr.f32.mxu0 %v5558_v6 }
 0x920   :  { %v1286_v31 = vpop.permute.xlu0 %1285 }
 0x921   :  { %3529 = vmatmul.mubr.msk.f32.gmra.mrb[18].mxu0 %vm129_vm9, %v3501_v28  ;;  %v1281_v29 = vpop.permute.xlu1 %1280 }
 0x922   :  { %1758 = vmatprep.mubr.f32.mxu0 %v5558_v6 }
 0x924   :  { %v1382_v42 = vpop.permute.xlu0 %1381 }
 0x925   :  { %v1377_v32 = vpop.permute.xlu1 %1376 }
 0x928   :  { %v1399_v49 = vpop.permute.xlu0 %1398 }
 0x929   :  { %v1394_v45 = vpop.permute.xlu1 %1393 }
 0x9f0   :  { %v1360_v33 = vpop.f32.mrb[16].mxu0 }
 0x9f1   :  { %v1361_v34 = vadd.f32 %v1360_v33, %v1281_v29  ;;  %v1362_v35 = vpop.f32.mrb[17].mxu0 }
 0x9f2   :  { %v1363_v21 = vadd.f32 %v1362_v35, %v1281_v29 }
 0x9f3   :  { %v1384_v22 = vmul.f32 %v1377_v32, %v1361_v34 }
 0x9f4   :  { %v1385_v23 = vmul.f32 %v1377_v32, %v1363_v21  ;;  %v1366_v24 = vpop.f32.mrb[18].mxu0 }
 0x9f5   :  { %v1367_v43 = vadd.f32 %v1366_v24, %v1286_v31  ;;  %v1368_v44 = vpop.f32.mrb[19].mxu0  ;;  %v1401_v48 = vadd.f32 %v1394_v45, %v1384_v22 }
 0x9f6   :  { %v1369_v47 = vadd.f32 %v1368_v44, %v1286_v31  ;;  %v1402_v39 = vadd.f32 %v1394_v45, %v1385_v23 }
 0x9f7   :  { %v1386_v20 = vmul.f32 %v1382_v42, %v1367_v43  ;;  %v1405_v38 = vmax.f32 %v1401_v48, 0.0 }
 0x9f8   :  { %v1387_v50 = vmul.f32 %v1382_v42, %v1369_v47  ;;  %v1406_v41 = vmax.f32 %v1402_v39, 0.0 }
 0x9f9   :  { %v1403_v56 = vadd.f32 %v1399_v49, %v1386_v20 }
 0x9fa   :  { %v1404_v37 = vadd.f32 %v1399_v49, %v1387_v50 }
 0x9fb   :  { %v1407_v40 = vmax.f32 %v1403_v56, 0.0 }
 0x9fc   :  { %v1408_v57 = vmax.f32 %v1404_v37, 0.0 }
 0x9fd   :  { %v5521_v58 = vpack.i.bf16 %v1407_v40, %v1405_v38  ;;  %v6107_v59 = vpack.c.bf16 %v1407_v40, %v1405_v38 }
 0x9fe   :  { %v5531_v61 = vpack.i.bf16 %v1408_v57, %v1406_v41  ;;  %v6109_v62 = vpack.c.bf16 %v1408_v57, %v1406_v41 }
 0x9ff   :  { %5522 = vrot.lane.b32.xlu0 %v5521_v58, %s5564_s24 }
 0xa00   :  { %5532 = vrot.lane.b32.xlu1 %v5531_v61, %s5564_s24 }
 0xa03   :  { %5527 = vrot.lane.b32.xlu0 %v5521_v58, %s5565_s25 }
 0xa04   :  { %5537 = vrot.lane.b32.xlu1 %v5531_v61, %s5565_s25 }
 0xa07   :  { %5547 = vrot.lane.b32.xlu0 %v5521_v58, %s5563_s28 }
 0xa08   :  { %5542 = vrot.lane.b32.xlu1 %v5531_v61, %s5563_s28 }
 0xa26   :  { %1646 = vadd.xlane.f32.xlu0 %v1645_v3 }
 0xa2c   :  { %1643 = vadd.xlane.f32.xlu1 %v1642_v8 }
 0xa3c   :  { %1469 = vperm.xlu0 %5339, %v3536_v9  }
 0xa3d   :  { %1474 = vperm.xlu1 %5340, %v3537_v10  }
 0xa40   :  { %1570 = vperm.xlu0 %5339, %v3565_v11  }
 0xa41   :  { %1565 = vperm.xlu1 %5340, %v3564_v12  }
 0xa44   :  { %1587 = vperm.xlu0 %5339, %v3567_v13  }
 0xa45   :  { %1582 = vperm.xlu1 %5340, %v3566_v14  }
 0xa48   :  { %1615 = vperm.xlu0 %5339, %v1607_v16  }
 0xa49   :  { %1610 = vperm.xlu1 %5340, %v1606_v17  }
 0xa4c   :  { %1631 = vperm.xlu0 %5339, %v1623_v51  }
 0xa4d   :  { %1626 = vperm.xlu1 %5340, %v1622_v18  }
 0xa71   :  { %v5523_v46 = vpop.permute.xlu0 %5522 }
 0xa72   :  { %v5525_v19 = vunpack.i.h.bf16 %v5523_v46  ;;  %v5524_v25 = vunpack.i.l.bf16 %v5523_v46  ;;  %v5533_v2 = vpop.permute.xlu1 %5532 }
 0xa73   :  { %v5535_v0 = vunpack.i.h.bf16 %v5533_v2  ;;  %v5534_v1 = vunpack.i.l.bf16 %v5533_v2 }
 0xa74   :  { %v4823_v27 = vpack.c.bf16 %v5525_v19, %v5524_v25 }
 0xa75   :  { %v4820_v4 = vpack.c.bf16 %v5535_v0, %v5534_v1  ;;  %v5528_v26 = vpop.permute.xlu0 %5527 }
 0xa76   :  { %v5530_v28 = vunpack.i.h.bf16 %v5528_v26  ;;  %v5529_v29 = vunpack.i.l.bf16 %v5528_v26  ;;  %v5538_v31 = vpop.permute.xlu1 %5537 }
 0xa77   :  { %v5540_v32 = vunpack.i.h.bf16 %v5538_v31  ;;  %v5539_v33 = vunpack.i.l.bf16 %v5538_v31  ;;  %4822 = vmatprep.subr.msk.bf16.mxu1 %vm6072_vm10, %v4820_v4 }
 0xa78   :  { %4825 = vmatpush1.bf16.msk.msra.mxu1 %vm6072_vm10, %v4823_v27  ;;  %v4829_v42 = vpack.c.bf16 %v5530_v28, %v5529_v29 }
 0xa79   :  { %v4826_v34 = vpack.c.bf16 %v5540_v32, %v5539_v33  ;;  %v5548_v35 = vpop.permute.xlu0 %5547 }
 0xa7a   :  { %v5550_v21 = vunpack.i.h.bf16 %v5548_v35  ;;  %v5549_v22 = vunpack.i.l.bf16 %v5548_v35  ;;  %v5543_v23 = vpop.permute.xlu1 %5542 }
 0xa7b   :  { %v5545_v24 = vunpack.i.h.bf16 %v5543_v23  ;;  %v5544_v43 = vunpack.i.l.bf16 %v5543_v23  ;;  %4828 = vmatprep.subr.msk.bf16.mxu1 %vm6081_vm12, %v4826_v34 }
 0xa7c   :  { %4831 = vmatpush1.bf16.msk.msra.mxu1 %vm6081_vm12, %v4829_v42  ;;  %v4835_v45 = vpack.c.bf16 %v5550_v21, %v5549_v22 }
 0xa7d   :  { %v4832_v44 = vpack.c.bf16 %v5545_v24, %v5544_v43  ;;  %v3586_v24 = vld [vmem:[%s7331_s12 + $0x180] sm:$0xff]  ;;  %v3587_v43 = vld [vmem:[%s7331_s12 + $0x188] sm:$0xff] }
 0xa7f   :  { %4834 = vmatprep.subr.msk.bf16.mxu1 %vm5960_vm5, %v4832_v44 }
 0xa80   :  { %4837 = vmatpush1.bf16.msk.msra.mxu1 %vm5960_vm5, %v4835_v45 }
 0xa81   :  { %4839 = vmatprep.subr.bf16.mxu1 %v6109_v62 }
 0xa84   :  { %4841 = vmatpush1.bf16.msra.mxu1 %v6107_v59 }
 0xa87   :  { %3562 = vmatmul.mubr.msk.f32.vlgmr.msra.gmra.mrb[8].mxu1 %vm129_vm9, %v3534_v5 }
 0xa88   :  { %1553 = vmatprep.mubr.f32.mxu1 %v5558_v6 }
 0xa8b   :  { %3563 = vmatmul.mubr.msk.f32.gmra.mrb[10].mxu1 %vm129_vm9, %v3535_v15  ;;  %vm5567_vm9 = vmmov 0  }
 0xa8c   :  { %4348 = vmatprep.mubr.msk.f32.mxu1 %vm5567_vm9, %v5558_v6 }
 0xab3   :  { %v1647_v47 = vpop.xlane.xlu0 %1646 }
 0xab4   :  { %v1649_v3 = vadd.f32 1e-10, %v1647_v47  ;;  %v3570_v47 = vld [vmem:[%s7331_s12 + $0x100] sm:$0xff] }
 0xab6   :  { %5551 = vrsqrt.f32 %v1649_v3 }
 0xab9   :  { %v1644_v60 = vpop.xlane.xlu1 %1643 }
 0xaba   :  { %v1648_v11 = vadd.f32 1e-10, %v1644_v60  ;;  %v4846_v60 = vpack.c.bf16 %v3587_v43, %v3586_v24  ;;  %v1653_v24 = vld [vmem:[%s7331_s12 + $0x8] sm:$0xff] }
 0xabb   :  { %v1470_v20 = vpop.permute.xlu0 %1469 }
 0xabc   :  { %5553 = vrsqrt.f32 %v1648_v11 }
 0xabd   :  { %v1475_v48 = vpop.permute.xlu1 %1474 }
 0xabf   :  { %v1571_v39 = vpop.permute.xlu0 %1570 }
 0xac0   :  { %v6198_v22 = vpop.eup %5551 }
 0xac1   :  { %v1566_v49 = vpop.permute.xlu1 %1565 }
 0xac3   :  { %v1588_v8 = vpop.permute.xlu0 %1587 }
 0xac5   :  { %v1583_v41 = vpop.permute.xlu1 %1582 }
 0xac7   :  { %v1616_v0 = vpop.permute.xlu0 %1615 }
 0xac9   :  { %v1611_v19 = vpop.permute.xlu1 %1610 }
 0xacb   :  { %v1632_v34 = vpop.permute.xlu0 %1631 }
 0xacd   :  { %v1627_v32 = vpop.permute.xlu1 %1626 }
 0xb5a   :  { %v1549_v50 = vpop.f32.mrb[8].mxu1 }
 0xb5b   :  { %v1550_v56 = vadd.f32 %v1549_v50, %v1470_v20  ;;  %v1551_v37 = vpop.f32.mrb[9].mxu1 }
 0xb5c   :  { %v1552_v38 = vadd.f32 %v1551_v37, %v1470_v20  ;;  %v3572_v37 = vld [vmem:[%s7331_s12 + $0x110] sm:$0xff] }
 0xb5d   :  { %v1573_v40 = vmul.f32 %v1566_v49, %v1550_v56 }
 0xb5e   :  { %v1574_v57 = vmul.f32 %v1566_v49, %v1552_v38  ;;  %v1555_v58 = vpop.f32.mrb[10].mxu1  ;;  %v3588_v49 = vld [vmem:[%s7331_s12 + $0x190] sm:$0xff]  ;;  %v3573_v38 = vld [vmem:[%s7331_s12 + $0x118] sm:$0xff] }
 0xb5f   :  { %v1590_v59 = vadd.f32 %v1583_v41, %v1573_v40  ;;  %v1556_v61 = vadd.f32 %v1555_v58, %v1475_v48  ;;  %v1557_v62 = vpop.f32.mrb[11].mxu1  ;;  %v3590_v40 = vld [vmem:[%s7331_s12 + $0x1a0] sm:$0xff] }
 0xb60   :  { %v1591_v9 = vadd.f32 %v1583_v41, %v1574_v57  ;;  %v1558_v10 = vadd.f32 %v1557_v62, %v1475_v48  ;;  %v3571_v48 = vld [vmem:[%s7331_s12 + $0x108] sm:$0xff]  ;;  %v4852_v57 = vpack.c.bf16 %v3573_v38, %v3572_v37 }
 0xb61   :  { %v1594_v12 = vmax.f32 %v1590_v59, 0.0  ;;  %v1575_v13 = vmul.f32 %v1571_v39, %v1556_v61  ;;  %v4848_v50 = vpack.c.bf16 %v3571_v48, %v3570_v47  ;;  %v3591_v41 = vld [vmem:[%s7331_s12 + $0x1a8] sm:$0xff]  ;;  %v3574_v59 = vld [vmem:[%s7331_s12 + $0x120] sm:$0xff] }
 0xb62   :  { %v1595_v14 = vmax.f32 %v1591_v9, 0.0  ;;  %v1576_v16 = vmul.f32 %v1571_v39, %v1558_v10  ;;  %v3589_v39 = vld [vmem:[%s7331_s12 + $0x198] sm:$0xff]  ;;  %v4854_v58 = vpack.c.bf16 %v3591_v41, %v3590_v40  ;;  %v3575_v61 = vld [vmem:[%s7331_s12 + $0x128] sm:$0xff]  ;;  %v3594_v10 = vld [vmem:[%s7331_s12 + $0x1c0] sm:$0xff] }
 0xb63   :  { %v1598_v17 = vadd.f32 %v1594_v12, %v6036_v52  ;;  %v1592_v51 = vadd.f32 %v1588_v8, %v1575_v13  ;;  %v4850_v56 = vpack.c.bf16 %v3589_v39, %v3588_v49  ;;  %v4856_v62 = vpack.c.bf16 %v3575_v61, %v3574_v59  ;;  %v3577_v9 = vld [vmem:[%s7331_s12 + $0x138] sm:$0xff]  ;;  %v3578_v12 = vld [vmem:[%s7331_s12 + $0x140] sm:$0xff]  ;;  %v3579_v13 = vld [vmem:[%s7331_s12 + $0x148] sm:$0xff] }
 0xb64   :  { %v1599_v18 = vadd.f32 %v1595_v14, %v6040_v54  ;;  %v1593_v46 = vadd.f32 %v1588_v8, %v1576_v16  ;;  %v3576_v8 = vld [vmem:[%s7331_s12 + $0x130] sm:$0xff]  ;;  %v4862_v11 = vpack.c.bf16 %v3595_v36, %v3594_v10  ;;  %v3597_v16 = vld [vmem:[%s7331_s12 + $0x1d8] sm:$0xff]  ;;  %v1660_v10 = vld [vmem:[%s7331_s12 + $0x40] sm:$0xff] }
 0xb65   :  { %v1602_v25 = vmax.f32 %v1598_v17, 0.0  ;;  %v1596_v2 = vmax.f32 %v1592_v51, 0.0  ;;  %v3596_v14 = vld [vmem:[%s7331_s12 + $0x1d0] sm:$0xff]  ;;  %v4864_v17 = vpack.c.bf16 %v3579_v13, %v3578_v12  ;;  %v1655_v49 = vld [vmem:[%s7331_s12 + $0x18] sm:$0xff]  ;;  %v1661_v36 = vld [vmem:[%s7331_s12 + $0x48] sm:$0xff] }
 0xb66   :  { %v1603_v1 = vmax.f32 %v1599_v18, 0.0  ;;  %v1597_v4 = vmax.f32 %v1593_v46, 0.0  ;;  %v4866_v51 = vpack.c.bf16 %v3597_v16, %v3596_v14  ;;  %v3580_v18 = vld [vmem:[%s7331_s12 + $0x150] sm:$0xff]  ;;  %v3581_v46 = vld [vmem:[%s7331_s12 + $0x158] sm:$0xff]  ;;  %v4896_v12 = vpack.c.bf16 %v1661_v36, %v1660_v10 }
 0xb67   :  { %v1600_v26 = vadd.f32 %v1596_v2, %v6038_v53  ;;  %v1618_v29 = vmul.f32 %v1611_v19, %v1602_v25  ;;  %v6202_v53 = vpop.eup %5553  ;;  %v3599_v25 = vld [vmem:[%s7331_s12 + $0x1e8] sm:$0xff]  ;;  %v4868_v2 = vpack.c.bf16 %v3581_v46, %v3580_v18  ;;  %v1674_v59 = vld [vmem:[%s7331_s12 + $0xb0] sm:$0xff]  ;;  %v1675_v61 = vld [vmem:[%s7331_s12 + $0xb8] sm:$0xff] }
 0xb68   :  { %v1619_v27 = vmul.f32 %v1611_v19, %v1603_v1  ;;  %v1601_v28 = vadd.f32 %v1597_v4, %v6042_v55  ;;  %v3598_v19 = vld [vmem:[%s7331_s12 + $0x1e0] sm:$0xff]  ;;  %v3583_v4 = vld [vmem:[%s7331_s12 + $0x168] sm:$0xff]  ;;  %v1662_v14 = vld [vmem:[%s7331_s12 + $0x50] sm:$0xff] }
 0xb69   :  { %v1604_v31 = vmax.f32 %v1600_v26, 0.0  ;;  %v6194_v42 = vadd.f32 %v1627_v32, %v1618_v29  ;;  %v3582_v1 = vld [vmem:[%s7331_s12 + $0x160] sm:$0xff]  ;;  %v1663_v16 = vld [vmem:[%s7331_s12 + $0x58] sm:$0xff]  ;;  %v1975_v36 = vld [vmem:[%s7332_s13 + $0x70] sm:$0xff] }
 0xb6a   :  { %v1605_v52 = vmax.f32 %v1601_v28, 0.0  ;;  %v6192_v35 = vadd.f32 %v1627_v32, %v1619_v27  ;;  %v4872_v26 = vpack.c.bf16 %v3583_v4, %v3582_v1  ;;  %v3600_v27 = vld [vmem:[%s7331_s12 + $0x1f0] sm:$0xff]  ;;  %v3601_v28 = vld [vmem:[%s7331_s12 + $0x1f8] sm:$0xff]  ;;  %v4900_v18 = vpack.c.bf16 %v1663_v16, %v1662_v14 }
 0xb6b   :  { %v1620_v33 = vmul.f32 %v1616_v0, %v1604_v31  ;;  %v1684_v5 = vmul.f32 %v6202_v53, %v6194_v42  ;;  %v4874_v29 = vpack.c.bf16 %v3601_v28, %v3600_v27  ;;  %v3584_v31 = vld [vmem:[%s7331_s12 + $0x170] sm:$0xff]  ;;  %v1667_v27 = vld [vmem:[%s7331_s12 + $0x78] sm:$0xff] }
 0xb6c   :  { %v1621_v54 = vmul.f32 %v1616_v0, %v1605_v52  ;;  %v1685_v44 = vmul.f32 %v6202_v53, %v6192_v35  ;;  %v4870_v0 = vpack.c.bf16 %v3599_v25, %v3598_v19  ;;  %v3585_v52 = vld [vmem:[%s7331_s12 + $0x178] sm:$0xff]  ;;  %v1664_v19 = vld [vmem:[%s7331_s12 + $0x60] sm:$0xff]  ;;  %v1665_v25 = vld [vmem:[%s7331_s12 + $0x68] sm:$0xff] }
 0xb6d   :  { %v6196_v21 = vadd.f32 %v1632_v34, %v1620_v33  ;;  %v4876_v32 = vpack.c.bf16 %v3585_v52, %v3584_v31  ;;  %v1668_v33 = vld [vmem:[%s7331_s12 + $0x80] sm:$0xff]  ;;  %v4904_v1 = vpack.c.bf16 %v1665_v25, %v1664_v19  ;;  %v1962_v31 = vld [vmem:[%s7332_s13 + $0x8] sm:$0xff] }
 0xb6e   :  { %v6200_v23 = vadd.f32 %v1632_v34, %v1621_v54  ;;  %v1669_v34 = vld [vmem:[%s7331_s12 + $0x88] sm:$0xff] }
 0xb6f   :  { %v1686_v55 = vmul.f32 %v6198_v22, %v6196_v21  ;;  %v4878_v54 = vpack.c.bf16 %v1669_v34, %v1668_v33  ;;  %v1964_v34 = vld [vmem:[%s7332_s13 + $0x18] sm:$0xff] }
 0xb70   :  { %v1687_v45 = vmul.f32 %v6198_v22, %v6200_v23 }
 0xb71   :  { %v4844_v20 = vpack.c.bf16 %v1686_v55, %v1684_v5  ;;  %v1652_v55 = vld [vmem:[%s7331_s12] sm:$0xff] }
 0xb72   :  { %v4842_v15 = vpack.c.bf16 %v1687_v45, %v1685_v44  ;;  %v1670_v44 = vld [vmem:[%s7331_s12 + $0x90] sm:$0xff]  ;;  %v1671_v45 = vld [vmem:[%s7331_s12 + $0x98] sm:$0xff] }
 0xb73   :  { %v4882_v48 = vpack.c.bf16 %v1671_v45, %v1670_v44  ;;  %v1965_v44 = vld [vmem:[%s7332_s13 + $0x20] sm:$0xff]  ;;  %v1966_v45 = vld [vmem:[%s7332_s13 + $0x28] sm:$0xff] }
 0xb74   :  { %4843 = vmatprep.subr.bf16.mxu0 %v4842_v15 }
 0xb75   :  { %4845 = vmatpush1.bf16.msra.mxu0 %v4844_v20  ;;  %v1654_v20 = vld [vmem:[%s7331_s12 + $0x10] sm:$0xff] }
 0xb76   :  { %4847 = vmatprep.subr.bf16.mxu0 %v4846_v60  ;;  %v4880_v60 = vpack.c.bf16 %v1653_v24, %v1652_v55  ;;  %v4884_v38 = vpack.c.bf16 %v1655_v49, %v1654_v20  ;;  %v3669_v55 = vld [vmem:[%s7332_s13 + $0x298] sm:$0xff]  ;;  %v3672_v49 = vld [vmem:[%s7332_s13 + $0x2b0] sm:$0xff] }
 0xb77   :  { %v1968_v20 = vld [vmem:[%s7332_s13 + $0x38] sm:$0xff] }
 0xb78   :  { %3568 = vmatmul.mubr.msk.f32.vlgmr.msra.gmra.mrb[20].mxu0 %vm1251_vm8, %v1640_v7  ;;  %v3593_v7 = vld [vmem:[%s7331_s12 + $0x1b8] sm:$0xff] }
 0xb79   :  { %1764 = vmatprep.mubr.f32.mxu0 %v5558_v6  ;;  %4849 = vmatpush3.bf16.msra.mxu0 %v4848_v50  ;;  %v4858_v3 = vpack.c.bf16 %v3593_v7, %v3592_v30  ;;  %v1672_v50 = vld [vmem:[%s7331_s12 + $0xa0] sm:$0xff]  ;;  %v4890_v30 = vpack.c.bf16 %v1675_v61, %v1674_v59  ;;  %v1658_v7 = vld [vmem:[%s7331_s12 + $0x30] sm:$0xff]  ;;  %v1972_v59 = vld [vmem:[%s7332_s13 + $0x58] sm:$0xff] }
 0xb7a   :  { %4851 = vmatprep.subr.bf16.mxu0 %v4850_v56  ;;  %v1673_v56 = vld [vmem:[%s7331_s12 + $0xa8] sm:$0xff]  ;;  %v3676_v61 = vld [vmem:[%s7332_s13 + $0x2d0] sm:$0xff] }
 0xb7b   :  { %v4886_v41 = vpack.c.bf16 %v1673_v56, %v1672_v50 }
 0xb7c   :  { %3569 = vmatmul.mubr.msk.f32.gmra.mrb[22].mxu0 %vm1251_vm8, %v1641_v63  ;;  %v4860_v63 = vpack.c.bf16 %v3577_v9, %v3576_v8  ;;  %v1677_v8 = vld [vmem:[%s7331_s12 + $0xc8] sm:$0xff] }
 0xb7d   :  { %4853 = vmatpush3.bf16.msra.mxu0 %v4852_v57  ;;  %v1656_v57 = vld [vmem:[%s7331_s12 + $0x20] sm:$0xff] }
 0xb7e   :  { %4855 = vmatprep.subr.bf16.mxu0 %v4854_v58  ;;  %v1657_v58 = vld [vmem:[%s7331_s12 + $0x28] sm:$0xff] }
 0xb81   :  { %4857 = vmatpush3.bf16.msra.mxu0 %v4856_v62  ;;  %v1659_v62 = vld [vmem:[%s7331_s12 + $0x38] sm:$0xff] }
 0xb82   :  { %4859 = vmatprep.subr.bf16.mxu0 %v4858_v3  ;;  %v1676_v3 = vld [vmem:[%s7331_s12 + $0xc0] sm:$0xff] }
 0xb83   :  { %v4894_v9 = vpack.c.bf16 %v1677_v8, %v1676_v3  ;;  %v1974_v3 = vld [vmem:[%s7332_s13 + $0x68] sm:$0xff] }
 0xb85   :  { %4861 = vmatpush3.bf16.msra.mxu0 %v4860_v63  ;;  %v1678_v63 = vld [vmem:[%s7331_s12 + $0xd0] sm:$0xff] }
 0xb86   :  { %4863 = vmatprep.subr.bf16.mxu0 %v4862_v11  ;;  %v1679_v11 = vld [vmem:[%s7331_s12 + $0xd8] sm:$0xff] }
 0xb87   :  { %v4898_v13 = vpack.c.bf16 %v1679_v11, %v1678_v63  ;;  %v1976_v63 = vld [vmem:[%s7332_s13 + $0x78] sm:$0xff] }
 0xb88   :  { %v4932_v11 = vpack.c.bf16 %v1976_v63, %v1975_v36  ;;  %v3616_v63 = vld [vmem:[%s7332_s13 + $0xf0] sm:$0xff] }
 0xb89   :  { %4865 = vmatpush3.bf16.msra.mxu0 %v4864_v17  ;;  %v1680_v17 = vld [vmem:[%s7331_s12 + $0xe0] sm:$0xff] }
 0xb8a   :  { %4867 = vmatprep.subr.bf16.mxu0 %v4866_v51  ;;  %v1681_v51 = vld [vmem:[%s7331_s12 + $0xe8] sm:$0xff] }
 0xb8b   :  { %v4902_v46 = vpack.c.bf16 %v1681_v51, %v1680_v17 }
 0xb8d   :  { %4869 = vmatpush3.bf16.msra.mxu0 %v4868_v2  ;;  %v1682_v2 = vld [vmem:[%s7331_s12 + $0xf0] sm:$0xff] }
 0xb8e   :  { %4871 = vmatprep.subr.bf16.mxu0 %v4870_v0  ;;  %v1683_v0 = vld [vmem:[%s7331_s12 + $0xf8] sm:$0xff] }
 0xb8f   :  { %v4906_v4 = vpack.c.bf16 %v1683_v0, %v1682_v2 }
 0xb91   :  { %4873 = vmatpush3.bf16.msra.mxu0 %v4872_v26  ;;  %v1666_v26 = vld [vmem:[%s7331_s12 + $0x70] sm:$0xff] }
 0xb92   :  { %4875 = vmatprep.subr.bf16.mxu0 %v4874_v29  ;;  %v4908_v28 = vpack.c.bf16 %v1667_v27, %v1666_v26  ;;  %v1961_v29 = vld [vmem:[%s7332_s13] sm:$0xff] }
 0xb93   :  { %v4911_v52 = vpack.c.bf16 %v1962_v31, %v1961_v29  ;;  %v3683_v29 = vld [vmem:[%s7332_s13 + $0x308] sm:$0xff] }
 0xb95   :  { %4877 = vmatpush3.bf16.msra.mxu0 %v4876_v32  ;;  %v3666_v32 = vld [vmem:[%s7332_s13 + $0x280] sm:$0xff] }
 0xb96   :  { %4879 = vmatprep.subr.bf16.mxu0 %v4878_v54  ;;  %v3668_v54 = vld [vmem:[%s7332_s13 + $0x290] sm:$0xff] }
 0xc4b   :  { %v1760_v43 = vpop.f32.mrb[20].mxu0 }
 0xc4c   :  { %v1762_v5 = vpop.f32.mrb[21].mxu0  ;;  %v1771_v47 = vmul.f32 %v6202_v53, %v1760_v43  ;;  %v5034_v43 = vpack.c.bf16 %v3669_v55, %v3668_v54 }
 0xc4d   :  { %v1772_v15 = vmul.f32 %v6202_v53, %v1762_v5  ;;  %v3670_v5 = vld [vmem:[%s7332_s13 + $0x2a0] sm:$0xff] }
 0xc4f   :  { %v1766_v39 = vpop.f32.mrb[22].mxu0  ;;  %1872 = vmatprep.mubr.f32.mxu0 %v1772_v15  ;;  %v3671_v15 = vld [vmem:[%s7332_s13 + $0x2a8] sm:$0xff] }
 0xc50   :  { %v1768_v53 = vpop.f32.mrb[23].mxu0  ;;  %1873 = vmatmul.mubr.f32.vlgmr.msra.gmra.mrb[24].mxu0 %v1771_v47  ;;  %v1773_v40 = vmul.f32 %v6198_v22, %v1766_v39  ;;  %v5037_v47 = vpack.c.bf16 %v3671_v15, %v3670_v5  ;;  %v3673_v39 = vld [vmem:[%s7332_s13 + $0x2b8] sm:$0xff]  ;;  %v3607_v5 = vld [vmem:[%s7332_s13 + $0xa8] sm:$0xff] }
 0xc51   :  { %v1774_v37 = vmul.f32 %v6198_v22, %v1768_v53  ;;  %4881 = vmatpush3.bf16.msra.mxu0 %v4880_v60  ;;  %v4888_v22 = vpack.c.bf16 %v1657_v58, %v1656_v57  ;;  %v4917_v60 = vpack.c.bf16 %v1966_v45, %v1965_v44  ;;  %v5040_v56 = vpack.c.bf16 %v3673_v39, %v3672_v49  ;;  %v1969_v53 = vld [vmem:[%s7332_s13 + $0x40] sm:$0xff]  ;;  %v1971_v58 = vld [vmem:[%s7332_s13 + $0x50] sm:$0xff]  ;;  %v3609_v49 = vld [vmem:[%s7332_s13 + $0xb8] sm:$0xff] }
 0xc52   :  { %4883 = vmatprep.subr.bf16.mxu0 %v4882_v48  ;;  %v1967_v48 = vld [vmem:[%s7332_s13 + $0x30] sm:$0xff]  ;;  %v3606_v45 = vld [vmem:[%s7332_s13 + $0xa0] sm:$0xff] }
 0xc53   :  { %1877 = vmatprep.mubr.f32.mxu0 %v1774_v37  ;;  %v4920_v50 = vpack.c.bf16 %v1968_v20, %v1967_v48  ;;  %v1970_v37 = vld [vmem:[%s7332_s13 + $0x48] sm:$0xff]  ;;  %v4941_v48 = vpack.c.bf16 %v3607_v5, %v3606_v45  ;;  %v3608_v20 = vld [vmem:[%s7332_s13 + $0xb0] sm:$0xff]  ;;  %v3705_v45 = vld [vmem:[%s7332_s13 + $0x3b8] sm:$0xff] }
 0xc54   :  { %1878 = vmatmul.mubr.f32.gmra.mrb[26].mxu0 %v1773_v40  ;;  %v3675_v40 = vld [vmem:[%s7332_s13 + $0x2c8] sm:$0xff] }
 0xc55   :  { %4885 = vmatpush3.bf16.msra.mxu0 %v4884_v38  ;;  %1947 = vmatprep.mubr.f32.mxu0 %v6192_v35  ;;  %v4892_v35 = vpack.c.bf16 %v1659_v62, %v1658_v7  ;;  %v3674_v38 = vld [vmem:[%s7332_s13 + $0x2c0] sm:$0xff] }
 0xc56   :  { %4887 = vmatprep.subr.bf16.mxu0 %v4886_v41  ;;  %v4923_v41 = vpack.c.bf16 %v1970_v37, %v1969_v53  ;;  %v5043_v57 = vpack.c.bf16 %v3675_v40, %v3674_v38  ;;  %v1973_v62 = vld [vmem:[%s7332_s13 + $0x60] sm:$0xff]  ;;  %v4944_v53 = vpack.c.bf16 %v3609_v49, %v3608_v20  ;;  %v3611_v38 = vld [vmem:[%s7332_s13 + $0xc8] sm:$0xff] }
 0xc57   :  { %v4929_v8 = vpack.c.bf16 %v1974_v3, %v1973_v62  ;;  %v3610_v37 = vld [vmem:[%s7332_s13 + $0xc0] sm:$0xff]  ;;  %v3707_v20 = vld [vmem:[%s7332_s13 + $0x3c8] sm:$0xff] }
 0xc58   :  { %v3614_v3 = vld [vmem:[%s7332_s13 + $0xe0] sm:$0xff] }
 0xc59   :  { %4889 = vmatpush3.bf16.msra.mxu0 %v4888_v22  ;;  %v3677_v22 = vld [vmem:[%s7332_s13 + $0x2d8] sm:$0xff] }
 0xc5a   :  { %4891 = vmatprep.subr.bf16.mxu0 %v4890_v30  ;;  %v4926_v30 = vpack.c.bf16 %v1972_v59, %v1971_v58  ;;  %v5046_v7 = vpack.c.bf16 %v3677_v22, %v3676_v61  ;;  %v4947_v58 = vpack.c.bf16 %v3611_v38, %v3610_v37  ;;  %v3612_v59 = vld [vmem:[%s7332_s13 + $0xd0] sm:$0xff]  ;;  %v3613_v61 = vld [vmem:[%s7332_s13 + $0xd8] sm:$0xff] }
 0xc5b   :  { %v4950_v62 = vpack.c.bf16 %v3613_v61, %v3612_v59  ;;  %v3709_v37 = vld [vmem:[%s7332_s13 + $0x3d8] sm:$0xff]  ;;  %v3711_v59 = vld [vmem:[%s7332_s13 + $0x3e8] sm:$0xff] }
 0xc5d   :  { %4893 = vmatpush3.bf16.msra.mxu0 %v4892_v35  ;;  %v3678_v35 = vld [vmem:[%s7332_s13 + $0x2e0] sm:$0xff] }
 0xc5e   :  { %4895 = vmatprep.subr.bf16.mxu0 %v4894_v9  ;;  %v3679_v9 = vld [vmem:[%s7332_s13 + $0x2e8] sm:$0xff] }
 0xc5f   :  { %v5049_v10 = vpack.c.bf16 %v3679_v9, %v3678_v35  ;;  %v3694_v9 = vld [vmem:[%s7332_s13 + $0x360] sm:$0xff] }
 0xc61   :  { %4897 = vmatpush3.bf16.msra.mxu0 %v4896_v12  ;;  %v3680_v12 = vld [vmem:[%s7332_s13 + $0x2f0] sm:$0xff] }
 0xc62   :  { %4899 = vmatprep.subr.bf16.mxu0 %v4898_v13  ;;  %v3681_v13 = vld [vmem:[%s7332_s13 + $0x2f8] sm:$0xff] }
 0xc63   :  { %v5052_v14 = vpack.c.bf16 %v3681_v13, %v3680_v12  ;;  %v3696_v13 = vld [vmem:[%s7332_s13 + $0x370] sm:$0xff] }
 0xc65   :  { %4901 = vmatpush3.bf16.msra.mxu0 %v4900_v18 }
 0xc66   :  { %4903 = vmatprep.subr.bf16.mxu0 %v4902_v46 }
 0xc69   :  { %4905 = vmatpush3.bf16.msra.mxu0 %v4904_v1  ;;  %v3602_v1 = vld [vmem:[%s7332_s13 + $0x80] sm:$0xff] }
 0xc6a   :  { %4907 = vmatprep.subr.bf16.mxu0 %v4906_v4  ;;  %v3603_v4 = vld [vmem:[%s7332_s13 + $0x88] sm:$0xff] }
 0xc6d   :  { %4909 = vmatpush3.bf16.msra.mxu0 %v4908_v28  ;;  %v3682_v28 = vld [vmem:[%s7332_s13 + $0x300] sm:$0xff] }
 0xc70   :  { %1948 = vmatmul.mubr.f32.vlgmr.msra.gmra.mrb[28].mxu0 %v6194_v42  ;;  %v3667_v42 = vld [vmem:[%s7332_s13 + $0x288] sm:$0xff] }
 0xc71   :  { %1952 = vmatprep.mubr.f32.mxu0 %v6200_v23  ;;  %v5566_v23 = vmov 0.0|0.0   ;;  %v5031_v33 = vpack.c.bf16 %v3667_v42, %v3666_v32 }
 0xc72   :  { %4910 = vmatprep.subr.bf16.mxu0 %v5566_v23  ;;  %5030 = vmatprep.subr.bf16.mxu1 %v5566_v23 }
 0xc73   :  { %4912 = vmatpush3.bf16.msra.mxu0 %v4911_v52  ;;  %5032 = vmatpush3.bf16.msra.mxu1 %v5031_v33  ;;  %v4935_v52 = vpack.c.bf16 %v3603_v4, %v3602_v1  ;;  %v3605_v33 = vld [vmem:[%s7332_s13 + $0x98] sm:$0xff] }
 0xc74   :  { %1953 = vmatmul.mubr.f32.gmra.mrb[30].mxu0 %v6196_v21  ;;  %v1963_v21 = vld [vmem:[%s7332_s13 + $0x10] sm:$0xff]  ;;  %4913 = vmatprep.subr.bf16.mxu0 %v5566_v23  ;;  %v3621_v1 = vld [vmem:[%s7332_s13 + $0x118] sm:$0xff] }
 0xc75   :  { %v4914_v24 = vpack.c.bf16 %v1964_v34, %v1963_v21  ;;  %5033 = vmatprep.subr.bf16.mxu1 %v5566_v23  ;;  %4173 = vmatprep.mubr.msk.f32.mxu0 %vm5567_vm9, %v5558_v6  ;;  %v3604_v21 = vld [vmem:[%s7332_s13 + $0x90] sm:$0xff]  ;;  %v5055_v34 = vpack.c.bf16 %v3683_v29, %v3682_v28  ;;  %v3701_v28 = vld [vmem:[%s7332_s13 + $0x398] sm:$0xff] }
 0xc76   :  { %v4938_v44 = vpack.c.bf16 %v3605_v33, %v3604_v21  ;;  %v3702_v21 = vld [vmem:[%s7332_s13 + $0x3a0] sm:$0xff]  ;;  %v3703_v33 = vld [vmem:[%s7332_s13 + $0x3a8] sm:$0xff] }
 0xc77   :  { %4915 = vmatpush3.bf16.msra.mxu0 %v4914_v24  ;;  %5035 = vmatpush3.bf16.msra.mxu1 %v5034_v43  ;;  %v3684_v24 = vld [vmem:[%s7332_s13 + $0x310] sm:$0xff]  ;;  %v3685_v43 = vld [vmem:[%s7332_s13 + $0x318] sm:$0xff] }
 0xc78   :  { %4916 = vmatprep.subr.bf16.mxu0 %v5566_v23  ;;  %5036 = vmatprep.subr.bf16.mxu1 %v5566_v23  ;;  %v5058_v15 = vpack.c.bf16 %v3685_v43, %v3684_v24  ;;  %v3625_v24 = vld [vmem:[%s7332_s13 + $0x138] sm:$0xff]  ;;  %v5085_v43 = vpack.c.bf16 %v3703_v33, %v3702_v21  ;;  %v3643_v21 = vld [vmem:[%s7332_s13 + $0x1c8] sm:$0xff] }
 0xc7b   :  { %4918 = vmatpush3.bf16.msra.mxu0 %v4917_v60  ;;  %5038 = vmatpush3.bf16.msra.mxu1 %v5037_v47  ;;  %v3686_v60 = vld [vmem:[%s7332_s13 + $0x320] sm:$0xff]  ;;  %v3687_v47 = vld [vmem:[%s7332_s13 + $0x328] sm:$0xff] }
 0xc7c   :  { %4919 = vmatprep.subr.bf16.mxu0 %v5566_v23  ;;  %5039 = vmatprep.subr.bf16.mxu1 %v5566_v23  ;;  %v5061_v39 = vpack.c.bf16 %v3687_v47, %v3686_v60  ;;  %v3627_v60 = vld [vmem:[%s7332_s13 + $0x148] sm:$0xff] }
 0xc7f   :  { %4921 = vmatpush3.bf16.msra.mxu0 %v4920_v50  ;;  %5041 = vmatpush3.bf16.msra.mxu1 %v5040_v56  ;;  %v3688_v50 = vld [vmem:[%s7332_s13 + $0x330] sm:$0xff]  ;;  %v3689_v56 = vld [vmem:[%s7332_s13 + $0x338] sm:$0xff] }
 0xc80   :  { %4922 = vmatprep.subr.bf16.mxu0 %v5566_v23  ;;  %5042 = vmatprep.subr.bf16.mxu1 %v5566_v23  ;;  %v5064_v40 = vpack.c.bf16 %v3689_v56, %v3688_v50  ;;  %v3629_v50 = vld [vmem:[%s7332_s13 + $0x158] sm:$0xff] }
 0xc83   :  { %4924 = vmatpush3.bf16.msra.mxu0 %v4923_v41  ;;  %5044 = vmatpush3.bf16.msra.mxu1 %v5043_v57  ;;  %v3690_v41 = vld [vmem:[%s7332_s13 + $0x340] sm:$0xff]  ;;  %v3691_v57 = vld [vmem:[%s7332_s13 + $0x348] sm:$0xff] }
 0xc84   :  { %4925 = vmatprep.subr.bf16.mxu0 %v5566_v23  ;;  %5045 = vmatprep.subr.bf16.mxu1 %v5566_v23  ;;  %v5067_v22 = vpack.c.bf16 %v3691_v57, %v3690_v41  ;;  %v3631_v41 = vld [vmem:[%s7332_s13 + $0x168] sm:$0xff] }
 0xc87   :  { %4927 = vmatpush3.bf16.msra.mxu0 %v4926_v30  ;;  %5047 = vmatpush3.bf16.msra.mxu1 %v5046_v7  ;;  %v3692_v30 = vld [vmem:[%s7332_s13 + $0x350] sm:$0xff]  ;;  %v3693_v7 = vld [vmem:[%s7332_s13 + $0x358] sm:$0xff] }
 0xc88   :  { %4928 = vmatprep.subr.bf16.mxu0 %v5566_v23  ;;  %5048 = vmatprep.subr.bf16.mxu1 %v5566_v23  ;;  %v5070_v35 = vpack.c.bf16 %v3693_v7, %v3692_v30  ;;  %v3633_v30 = vld [vmem:[%s7332_s13 + $0x178] sm:$0xff] }
 0xc8b   :  { %4930 = vmatpush3.bf16.msra.mxu0 %v4929_v8  ;;  %5050 = vmatpush3.bf16.msra.mxu1 %v5049_v10  ;;  %v3615_v8 = vld [vmem:[%s7332_s13 + $0xe8] sm:$0xff] }
 0xc8c   :  { %4931 = vmatprep.subr.bf16.mxu0 %v5566_v23  ;;  %5051 = vmatprep.subr.bf16.mxu1 %v5566_v23  ;;  %v3695_v10 = vld [vmem:[%s7332_s13 + $0x368] sm:$0xff]  ;;  %v4953_v36 = vpack.c.bf16 %v3615_v8, %v3614_v3  ;;  %v3713_v3 = vld [vmem:[%s7332_s13 + $0x3f8] sm:$0xff] }
 0xc8d   :  { %v5073_v12 = vpack.c.bf16 %v3695_v10, %v3694_v9  ;;  %v3635_v9 = vld [vmem:[%s7332_s13 + $0x188] sm:$0xff] }
 0xc8f   :  { %4933 = vmatpush3.bf16.msra.mxu0 %v4932_v11  ;;  %5053 = vmatpush3.bf16.msra.mxu1 %v5052_v14  ;;  %v3617_v11 = vld [vmem:[%s7332_s13 + $0xf8] sm:$0xff] }
 0xc90   :  { %4934 = vmatprep.subr.bf16.mxu0 %v5566_v23  ;;  %5054 = vmatprep.subr.bf16.mxu1 %v5566_v23  ;;  %v3697_v14 = vld [vmem:[%s7332_s13 + $0x378] sm:$0xff] }
 0xd23   :  { %v3842_v16 = vpop.f32.mrb[24].mxu0 }
 0xd24   :  { %v3843_v17 = vpop.f32.mrb[25].mxu0 }
 0xd25   :  { %v3844_v51 = vadd.f32 %v3843_v17, %v3842_v16  ;;  %v4956_v16 = vpack.c.bf16 %v3617_v11, %v3616_v63  ;;  %v3618_v17 = vld [vmem:[%s7332_s13 + $0x100] sm:$0xff]  ;;  %v3715_v63 = vld [vmem:[%s7332_s13 + $0x408] sm:$0xff] }
 0xd27   :  { %v3845_v18 = vpop.f32.mrb[26].mxu0 }
 0xd28   :  { %v3846_v46 = vpop.f32.mrb[27].mxu0 }
 0xd29   :  { %v3847_v19 = vadd.f32 %v3846_v46, %v3845_v18  ;;  %v5076_v18 = vpack.c.bf16 %v3697_v14, %v3696_v13  ;;  %v3698_v46 = vld [vmem:[%s7332_s13 + $0x380] sm:$0xff]  ;;  %v3636_v13 = vld [vmem:[%s7332_s13 + $0x190] sm:$0xff]  ;;  %v3637_v14 = vld [vmem:[%s7332_s13 + $0x198] sm:$0xff] }
 0xd43   :  { %v3880_v25 = vpop.f32.mrb[28].mxu0 }
 0xd44   :  { %v3881_v2 = vpop.f32.mrb[29].mxu0 }
 0xd45   :  { %v3882_v0 = vadd.f32 %v3881_v2, %v3880_v25 }
 0xd47   :  { %v1950_v26 = vadd.f32 %v3882_v0, %v3844_v51  ;;  %v3883_v27 = vpop.f32.mrb[30].mxu0  ;;  %v3619_v51 = vld [vmem:[%s7332_s13 + $0x108] sm:$0xff]  ;;  %v3620_v0 = vld [vmem:[%s7332_s13 + $0x110] sm:$0xff] }
 0xd48   :  { %v3884_v31 = vpop.f32.mrb[31].mxu0  ;;  %v4959_v25 = vpack.c.bf16 %v3619_v51, %v3618_v17  ;;  %v4962_v29 = vpack.c.bf16 %v3621_v1, %v3620_v0  ;;  %v3716_v51 = vld [vmem:[%s7332_s13 + $0x410] sm:$0xff]  ;;  %v3718_v0 = vld [vmem:[%s7332_s13 + $0x420] sm:$0xff]  ;;  %v3719_v1 = vld [vmem:[%s7332_s13 + $0x428] sm:$0xff] }
 0xd49   :  { %v6549_v32 = vmax.f32 %v1950_v26, 0.0  ;;  %v3885_v42 = vadd.f32 %v3884_v31, %v3883_v27  ;;  %v3700_v27 = vld [vmem:[%s7332_s13 + $0x390] sm:$0xff]  ;;  %v3622_v31 = vld [vmem:[%s7332_s13 + $0x120] sm:$0xff] }
 0xd4b   :  { %v6557_v54 = vadd.f32 %v3885_v42, %v3847_v19  ;;  %4174 = vmatmul.mubr.f32.vlgmr.msra.gmra.mrb[32].mxu0 %v6549_v32  ;;  %v2426_v55 = vrot.slane %v6549_v32, 5  ;;  %v3699_v19 = vld [vmem:[%s7332_s13 + $0x388] sm:$0xff]  ;;  %v2066_v2 = vrot.slane %v6549_v32, 1  ;;  %v2516_v26 = vrot.slane %v6549_v32, 6 }
 0xd4c   :  { %4936 = vmatpush3.bf16.msra.mxu0 %v4935_v52  ;;  %4208 = vmatprep.mubr.msk.f32.mxu0 %vm5567_vm9, %v5558_v6  ;;  %v5079_v4 = vpack.c.bf16 %v3699_v19, %v3698_v46  ;;  %v3623_v52 = vld [vmem:[%s7332_s13 + $0x128] sm:$0xff]  ;;  %v5082_v42 = vpack.c.bf16 %v3701_v28, %v3700_v27  ;;  %v2606_v17 = vrot.slane %v6549_v32, 7  ;;  %v4986_v46 = vpack.c.bf16 %v3637_v14, %v3636_v13  ;;  %v3638_v19 = vld [vmem:[%s7332_s13 + $0x1a0] sm:$0xff]  ;;  %v3641_v27 = vld [vmem:[%s7332_s13 + $0x1b8] sm:$0xff] }
 0xd4d   :  { %4349 = vmatmul.mubr.f32.vlgmr.msra.gmra.mrb[12].mxu1 %v2426_v55  ;;  %4937 = vmatprep.subr.bf16.mxu0 %v5566_v23  ;;  %v3624_v55 = vld [vmem:[%s7332_s13 + $0x130] sm:$0xff]  ;;  %v5109_v28 = vpack.c.bf16 %v3719_v1, %v3718_v0  ;;  %v3735_v13 = vld [vmem:[%s7332_s13 + $0x4a8] sm:$0xff]  ;;  %v3738_v1 = vld [vmem:[%s7332_s13 + $0x4c0] sm:$0xff] }
 0xd4e   :  { %5056 = vmatpush3.bf16.msra.mxu1 %v5055_v34  ;;  %4383 = vmatprep.mubr.msk.f32.mxu1 %vm5567_vm9, %v5558_v6  ;;  %v4965_v34 = vpack.c.bf16 %v3623_v52, %v3622_v31  ;;  %v4968_v5 = vpack.c.bf16 %v3625_v24, %v3624_v55  ;;  %v3721_v31 = vld [vmem:[%s7332_s13 + $0x438] sm:$0xff]  ;;  %v3723_v55 = vld [vmem:[%s7332_s13 + $0x448] sm:$0xff] }
 0xd4f   :  { %5057 = vmatprep.subr.bf16.mxu1 %v5566_v23 }
 0xd50   :  { %4939 = vmatpush3.bf16.msra.mxu0 %v4938_v44  ;;  %v3704_v44 = vld [vmem:[%s7332_s13 + $0x3b0] sm:$0xff] }
 0xd51   :  { %4940 = vmatprep.subr.bf16.mxu0 %v5566_v23  ;;  %v5088_v47 = vpack.c.bf16 %v3705_v45, %v3704_v44  ;;  %v3645_v44 = vld [vmem:[%s7332_s13 + $0x1d8] sm:$0xff] }
 0xd52   :  { %5059 = vmatpush3.bf16.msra.mxu1 %v5058_v15  ;;  %v3626_v15 = vld [vmem:[%s7332_s13 + $0x140] sm:$0xff] }
 0xd53   :  { %5060 = vmatprep.subr.bf16.mxu1 %v5566_v23  ;;  %v4971_v49 = vpack.c.bf16 %v3627_v60, %v3626_v15  ;;  %v3725_v15 = vld [vmem:[%s7332_s13 + $0x458] sm:$0xff] }
 0xd54   :  { %4942 = vmatpush3.bf16.msra.mxu0 %v4941_v48  ;;  %v3706_v48 = vld [vmem:[%s7332_s13 + $0x3c0] sm:$0xff] }
 0xd55   :  { %4943 = vmatprep.subr.bf16.mxu0 %v5566_v23  ;;  %v5091_v56 = vpack.c.bf16 %v3707_v20, %v3706_v48  ;;  %v3647_v48 = vld [vmem:[%s7332_s13 + $0x1e8] sm:$0xff] }
 0xd56   :  { %5062 = vmatpush3.bf16.msra.mxu1 %v5061_v39  ;;  %v3628_v39 = vld [vmem:[%s7332_s13 + $0x150] sm:$0xff] }
 0xd57   :  { %5063 = vmatprep.subr.bf16.mxu1 %v5566_v23  ;;  %v4974_v38 = vpack.c.bf16 %v3629_v50, %v3628_v39  ;;  %v3727_v39 = vld [vmem:[%s7332_s13 + $0x468] sm:$0xff] }
 0xd58   :  { %4945 = vmatpush3.bf16.msra.mxu0 %v4944_v53  ;;  %v3708_v53 = vld [vmem:[%s7332_s13 + $0x3d0] sm:$0xff] }
 0xd59   :  { %4946 = vmatprep.subr.bf16.mxu0 %v5566_v23  ;;  %v5094_v57 = vpack.c.bf16 %v3709_v37, %v3708_v53  ;;  %v3649_v53 = vld [vmem:[%s7332_s13 + $0x1f8] sm:$0xff] }
 0xd5a   :  { %5065 = vmatpush3.bf16.msra.mxu1 %v5064_v40  ;;  %v3630_v40 = vld [vmem:[%s7332_s13 + $0x160] sm:$0xff] }
 0xd5b   :  { %5066 = vmatprep.subr.bf16.mxu1 %v5566_v23  ;;  %v4977_v61 = vpack.c.bf16 %v3631_v41, %v3630_v40  ;;  %v3729_v40 = vld [vmem:[%s7332_s13 + $0x478] sm:$0xff] }
 0xd5c   :  { %4948 = vmatpush3.bf16.msra.mxu0 %v4947_v58  ;;  %v3710_v58 = vld [vmem:[%s7332_s13 + $0x3e0] sm:$0xff] }
 0xd5d   :  { %4949 = vmatprep.subr.bf16.mxu0 %v5566_v23  ;;  %v5097_v7 = vpack.c.bf16 %v3711_v59, %v3710_v58  ;;  %v3651_v58 = vld [vmem:[%s7332_s13 + $0x208] sm:$0xff] }
 0xd5e   :  { %5068 = vmatpush3.bf16.msra.mxu1 %v5067_v22  ;;  %v3632_v22 = vld [vmem:[%s7332_s13 + $0x170] sm:$0xff] }
 0xd5f   :  { %5069 = vmatprep.subr.bf16.mxu1 %v5566_v23  ;;  %v4980_v8 = vpack.c.bf16 %v3633_v30, %v3632_v22  ;;  %v3731_v22 = vld [vmem:[%s7332_s13 + $0x488] sm:$0xff] }
 0xd60   :  { %4951 = vmatpush3.bf16.msra.mxu0 %v4950_v62  ;;  %v3712_v62 = vld [vmem:[%s7332_s13 + $0x3f0] sm:$0xff] }
 0xd61   :  { %4952 = vmatprep.subr.bf16.mxu0 %v5566_v23  ;;  %v5100_v10 = vpack.c.bf16 %v3713_v3, %v3712_v62  ;;  %v3652_v62 = vld [vmem:[%s7332_s13 + $0x210] sm:$0xff]  ;;  %v3653_v3 = vld [vmem:[%s7332_s13 + $0x218] sm:$0xff] }
 0xd62   :  { %5071 = vmatpush3.bf16.msra.mxu1 %v5070_v35  ;;  %v3634_v35 = vld [vmem:[%s7332_s13 + $0x180] sm:$0xff] }
 0xd63   :  { %5072 = vmatprep.subr.bf16.mxu1 %v5566_v23  ;;  %v4983_v11 = vpack.c.bf16 %v3635_v9, %v3634_v35  ;;  %v6914_v35 = vmax.f32 %v6557_v54, 0.0  ;;  %v3732_v9 = vld [vmem:[%s7332_s13 + $0x490] sm:$0xff]  ;;  %v3654_v54 = vld [vmem:[%s7332_s13 + $0x220] sm:$0xff] }
 0xd64   :  { %4954 = vmatpush3.bf16.msra.mxu0 %v4953_v36  ;;  %v3714_v36 = vld [vmem:[%s7332_s13 + $0x400] sm:$0xff] }
 0xd65   :  { %4955 = vmatprep.subr.bf16.mxu0 %v5566_v23 }
 0xd66   :  { %5074 = vmatpush3.bf16.msra.mxu1 %v5073_v12  ;;  %v2156_v12 = vrot.slane %v6549_v32, 2 }
 0xd67   :  { %5075 = vmatprep.subr.bf16.mxu1 %v5566_v23 }
 0xd68   :  { %4957 = vmatpush3.bf16.msra.mxu0 %v4956_v16  ;;  %v5103_v16 = vpack.c.bf16 %v3715_v63, %v3714_v36  ;;  %v5010_v36 = vpack.c.bf16 %v3653_v3, %v3652_v62  ;;  %v3655_v63 = vld [vmem:[%s7332_s13 + $0x228] sm:$0xff]  ;;  %v3757_v62 = vld [vmem:[%s7332_s13 + $0x558] sm:$0xff] }
 0xd69   :  { %4958 = vmatprep.subr.bf16.mxu0 %v5566_v23  ;;  %v5013_v14 = vpack.c.bf16 %v3655_v63, %v3654_v54  ;;  %v3761_v54 = vld [vmem:[%s7332_s13 + $0x578] sm:$0xff] }
 0xd6a   :  { %5077 = vmatpush3.bf16.msra.mxu1 %v5076_v18  ;;  %v3717_v18 = vld [vmem:[%s7332_s13 + $0x418] sm:$0xff] }
 0xd6b   :  { %4209 = vmatmul.mubr.f32.vlgmr.msra.gmra.mrb[32].mxu0 %v2066_v2  ;;  %5078 = vmatprep.subr.bf16.mxu1 %v5566_v23  ;;  %v5106_v2 = vpack.c.bf16 %v3717_v18, %v3716_v51  ;;  %v3736_v18 = vld [vmem:[%s7332_s13 + $0x4b0] sm:$0xff] }
 0xd6c   :  { %4960 = vmatpush3.bf16.msra.mxu0 %v4959_v25  ;;  %4243 = vmatprep.mubr.msk.f32.mxu0 %vm5567_vm9, %v5558_v6  ;;  %v3639_v25 = vld [vmem:[%s7332_s13 + $0x1a8] sm:$0xff] }
 0xd6d   :  { %4384 = vmatmul.mubr.f32.vlgmr.msra.gmra.mrb[12].mxu1 %v2516_v26  ;;  %4961 = vmatprep.subr.bf16.mxu0 %v5566_v23  ;;  %v3640_v26 = vld [vmem:[%s7332_s13 + $0x1b0] sm:$0xff] }
 0xd6e   :  { %5080 = vmatpush3.bf16.msra.mxu1 %v5079_v4  ;;  %4418 = vmatprep.mubr.msk.f32.mxu1 %vm5567_vm9, %v5558_v6  ;;  %v4989_v4 = vpack.c.bf16 %v3639_v25, %v3638_v19  ;;  %v4992_v52 = vpack.c.bf16 %v3641_v27, %v3640_v26  ;;  %v3658_v25 = vld [vmem:[%s7332_s13 + $0x240] sm:$0xff]  ;;  %v3660_v27 = vld [vmem:[%s7332_s13 + $0x250] sm:$0xff] }
 0xd6f   :  { %5081 = vmatprep.subr.bf16.mxu1 %v5566_v23 }
 0xd70   :  { %4963 = vmatpush3.bf16.msra.mxu0 %v4962_v29  ;;  %v3720_v29 = vld [vmem:[%s7332_s13 + $0x430] sm:$0xff] }
 0xd71   :  { %4964 = vmatprep.subr.bf16.mxu0 %v5566_v23  ;;  %v5112_v33 = vpack.c.bf16 %v3721_v31, %v3720_v29  ;;  %v3740_v31 = vld [vmem:[%s7332_s13 + $0x4d0] sm:$0xff] }
 0xd72   :  { %5083 = vmatpush3.bf16.msra.mxu1 %v5082_v42  ;;  %v3642_v42 = vld [vmem:[%s7332_s13 + $0x1c0] sm:$0xff] }
 0xd73   :  { %5084 = vmatprep.subr.bf16.mxu1 %v5566_v23  ;;  %v4995_v24 = vpack.c.bf16 %v3643_v21, %v3642_v42  ;;  %v3662_v21 = vld [vmem:[%s7332_s13 + $0x260] sm:$0xff] }
 0xd74   :  { %4966 = vmatpush3.bf16.msra.mxu0 %v4965_v34  ;;  %v3722_v34 = vld [vmem:[%s7332_s13 + $0x440] sm:$0xff] }
 0xd75   :  { %4967 = vmatprep.subr.bf16.mxu0 %v5566_v23  ;;  %v5115_v45 = vpack.c.bf16 %v3723_v55, %v3722_v34  ;;  %v3742_v55 = vld [vmem:[%s7332_s13 + $0x4e0] sm:$0xff] }
 0xd76   :  { %5086 = vmatpush3.bf16.msra.mxu1 %v5085_v43  ;;  %v3644_v43 = vld [vmem:[%s7332_s13 + $0x1d0] sm:$0xff] }
 0xd77   :  { %5087 = vmatprep.subr.bf16.mxu1 %v5566_v23  ;;  %v4998_v60 = vpack.c.bf16 %v3645_v44, %v3644_v43  ;;  %v3664_v44 = vld [vmem:[%s7332_s13 + $0x270] sm:$0xff] }
 0xd78   :  { %4969 = vmatpush3.bf16.msra.mxu0 %v4968_v5  ;;  %v3724_v5 = vld [vmem:[%s7332_s13 + $0x450] sm:$0xff] }
 0xd79   :  { %4970 = vmatprep.subr.bf16.mxu0 %v5566_v23  ;;  %v5118_v20 = vpack.c.bf16 %v3725_v15, %v3724_v5  ;;  %v3744_v15 = vld [vmem:[%s7332_s13 + $0x4f0] sm:$0xff] }
 0xd7a   :  { %5089 = vmatpush3.bf16.msra.mxu1 %v5088_v47  ;;  %v3646_v47 = vld [vmem:[%s7332_s13 + $0x1e0] sm:$0xff] }
 0xd7b   :  { %5090 = vmatprep.subr.bf16.mxu1 %v5566_v23  ;;  %v5001_v50 = vpack.c.bf16 %v3647_v48, %v3646_v47 }
 0xd7c   :  { %4972 = vmatpush3.bf16.msra.mxu0 %v4971_v49  ;;  %v3726_v49 = vld [vmem:[%s7332_s13 + $0x460] sm:$0xff] }
 0xd7d   :  { %4973 = vmatprep.subr.bf16.mxu0 %v5566_v23  ;;  %v5121_v37 = vpack.c.bf16 %v3727_v39, %v3726_v49  ;;  %v3747_v49 = vld [vmem:[%s7332_s13 + $0x508] sm:$0xff]  ;;  %v2336_v39 = vrot.slane %v6549_v32, 4 }
 0xd7e   :  { %5092 = vmatpush3.bf16.msra.mxu1 %v5091_v56  ;;  %v3648_v56 = vld [vmem:[%s7332_s13 + $0x1f0] sm:$0xff] }
 0xd7f   :  { %5093 = vmatprep.subr.bf16.mxu1 %v5566_v23  ;;  %v5004_v41 = vpack.c.bf16 %v3649_v53, %v3648_v56  ;;  %v2785_v56 = vrot.slane %v6914_v35, 1  ;;  %v3748_v53 = vld [vmem:[%s7332_s13 + $0x510] sm:$0xff] }
 0xd80   :  { %4975 = vmatpush3.bf16.msra.mxu0 %v4974_v38  ;;  %v3728_v38 = vld [vmem:[%s7332_s13 + $0x470] sm:$0xff] }
 0xd81   :  { %4976 = vmatprep.subr.bf16.mxu0 %v5566_v23  ;;  %v5124_v59 = vpack.c.bf16 %v3729_v40, %v3728_v38  ;;  %v3750_v38 = vld [vmem:[%s7332_s13 + $0x520] sm:$0xff]  ;;  %v3751_v40 = vld [vmem:[%s7332_s13 + $0x528] sm:$0xff] }
 0xd82   :  { %5095 = vmatpush3.bf16.msra.mxu1 %v5094_v57  ;;  %v3650_v57 = vld [vmem:[%s7332_s13 + $0x200] sm:$0xff] }
 0xd83   :  { %5096 = vmatprep.subr.bf16.mxu1 %v5566_v23  ;;  %v5007_v30 = vpack.c.bf16 %v3651_v58, %v3650_v57  ;;  %v3752_v57 = vld [vmem:[%s7332_s13 + $0x530] sm:$0xff]  ;;  %v3753_v58 = vld [vmem:[%s7332_s13 + $0x538] sm:$0xff] }
 0xd84   :  { %4978 = vmatpush3.bf16.msra.mxu0 %v4977_v61  ;;  %v3730_v61 = vld [vmem:[%s7332_s13 + $0x480] sm:$0xff] }
 0xd85   :  { %4979 = vmatprep.subr.bf16.mxu0 %v5566_v23 }
 0xd86   :  { %5098 = vmatpush3.bf16.msra.mxu1 %v5097_v7  ;;  %v2246_v7 = vrot.slane %v6549_v32, 3 }
 0xd87   :  { %5099 = vmatprep.subr.bf16.mxu1 %v5566_v23 }
 0xd88   :  { %4981 = vmatpush3.bf16.msra.mxu0 %v4980_v8  ;;  %v5127_v8 = vpack.c.bf16 %v3731_v22, %v3730_v61  ;;  %v3754_v61 = vld [vmem:[%s7332_s13 + $0x540] sm:$0xff]  ;;  %v3755_v22 = vld [vmem:[%s7332_s13 + $0x548] sm:$0xff] }
 0xd89   :  { %4982 = vmatprep.subr.bf16.mxu0 %v5566_v23 }
 0xd8a   :  { %5101 = vmatpush3.bf16.msra.mxu1 %v5100_v10  ;;  %v3733_v10 = vld [vmem:[%s7332_s13 + $0x498] sm:$0xff] }
 0xd8b   :  { %4244 = vmatmul.mubr.f32.vlgmr.msra.gmra.mrb[32].mxu0 %v2156_v12  ;;  %5102 = vmatprep.subr.bf16.mxu1 %v5566_v23  ;;  %v3734_v12 = vld [vmem:[%s7332_s13 + $0x4a0] sm:$0xff] }
 0xd8c   :  { %4984 = vmatpush3.bf16.msra.mxu0 %v4983_v11  ;;  %4278 = vmatprep.mubr.msk.f32.mxu0 %vm5567_vm9, %v5558_v6  ;;  %v5130_v11 = vpack.c.bf16 %v3733_v10, %v3732_v9  ;;  %v5133_v51 = vpack.c.bf16 %v3735_v13, %v3734_v12  ;;  %v3759_v9 = vld [vmem:[%s7332_s13 + $0x568] sm:$0xff] }
 0xd8d   :  { %4419 = vmatmul.mubr.f32.vlgmr.msra.gmra.mrb[12].mxu1 %v2606_v17  ;;  %4985 = vmatprep.subr.bf16.mxu0 %v5566_v23  ;;  %v3657_v17 = vld [vmem:[%s7332_s13 + $0x238] sm:$0xff]  ;;  %v3763_v12 = vld [vmem:[%s7332_s13 + $0x588] sm:$0xff] }
 0xd8e   :  { %5104 = vmatpush3.bf16.msra.mxu1 %v5103_v16  ;;  %4453 = vmatprep.mubr.msk.f32.mxu1 %vm5567_vm9, %v5558_v6  ;;  %v3656_v16 = vld [vmem:[%s7332_s13 + $0x230] sm:$0xff] }
 0xd8f   :  { %5105 = vmatprep.subr.bf16.mxu1 %v5566_v23  ;;  %v5016_v19 = vpack.c.bf16 %v3657_v17, %v3656_v16  ;;  %v3764_v16 = vld [vmem:[%s7332_s13 + $0x590] sm:$0xff]  ;;  %v3765_v17 = vld [vmem:[%s7332_s13 + $0x598] sm:$0xff] }
 0xd90   :  { %4987 = vmatpush3.bf16.msra.mxu0 %v4986_v46  ;;  %v3737_v46 = vld [vmem:[%s7332_s13 + $0x4b8] sm:$0xff] }
 0xd91   :  { %4988 = vmatprep.subr.bf16.mxu0 %v5566_v23  ;;  %v5136_v0 = vpack.c.bf16 %v3737_v46, %v3736_v18  ;;  %v3766_v18 = vld [vmem:[%s7332_s13 + $0x5a0] sm:$0xff]  ;;  %v3767_v46 = vld [vmem:[%s7332_s13 + $0x5a8] sm:$0xff] }
 0xd92   :  { %5107 = vmatpush3.bf16.msra.mxu1 %v5106_v2  ;;  %v3659_v2 = vld [vmem:[%s7332_s13 + $0x248] sm:$0xff] }
 0xd93   :  { %5108 = vmatprep.subr.bf16.mxu1 %v5566_v23  ;;  %v5019_v26 = vpack.c.bf16 %v3659_v2, %v3658_v25  ;;  %v3768_v25 = vld [vmem:[%s7332_s13 + $0x5b0] sm:$0xff]  ;;  %v3769_v2 = vld [vmem:[%s7332_s13 + $0x5b8] sm:$0xff] }
 0xd94   :  { %4990 = vmatpush3.bf16.msra.mxu0 %v4989_v4  ;;  %v3739_v4 = vld [vmem:[%s7332_s13 + $0x4c8] sm:$0xff] }
 0xd95   :  { %4991 = vmatprep.subr.bf16.mxu0 %v5566_v23  ;;  %v5139_v29 = vpack.c.bf16 %v3739_v4, %v3738_v1  ;;  %v3770_v1 = vld [vmem:[%s7332_s13 + $0x5c0] sm:$0xff]  ;;  %v3771_v4 = vld [vmem:[%s7332_s13 + $0x5c8] sm:$0xff] }
 0xd96   :  { %5110 = vmatpush3.bf16.msra.mxu1 %v5109_v28  ;;  %v3661_v28 = vld [vmem:[%s7332_s13 + $0x258] sm:$0xff] }
 0xd97   :  { %5111 = vmatprep.subr.bf16.mxu1 %v5566_v23  ;;  %v5022_v42 = vpack.c.bf16 %v3661_v28, %v3660_v27  ;;  %v3772_v27 = vld [vmem:[%s7332_s13 + $0x5d0] sm:$0xff]  ;;  %v3773_v28 = vld [vmem:[%s7332_s13 + $0x5d8] sm:$0xff] }
 0xd98   :  { %4993 = vmatpush3.bf16.msra.mxu0 %v4992_v52  ;;  %v3741_v52 = vld [vmem:[%s7332_s13 + $0x4d8] sm:$0xff] }
 0xd99   :  { %4994 = vmatprep.subr.bf16.mxu0 %v5566_v23  ;;  %v5142_v34 = vpack.c.bf16 %v3741_v52, %v3740_v31  ;;  %v3774_v31 = vld [vmem:[%s7332_s13 + $0x5e0] sm:$0xff]  ;;  %v3775_v52 = vld [vmem:[%s7332_s13 + $0x5e8] sm:$0xff] }
 0xd9a   :  { %5113 = vmatpush3.bf16.msra.mxu1 %v5112_v33  ;;  %v3663_v33 = vld [vmem:[%s7332_s13 + $0x268] sm:$0xff] }
 0xd9b   :  { %5114 = vmatprep.subr.bf16.mxu1 %v5566_v23  ;;  %v5025_v43 = vpack.c.bf16 %v3663_v33, %v3662_v21  ;;  %v3776_v21 = vld [vmem:[%s7332_s13 + $0x5f0] sm:$0xff]  ;;  %v3777_v33 = vld [vmem:[%s7332_s13 + $0x5f8] sm:$0xff] }
 0xd9c   :  { %4996 = vmatpush3.bf16.msra.mxu0 %v4995_v24  ;;  %v3743_v24 = vld [vmem:[%s7332_s13 + $0x4e8] sm:$0xff] }
 0xd9d   :  { %4997 = vmatprep.subr.bf16.mxu0 %v5566_v23  ;;  %v5145_v5 = vpack.c.bf16 %v3743_v24, %v3742_v55  ;;  %v3778_v55 = vld [vmem:[%s7332_s13 + $0x600] sm:$0xff]  ;;  %v3779_v24 = vld [vmem:[%s7332_s13 + $0x608] sm:$0xff] }
 0xd9e   :  { %5116 = vmatpush3.bf16.msra.mxu1 %v5115_v45  ;;  %v3665_v45 = vld [vmem:[%s7332_s13 + $0x278] sm:$0xff] }
 0xd9f   :  { %5117 = vmatprep.subr.bf16.mxu1 %v5566_v23  ;;  %v5028_v47 = vpack.c.bf16 %v3665_v45, %v3664_v44  ;;  %v2965_v44 = vrot.slane %v6914_v35, 3  ;;  %v3780_v45 = vld [vmem:[%s7332_s13 + $0x610] sm:$0xff] }
 0xda0   :  { %4999 = vmatpush3.bf16.msra.mxu0 %v4998_v60  ;;  %v3745_v60 = vld [vmem:[%s7332_s13 + $0x4f8] sm:$0xff] }
 0xda1   :  { %5000 = vmatprep.subr.bf16.mxu0 %v5566_v23  ;;  %v5148_v48 = vpack.c.bf16 %v3745_v60, %v3744_v15  ;;  %v3782_v60 = vld [vmem:[%s7332_s13 + $0x620] sm:$0xff] }
 0xda2   :  { %5119 = vmatpush3.bf16.msra.mxu1 %v5118_v20  ;;  %v3746_v20 = vld [vmem:[%s7332_s13 + $0x500] sm:$0xff] }
 0xda3   :  { %5120 = vmatprep.subr.bf16.mxu1 %v5566_v23 }
 0xda4   :  { %5002 = vmatpush3.bf16.msra.mxu0 %v5001_v50  ;;  %v5151_v50 = vpack.c.bf16 %v3747_v49, %v3746_v20  ;;  %v3784_v20 = vld [vmem:[%s7332_s13 + $0x630] sm:$0xff]  ;;  %v3785_v49 = vld [vmem:[%s7332_s13 + $0x638] sm:$0xff] }
 0xda5   :  { %5003 = vmatprep.subr.bf16.mxu0 %v5566_v23 }
 0xda6   :  { %5122 = vmatpush3.bf16.msra.mxu1 %v5121_v37  ;;  %v3749_v37 = vld [vmem:[%s7332_s13 + $0x518] sm:$0xff] }
 0xda7   :  { %5123 = vmatprep.subr.bf16.mxu1 %v5566_v23  ;;  %v5154_v32 = vpack.c.bf16 %v3749_v37, %v3748_v53  ;;  %v3788_v37 = vld [vmem:[%s7332_s13 + $0x650] sm:$0xff] }
 0xda8   :  { %5005 = vmatpush3.bf16.msra.mxu0 %v5004_v41  ;;  %v5157_v41 = vpack.c.bf16 %v3751_v40, %v3750_v38  ;;  %v3790_v40 = vld [vmem:[%s7332_s13 + $0x660] sm:$0xff] }
 0xda9   :  { %5006 = vmatprep.subr.bf16.mxu0 %v5566_v23 }
 0xdaa   :  { %5125 = vmatpush3.bf16.msra.mxu1 %v5124_v59  ;;  %v5160_v59 = vpack.c.bf16 %v3753_v58, %v3752_v57  ;;  %v3219_v57 = vld [vmem:[%s7333_s15] sm:$0xff]  ;;  %v3220_v58 = vld [vmem:[%s7333_s15 + $0x8] sm:$0xff] }
 0xdab   :  { %4279 = vmatmul.mubr.f32.vlgmr.msra.gmra.mrb[32].mxu0 %v2246_v7  ;;  %5126 = vmatprep.subr.bf16.mxu1 %v5566_v23  ;;  %v3756_v7 = vld [vmem:[%s7332_s13 + $0x550] sm:$0xff] }
 0xdac   :  { %5008 = vmatpush3.bf16.msra.mxu0 %v5007_v30  ;;  %4313 = vmatprep.mubr.msk.f32.mxu0 %vm5567_vm9, %v5558_v6  ;;  %v5163_v30 = vpack.c.bf16 %v3755_v22, %v3754_v61  ;;  %v5166_v3 = vpack.c.bf16 %v3757_v62, %v3756_v7  ;;  %v5247_v61 = vpack.c.bf16 %v3220_v58, %v3219_v57  ;;  %v3222_v22 = vld [vmem:[%s7333_s15 + $0x18] sm:$0xff]  ;;  %v3792_v7 = vld [vmem:[%s7332_s13 + $0x670] sm:$0xff] }
 0xdad   :  { %4454 = vmatmul.mubr.f32.vlgmr.msra.gmra.mrb[12].mxu1 %v6914_v35  ;;  %5009 = vmatprep.subr.bf16.mxu0 %v5566_v23  ;;  %v3793_v62 = vld [vmem:[%s7332_s13 + $0x678] sm:$0xff] }
 0xdae   :  { %5128 = vmatpush3.bf16.msra.mxu1 %v5127_v8  ;;  %4488 = vmatprep.mubr.msk.f32.mxu1 %vm5567_vm9, %v5558_v6  ;;  %v3758_v8 = vld [vmem:[%s7332_s13 + $0x560] sm:$0xff] }
 0xdaf   :  { %5129 = vmatprep.subr.bf16.mxu1 %v5566_v23  ;;  %v5169_v10 = vpack.c.bf16 %v3759_v9, %v3758_v8  ;;  %v3223_v8 = vld [vmem:[%s7333_s15 + $0x20] sm:$0xff]  ;;  %v3224_v9 = vld [vmem:[%s7333_s15 + $0x28] sm:$0xff] }
 0xdb0   :  { %5011 = vmatpush3.bf16.msra.mxu0 %v5010_v36  ;;  %v3760_v36 = vld [vmem:[%s7332_s13 + $0x570] sm:$0xff] }
 0xdb1   :  { %5012 = vmatprep.subr.bf16.mxu0 %v5566_v23  ;;  %v5172_v63 = vpack.c.bf16 %v3761_v54, %v3760_v36  ;;  %v3794_v36 = vld [vmem:[%s7332_s13 + $0x680] sm:$0xff]  ;;  %v3795_v54 = vld [vmem:[%s7332_s13 + $0x688] sm:$0xff] }
 0xdb2   :  { %5131 = vmatpush3.bf16.msra.mxu1 %v5130_v11  ;;  %v3762_v11 = vld [vmem:[%s7332_s13 + $0x580] sm:$0xff] }
 0xdb3   :  { %5132 = vmatprep.subr.bf16.mxu1 %v5566_v23  ;;  %v5175_v13 = vpack.c.bf16 %v3763_v12, %v3762_v11  ;;  %v3225_v11 = vld [vmem:[%s7333_s15 + $0x30] sm:$0xff]  ;;  %v3226_v12 = vld [vmem:[%s7333_s15 + $0x38] sm:$0xff] }
 0xdb4   :  { %5014 = vmatpush3.bf16.msra.mxu0 %v5013_v14  ;;  %v2875_v14 = vrot.slane %v6914_v35, 2 }
 0xdb5   :  { %5015 = vmatprep.subr.bf16.mxu0 %v5566_v23 }
 0xdb6   :  { %5134 = vmatpush3.bf16.msra.mxu1 %v5133_v51  ;;  %v5178_v51 = vpack.c.bf16 %v3765_v17, %v3764_v16  ;;  %v3796_v16 = vld [vmem:[%s7332_s13 + $0x690] sm:$0xff]  ;;  %v3797_v17 = vld [vmem:[%s7332_s13 + $0x698] sm:$0xff] }
 0xdb7   :  { %5135 = vmatprep.subr.bf16.mxu1 %v5566_v23 }
 0xdb8   :  { %5017 = vmatpush3.bf16.msra.mxu0 %v5016_v19  ;;  %v5181_v19 = vpack.c.bf16 %v3767_v46, %v3766_v18  ;;  %v3227_v18 = vld [vmem:[%s7333_s15 + $0x40] sm:$0xff]  ;;  %v3228_v46 = vld [vmem:[%s7333_s15 + $0x48] sm:$0xff] }
 0xdb9   :  { %5018 = vmatprep.subr.bf16.mxu0 %v5566_v23 }
 0xdba   :  { %5137 = vmatpush3.bf16.msra.mxu1 %v5136_v0  ;;  %v5184_v0 = vpack.c.bf16 %v3769_v2, %v3768_v25  ;;  %v3798_v25 = vld [vmem:[%s7332_s13 + $0x6a0] sm:$0xff]  ;;  %v3799_v2 = vld [vmem:[%s7332_s13 + $0x6a8] sm:$0xff] }
 0xdbb   :  { %5138 = vmatprep.subr.bf16.mxu1 %v5566_v23 }
 0xdbc   :  { %5020 = vmatpush3.bf16.msra.mxu0 %v5019_v26  ;;  %v5187_v26 = vpack.c.bf16 %v3771_v4, %v3770_v1  ;;  %v3229_v1 = vld [vmem:[%s7333_s15 + $0x50] sm:$0xff]  ;;  %v5229_v4 = vpack.c.bf16 %v3799_v2, %v3798_v25 }
 0xdbd   :  { %5021 = vmatprep.subr.bf16.mxu0 %v5566_v23 }
 0xdbe   :  { %5140 = vmatpush3.bf16.msra.mxu1 %v5139_v29  ;;  %v5190_v29 = vpack.c.bf16 %v3773_v28, %v3772_v27  ;;  %v3801_v27 = vld [vmem:[%s7332_s13 + $0x6b8] sm:$0xff] }
 0xdbf   :  { %5141 = vmatprep.subr.bf16.mxu1 %v5566_v23 }
 0xdc0   :  { %5023 = vmatpush3.bf16.msra.mxu0 %v5022_v42  ;;  %v5193_v42 = vpack.c.bf16 %v3775_v52, %v3774_v31  ;;  %v3232_v31 = vld [vmem:[%s7333_s15 + $0x68] sm:$0xff] }
 0xdc1   :  { %5024 = vmatprep.subr.bf16.mxu0 %v5566_v23 }
 0xdc2   :  { %5143 = vmatpush3.bf16.msra.mxu1 %v5142_v34  ;;  %v5196_v34 = vpack.c.bf16 %v3777_v33, %v3776_v21  ;;  %v3803_v21 = vld [vmem:[%s7332_s13 + $0x6c8] sm:$0xff] }
 0xdc3   :  { %5144 = vmatprep.subr.bf16.mxu1 %v5566_v23 }
 0xdc4   :  { %5026 = vmatpush3.bf16.msra.mxu0 %v5025_v43  ;;  %v5199_v43 = vpack.c.bf16 %v3779_v24, %v3778_v55  ;;  %v3804_v55 = vld [vmem:[%s7332_s13 + $0x6d0] sm:$0xff]  ;;  %v3805_v24 = vld [vmem:[%s7332_s13 + $0x6d8] sm:$0xff] }
 0xdc5   :  { %5027 = vmatprep.subr.bf16.mxu0 %v5566_v23 }
 0xdc6   :  { %5146 = vmatpush3.bf16.msra.mxu1 %v5145_v5  ;;  %v3781_v5 = vld [vmem:[%s7332_s13 + $0x618] sm:$0xff] }
 0xdc7   :  { %5147 = vmatprep.subr.bf16.mxu1 %v5566_v23  ;;  %v5202_v15 = vpack.c.bf16 %v3781_v5, %v3780_v45  ;;  %v3807_v45 = vld [vmem:[%s7332_s13 + $0x6e8] sm:$0xff] }
 0xdc8   :  { %5029 = vmatpush3.bf16.msra.mxu0 %v5028_v47  ;;  %v3783_v47 = vld [vmem:[%s7332_s13 + $0x628] sm:$0xff] }
 0xdc9   :  { %5246 = vmatprep.subr.bf16.mxu0 %v5566_v23 }
 0xdca   :  { %5149 = vmatpush3.bf16.msra.mxu1 %v5148_v48  ;;  %v5205_v48 = vpack.c.bf16 %v3783_v47, %v3782_v60  ;;  %v3809_v60 = vld [vmem:[%s7332_s13 + $0x6f8] sm:$0xff] }
 0xdcb   :  { %4314 = vmatmul.mubr.f32.vlgmr.msra.gmra.mrb[32].mxu0 %v2336_v39  ;;  %5150 = vmatprep.subr.bf16.mxu1 %v5566_v23  ;;  %v5208_v39 = vpack.c.bf16 %v3785_v49, %v3784_v20 }
 0xdcc   :  { %4663 = vmatprep.mubr.msk.f32.mxu0 %vm5567_vm9, %v5558_v6  ;;  %5248 = vmatpush3.bf16.msra.mxu0 %v5247_v61 }
 0xdcd   :  { %4489 = vmatmul.mubr.f32.vlgmr.msra.gmra.mrb[12].mxu1 %v2785_v56  ;;  %v3787_v56 = vld [vmem:[%s7332_s13 + $0x648] sm:$0xff]  ;;  %5249 = vmatprep.subr.bf16.mxu0 %v5566_v23 }
 0xdce   :  { %5152 = vmatpush3.bf16.msra.mxu1 %v5151_v50  ;;  %4523 = vmatprep.mubr.msk.f32.mxu1 %vm5567_vm9, %v5558_v6  ;;  %v3786_v50 = vld [vmem:[%s7332_s13 + $0x640] sm:$0xff] }
 0xdcf   :  { %5153 = vmatprep.subr.bf16.mxu1 %v5566_v23  ;;  %v5211_v53 = vpack.c.bf16 %v3787_v56, %v3786_v50  ;;  %v3234_v50 = vld [vmem:[%s7333_s15 + $0x78] sm:$0xff] }
 0xdd2   :  { %5155 = vmatpush3.bf16.msra.mxu1 %v5154_v32  ;;  %v3789_v32 = vld [vmem:[%s7332_s13 + $0x658] sm:$0xff] }
 0xdd3   :  { %5156 = vmatprep.subr.bf16.mxu1 %v5566_v23  ;;  %v5214_v38 = vpack.c.bf16 %v3789_v32, %v3788_v37 }
 0xdd6   :  { %5158 = vmatpush3.bf16.msra.mxu1 %v5157_v41  ;;  %v3791_v41 = vld [vmem:[%s7332_s13 + $0x668] sm:$0xff] }
 0xdd7   :  { %5159 = vmatprep.subr.bf16.mxu1 %v5566_v23 }
 0xdda   :  { %5161 = vmatpush3.bf16.msra.mxu1 %v5160_v59  ;;  %v3221_v59 = vld [vmem:[%s7333_s15 + $0x10] sm:$0xff] }
 0xddb   :  { %5162 = vmatprep.subr.bf16.mxu1 %v5566_v23 }
 0xdde   :  { %5164 = vmatpush3.bf16.msra.mxu1 %v5163_v30  ;;  %v5217_v30 = vpack.c.bf16 %v3791_v41, %v3790_v40  ;;  %v3235_v40 = vld [vmem:[%s7335_s16] sm:$0x1] }
 0xddf   :  { %5165 = vmatprep.subr.bf16.mxu1 %v5566_v23 }
 0xde2   :  { %5167 = vmatpush3.bf16.msra.mxu1 %v5166_v3  ;;  %v5250_v3 = vpack.c.bf16 %v3222_v22, %v3221_v59 }
 0xde3   :  { %5168 = vmatprep.subr.bf16.mxu1 %v5566_v23 }
 0xde4   :  { %5251 = vmatpush3.bf16.msra.mxu0 %v5250_v3 }
 0xde5   :  { %5252 = vmatprep.subr.bf16.mxu0 %v5566_v23 }
 0xde6   :  { %5170 = vmatpush3.bf16.msra.mxu1 %v5169_v10  ;;  %v5220_v10 = vpack.c.bf16 %v3793_v62, %v3792_v7 }
 0xde7   :  { %5171 = vmatprep.subr.bf16.mxu1 %v5566_v23 }
 0xdea   :  { %5173 = vmatpush3.bf16.msra.mxu1 %v5172_v63  ;;  %v5253_v63 = vpack.c.bf16 %v3224_v9, %v3223_v8 }
 0xdeb   :  { %5174 = vmatprep.subr.bf16.mxu1 %v5566_v23 }
 0xdec   :  { %5254 = vmatpush3.bf16.msra.mxu0 %v5253_v63 }
 0xded   :  { %4524 = vmatmul.mubr.f32.vlgmr.msra.gmra.mrb[12].mxu1 %v2875_v14  ;;  %v3055_v14 = vrot.slane %v6914_v35, 4  ;;  %5255 = vmatprep.subr.bf16.mxu0 %v5566_v23 }
 0xdee   :  { %5176 = vmatpush3.bf16.msra.mxu1 %v5175_v13  ;;  %4558 = vmatprep.mubr.msk.f32.mxu1 %vm5567_vm9, %v5558_v6  ;;  %v5223_v13 = vpack.c.bf16 %v3795_v54, %v3794_v36 }
 0xdef   :  { %5177 = vmatprep.subr.bf16.mxu1 %v5566_v23 }
 0xdf2   :  { %5179 = vmatpush3.bf16.msra.mxu1 %v5178_v51  ;;  %v5256_v51 = vpack.c.bf16 %v3226_v12, %v3225_v11 }
 0xdf3   :  { %5180 = vmatprep.subr.bf16.mxu1 %v5566_v23 }
 0xdf4   :  { %5257 = vmatpush3.bf16.msra.mxu0 %v5256_v51 }
 0xdf5   :  { %5258 = vmatprep.subr.bf16.mxu0 %v5566_v23 }
 0xdf6   :  { %5182 = vmatpush3.bf16.msra.mxu1 %v5181_v19  ;;  %v5226_v19 = vpack.c.bf16 %v3797_v17, %v3796_v16 }
 0xdf7   :  { %5183 = vmatprep.subr.bf16.mxu1 %v5566_v23 }
 0xdfa   :  { %5185 = vmatpush3.bf16.msra.mxu1 %v5184_v0  ;;  %v5259_v0 = vpack.c.bf16 %v3228_v46, %v3227_v18 }
 0xdfb   :  { %5186 = vmatprep.subr.bf16.mxu1 %v5566_v23 }
 0xdfc   :  { %5260 = vmatpush3.bf16.msra.mxu0 %v5259_v0 }
 0xdfd   :  { %5261 = vmatprep.subr.bf16.mxu0 %v5566_v23 }
 0xdfe   :  { %5188 = vmatpush3.bf16.msra.mxu1 %v5187_v26  ;;  %v3800_v26 = vld [vmem:[%s7332_s13 + $0x6b0] sm:$0xff] }
 0xdff   :  { %5189 = vmatprep.subr.bf16.mxu1 %v5566_v23  ;;  %v5232_v52 = vpack.c.bf16 %v3801_v27, %v3800_v26 }
 0xe02   :  { %5191 = vmatpush3.bf16.msra.mxu1 %v5190_v29  ;;  %v3231_v29 = vld [vmem:[%s7333_s15 + $0x60] sm:$0xff] }
 0xe03   :  { %5192 = vmatprep.subr.bf16.mxu1 %v5566_v23  ;;  %v5265_v33 = vpack.c.bf16 %v3232_v31, %v3231_v29 }
 0xe06   :  { %5194 = vmatpush3.bf16.msra.mxu1 %v5193_v42  ;;  %v3802_v42 = vld [vmem:[%s7332_s13 + $0x6c0] sm:$0xff] }
 0xe07   :  { %5195 = vmatprep.subr.bf16.mxu1 %v5566_v23 }
 0xe0a   :  { %5197 = vmatpush3.bf16.msra.mxu1 %v5196_v34  ;;  %v5235_v34 = vpack.c.bf16 %v3803_v21, %v3802_v42 }
 0xe0b   :  { %5198 = vmatprep.subr.bf16.mxu1 %v5566_v23 }
 0xe0d   :  { %4559 = vmatmul.mubr.f32.vlgmr.msra.gmra.mrb[12].mxu1 %v2965_v44  ;;  %v3806_v44 = vld [vmem:[%s7332_s13 + $0x6e0] sm:$0xff] }
 0xe0e   :  { %5200 = vmatpush3.bf16.msra.mxu1 %v5199_v43  ;;  %4593 = vmatprep.mubr.msk.f32.mxu1 %vm5567_vm9, %v5558_v6  ;;  %v5238_v43 = vpack.c.bf16 %v3805_v24, %v3804_v55  ;;  %v5241_v5 = vpack.c.bf16 %v3807_v45, %v3806_v44 }
 0xe0f   :  { %5201 = vmatprep.subr.bf16.mxu1 %v5566_v23 }
 0xe12   :  { %5203 = vmatpush3.bf16.msra.mxu1 %v5202_v15  ;;  %v3808_v15 = vld [vmem:[%s7332_s13 + $0x6f0] sm:$0xff] }
 0xe13   :  { %5204 = vmatprep.subr.bf16.mxu1 %v5566_v23  ;;  %v5244_v47 = vpack.c.bf16 %v3809_v60, %v3808_v15 }
 0xe16   :  { %5206 = vmatpush3.bf16.msra.mxu1 %v5205_v48  ;;  %v3145_v48 = vrot.slane %v6914_v35, 5 }
 0xe17   :  { %5207 = vmatprep.subr.bf16.mxu1 %v5566_v23 }
 0xe1a   :  { %5209 = vmatpush3.bf16.msra.mxu1 %v5208_v39  ;;  %v3233_v39 = vld [vmem:[%s7333_s15 + $0x70] sm:$0xff] }
 0xe1b   :  { %5210 = vmatprep.subr.bf16.mxu1 %v5566_v23  ;;  %v5268_v56 = vpack.c.bf16 %v3234_v50, %v3233_v39 }
 0xe1e   :  { %5212 = vmatpush3.bf16.msra.mxu1 %v5211_v53 }
 0xe1f   :  { %5213 = vmatprep.subr.bf16.mxu1 %v5566_v23 }
 0xe22   :  { %5215 = vmatpush3.bf16.msra.mxu1 %v5214_v38 }
 0xe23   :  { %5216 = vmatprep.subr.bf16.mxu1 %v5566_v23 }
 0xe26   :  { %5218 = vmatpush3.bf16.msra.mxu1 %v5217_v30 }
 0xe27   :  { %5219 = vmatprep.subr.bf16.mxu1 %v5566_v23 }
 0xe2a   :  { %5221 = vmatpush3.bf16.msra.mxu1 %v5220_v10 }
 0xe2b   :  { %5222 = vmatprep.subr.bf16.mxu1 %v5566_v23 }
 0xe2d   :  { %4594 = vmatmul.mubr.f32.vlgmr.msra.gmra.mrb[12].mxu1 %v3055_v14 }
 0xe2e   :  { %5224 = vmatpush3.bf16.msra.mxu1 %v5223_v13  ;;  %4628 = vmatprep.mubr.msk.f32.mxu1 %vm5567_vm9, %v5558_v6  ;;  %v3230_v6 = vld [vmem:[%s7333_s15 + $0x58] sm:$0xff] }
 0xe2f   :  { %5225 = vmatprep.subr.bf16.mxu1 %v5566_v23  ;;  %v5262_v28 = vpack.c.bf16 %v3230_v6, %v3229_v1 }
 0xe31   :  { %5263 = vmatpush3.bf16.msra.mxu0 %v5262_v28 }
 0xe32   :  { %5227 = vmatpush3.bf16.msra.mxu1 %v5226_v19  ;;  %5264 = vmatprep.subr.bf16.mxu0 %v5566_v23 }
 0xe33   :  { %5228 = vmatprep.subr.bf16.mxu1 %v5566_v23 }
 0xe35   :  { %5266 = vmatpush3.bf16.msra.mxu0 %v5265_v33 }
 0xe36   :  { %5230 = vmatpush3.bf16.msra.mxu1 %v5229_v4  ;;  %5267 = vmatprep.subr.bf16.mxu0 %v5566_v23 }
 0xe37   :  { %5231 = vmatprep.subr.bf16.mxu1 %v5566_v23 }
 0xe39   :  { %5269 = vmatpush3.bf16.msra.mxu0 %v5268_v56 }
 0xe3a   :  { %5233 = vmatpush3.bf16.msra.mxu1 %v5232_v52 }
 0xe3b   :  { %5234 = vmatprep.subr.bf16.mxu1 %v5566_v23 }
 0xe3e   :  { %5236 = vmatpush3.bf16.msra.mxu1 %v5235_v34 }
 0xe3f   :  { %5237 = vmatprep.subr.bf16.mxu1 %v5566_v23 }
 0xe42   :  { %5239 = vmatpush3.bf16.msra.mxu1 %v5238_v43 }
 0xe43   :  { %5240 = vmatprep.subr.bf16.mxu1 %v5566_v23 }
 0xe46   :  { %5242 = vmatpush3.bf16.msra.mxu1 %v5241_v5 }
 0xe47   :  { %5243 = vmatprep.subr.bf16.mxu1 %v5566_v23  ;;  %v1960_v23 = vld [vmem:[%s7334_s14] sm:$0x1] }
 0xe4a   :  { %5245 = vmatpush3.bf16.msra.mxu1 %v5244_v47 }
 0xe4d   :  { %4629 = vmatmul.mubr.f32.vlgmr.msra.gmra.mrb[12].mxu1 %v3145_v48 }
 0xe9e   :  { %v2404_v20 = vpop.f32.mrb[32].mxu0 }
 0xe9f   :  { %v4315_v49 = vpop.f32.mrb[33].mxu0  ;;  %v5270_v53 = vadd.f32 %v2404_v20, %v1960_v23 }
 0xf20   :  { %v3213_v37 = vpop.f32.mrb[12].mxu1 }
 0xf21   :  { %v5271_v35 = vadd.f32 %v5270_v53, %v3213_v37  ;;  %v4630_v32 = vpop.f32.mrb[13].mxu1 }
 0xf23   :  { %v3218_v38 = vmax.f32 %v5271_v35, 0.0 }
 0xf25   :  { %4664 = vmatmul.mubr.f32.vlgmr.msra.gmra.mrb[34].mxu0 %v3218_v38 }
 0xff8   :  { %v3302_v41 = vpop.f32.mrb[34].mxu0 }
 0xff9   :  { %v3303_v57 = vadd.f32 %v3302_v41, %v3235_v40  ;;  %v4665_v58 = vpop.f32.mrb[35].mxu0 }
 0xffb   :  { %3307 = vst.msk [vmem:[%s7336_s17] sm:$0x1] %vm3306_vm13, %v3303_v57 }

</bundles_post_ra>
